<compile_context>
chip_gen: v7x
topology: tpu7x:2x2x1
jax: 0.10.0
libtpu: 0.0.40
codegen_flags: <defaults>
</compile_context>

<pallas_src>
import jax
import jax.numpy as jnp
from jax import lax
from jax.experimental import pallas as pl
from jax.experimental.pallas import tpu as pltpu

NPOOL = 4  # 2x2 max-pool window positions


# ---------------- fused Pallas kernel ----------------

def _fused_kernel(xg_ref, wbd_ref, fcw_ref, fcb_ref, out_ref):
    # xg_ref : (1, NPOOL*KP, M*TB) bf16  im2col; 4 pool positions stacked on the
    #                                    contraction rows, lane index = m*TB + t
    # wbd_ref: (NPOOL*OC, NPOOL*KP) bf16 block-diagonal conv weight = kron(I4, Wc)
    # fcw_ref: (NC, OC*M) f32            FC weight, columns ordered m*OC + oc
    # fcb_ref: (NC, 1)   f32
    # out_ref: (1, NC, TB) f32           logits, transposed (batch on lanes)
    oc = wbd_ref.shape[0] // NPOOL
    tb = out_ref.shape[2]
    l = xg_ref.shape[-1]
    m = l // tb                                   # 196 pooled pixels

    # Conv for all 4 pool-window positions in ONE MXU matmul (fewer, larger pushes).
    y = jnp.dot(wbd_ref[...], xg_ref[0],
                preferred_element_type=jnp.float32)          # (4*OC, M*TB) f32

    # 2x2 max-pool = tree max over the 4 stacked row blocks; ReLU after (they commute).
    p01 = jnp.maximum(y[0 * oc:1 * oc], y[1 * oc:2 * oc])
    p23 = jnp.maximum(y[2 * oc:3 * oc], y[3 * oc:4 * oc])
    pooled = jnp.maximum(jnp.maximum(p01, p23), 0.0)         # (OC, M*TB)

    # Relayout (oc, m*TB + t) -> (m*OC + oc, t): static lane slices + sublane concat.
    q = jnp.concatenate([pooled[:, i * tb:(i + 1) * tb] for i in range(m)],
                        axis=0)                              # (OC*M, TB)

    # Linear layer: one (NC, OC*M) x (OC*M, TB) MXU matmul, batch on the lane dim.
    out_ref[0] = fcb_ref[...] + jnp.dot(fcw_ref[...], q,
                                        preferred_element_type=jnp.float32)


def fused_conv_pool_fc(xg_blk, w_bd, fcw_mm, fcb, *, tb):
    nb, rows, l = xg_blk.shape
    nc = fcw_mm.shape[0]
    oc = w_bd.shape[0] // NPOOL
    m = l // tb

    flops = nb * (2 * w_bd.shape[0] * w_bd.shape[1] * l + 2 * nc * fcw_mm.shape[1] * tb)
    bytes_accessed = (xg_blk.size * 2 + w_bd.size * 2 + fcw_mm.size * 4
                      + fcb.size * 4 + nb * nc * tb * 4)

    # Per-step VMEM estimate: 2x buffered xg block + conv/pool/FC intermediates.
    est = 2 * rows * l * 2 + (w_bd.shape[0] + 3 * oc) * l * 4 + m * oc * tb * 4
    vmem_limit = 48 * 1024 * 1024 if est > 10 * 1024 * 1024 else None

    return pl.pallas_call(
        _fused_kernel,
        out_shape=jax.ShapeDtypeStruct((nb, nc, tb), jnp.float32),
        grid=(nb,),
        in_specs=[
            pl.BlockSpec((1, rows, l), lambda b: (b, 0, 0)),        # TB-sample im2col block
            pl.BlockSpec(w_bd.shape, lambda b: (0, 0)),             # conv weight (resident)
            pl.BlockSpec(fcw_mm.shape, lambda b: (0, 0)),           # FC weight (resident)
            pl.BlockSpec(fcb.shape, lambda b: (0, 0)),              # FC bias
        ],
        out_specs=pl.BlockSpec((1, nc, tb), lambda b: (b, 0, 0)),
        compiler_params=pltpu.CompilerParams(
            dimension_semantics=("parallel",),
            vmem_limit_bytes=vmem_limit),
        cost_estimate=pl.CostEstimate(flops=flops, transcendentals=0,
                                      bytes_accessed=bytes_accessed),
    )(xg_blk, w_bd, fcw_mm, fcb)


# ---------------- forward pass (layout plumbing + fused kernel) ----------------

@jax.jit
def simple_cnn_forward(x, k31, k13, fc_w, fc_b):
    B, C, H, W = x.shape
    OC = k31.shape[0]
    NC = fc_w.shape[0]
    Hp, Wp = H // 2, W // 2
    M = Hp * Wp                                   # 196 pooled pixels
    K = C * 9
    KP = (K + 7) // 8 * 8                         # contraction dim padded 27 -> 32

    # --- batch tiling: TB samples per grid step (64 is safe on v5e/v6e/v7x VMEM) ---
    TB = B if B <= 64 else 64
    nb = -(-B // TB)
    B_pad = nb * TB
    if B_pad != B:
        x = jnp.pad(x, ((0, B_pad - B), (0, 0), (0, 0), (0, 0)))

    # --- parameters (tiny, one-time layout plumbing) ---
    wc = jnp.pad((k31 * k13).reshape(OC, K), ((0, 0), (0, KP - K)))      # (OC, KP)
    w_bd = jnp.kron(jnp.eye(NPOOL, dtype=wc.dtype), wc).astype(jnp.bfloat16)  # (4*OC, 4*KP)
    # PyTorch flatten order is (oc, ip, jp); re-lay columns as m*OC + oc
    fcw_mm = fc_w.reshape(NC, OC, M).transpose(0, 2, 1).reshape(NC, OC * M)
    fcb = fc_b.reshape(NC, 1)

    # --- im2col grouped by 2x2 pool-window position, batch-minor lanes (bf16) ---
    # xg_blk[blk, p*KP + (c*9+u*3+v), m*TB + t] = x_pad[blk*TB+t, c, 2*ip+di+u, 2*jp+dj+v]
    x_pad = jnp.pad(x, ((0, 0), (0, 0), (1, 1), (1, 1)))
    patches = jnp.stack([x_pad[:, :, u:u + H, v:v + W]
                         for u in range(3) for v in range(3)], axis=2)   # (B,C,9,H,W)
    patches = patches.reshape(B_pad, C, 9, Hp, 2, Wp, 2)                 # (b,c,uv,ip,di,jp,dj)
    xg = patches.transpose(0, 4, 6, 1, 2, 3, 5).reshape(B_pad, NPOOL, K, M)
    xg = jnp.pad(xg, ((0, 0), (0, 0), (0, KP - K), (0, 0)))              # (B_pad, 4, KP, M)
    xg_blk = (xg.reshape(nb, TB, NPOOL, KP, M)
                .transpose(0, 2, 3, 4, 1)
                .reshape(nb, NPOOL * KP, M * TB)
                .astype(jnp.bfloat16))
    # TODO(synk): move patch extraction in-kernel (DMA raw padded x, form the 9 shifted
    # views in VMEM) to cut the ~10x im2col HBM stream; blocked on a Mosaic-friendly
    # (H,W)->(H*W) relayout, so it stays on the XLA side for now.

    outT = fused_conv_pool_fc(xg_blk, w_bd, fcw_mm, fcb, tb=TB)          # (nb, NC, TB)
    out = outT.transpose(0, 2, 1).reshape(B_pad, NC)
    return out[:B]


def reference_forward(x, k31, k13, fc_w, fc_b):
    w = k31 * k13
    y = lax.conv_general_dilated(
        x, w, window_strides=(1, 1), padding=((1, 1), (1, 1)),
        dimension_numbers=("NCHW", "OIHW", "NCHW"),
        precision=lax.Precision.HIGHEST)
    y = jnp.maximum(y, 0.0)
    B, OC, H, W = y.shape
    y = y.reshape(B, OC, H // 2, 2, W // 2, 2).max(axis=(3, 5))
    return y.reshape(B, -1) @ fc_w.T + fc_b


if __name__ == "__main__":
    key = jax.random.PRNGKey(0)
    kx, k1, k2, k3, k4 = jax.random.split(key, 5)

    # spatial must be 28x28: the module hardcodes fc = Linear(16*14*14, num_classes)
    B, C, H, W = 2, 3, 28, 28
    OC, NC = 16, 10

    x = jax.random.normal(kx, (B, C, H, W), jnp.float32)
    k31 = jax.random.normal(k1, (OC, C, 3, 1), jnp.float32)       # nn.Parameter(randn)
    k13 = jax.random.normal(k2, (OC, C, 1, 3), jnp.float32)       # nn.Parameter(randn)
    fc_w = jax.random.normal(k3, (NC, OC * 14 * 14), jnp.float32) * 0.02
    fc_b = jax.random.normal(k4, (NC,), jnp.float32) * 0.02

    out = jax.block_until_ready(simple_cnn_forward(x, k31, k13, fc_w, fc_b))
    ref = jax.block_until_ready(reference_forward(x, k31, k13, fc_w, fc_b))

    assert out.shape == (B, NC), out.shape
    # bf16 im2col stream -> compare max abs error relative to the output scale
    scale = float(jnp.maximum(jnp.max(jnp.abs(ref)), 1.0))
    err = float(jnp.max(jnp.abs(out - ref))) / scale
    assert err < 2e-2, f"relative-to-scale error {err}"
    print("KERNEL_OK")
</pallas_src>

<mosaic_0001>
module attributes {stable_mosaic.version = 11 : i64} {
  func.func @_fused_kernel(%arg0: i32, %arg1: memref<1x128x392xbf16, #tpu.memory_space<vmem>>, %arg2: memref<64x128xbf16, #tpu.memory_space<vmem>>, %arg3: memref<10x3136xf32, #tpu.memory_space<vmem>>, %arg4: memref<10x1xf32, #tpu.memory_space<vmem>>, %arg5: memref<1x10x2xf32, #tpu.memory_space<vmem>>) attributes {dimension_semantics = [#tpu.dimension_semantics<parallel>], iteration_bounds = array<i64: 1>, scalar_prefetch = 0 : i64, scratch_operands = 0 : i64, tpu.core_type = #tpu.core_type<tc>, window_params = [{transform_indices = @transform_0, window_bounds = array<i64: 1, 128, 392>}, {pipeline_mode = #tpu.pipeline_mode<synchronous>, transform_indices = @transform_1, window_bounds = array<i64: 64, 128>}, {pipeline_mode = #tpu.pipeline_mode<synchronous>, transform_indices = @transform_2, window_bounds = array<i64: 10, 3136>}, {pipeline_mode = #tpu.pipeline_mode<synchronous>, transform_indices = @transform_3, window_bounds = array<i64: 10, 1>}, {transform_indices = @transform_4, window_bounds = array<i64: 1, 10, 2>}]} {
    %c0 = arith.constant 0 : index
    %c0_0 = arith.constant 0 : index
    %0 = vector.load %arg2[%c0, %c0_0] : memref<64x128xbf16, #tpu.memory_space<vmem>>, vector<64x128xbf16>
    %c0_1 = arith.constant 0 : index
    %c0_2 = arith.constant 0 : index
    %c0_3 = arith.constant 0 : index
    %1 = vector.load %arg1[%c0_1, %c0_2, %c0_3] : memref<1x128x392xbf16, #tpu.memory_space<vmem>>, vector<1x128x392xbf16>
    %2 = vector.shape_cast %1 : vector<1x128x392xbf16> to vector<128x392xbf16>
    %cst = arith.constant dense<0.000000e+00> : vector<64x392xf32>
    %3 = tpu.matmul %0, %2, %cst {dimension_numbers = #tpu.dot_dimension_numbers<[1], [0], [0], [1], [0, 0, 1, 1], [], []>} : vector<64x128xbf16>, vector<128x392xbf16>, vector<64x392xf32> -> vector<64x392xf32>
    %4 = vector.extract_strided_slice %3 {offsets = [0, 0], sizes = [16, 392], strides = [1, 1]} : vector<64x392xf32> to vector<16x392xf32>
    %5 = vector.extract_strided_slice %3 {offsets = [16, 0], sizes = [16, 392], strides = [1, 1]} : vector<64x392xf32> to vector<16x392xf32>
    %6 = arith.maximumf %4, %5 : vector<16x392xf32>
    %7 = vector.extract_strided_slice %3 {offsets = [32, 0], sizes = [16, 392], strides = [1, 1]} : vector<64x392xf32> to vector<16x392xf32>
    %8 = vector.extract_strided_slice %3 {offsets = [48, 0], sizes = [16, 392], strides = [1, 1]} : vector<64x392xf32> to vector<16x392xf32>
    %9 = arith.maximumf %7, %8 : vector<16x392xf32>
    %10 = arith.maximumf %6, %9 : vector<16x392xf32>
    %cst_4 = arith.constant 0.000000e+00 : f32
    %11 = vector.broadcast %cst_4 : f32 to vector<16x392xf32>
    %12 = arith.maximumf %10, %11 : vector<16x392xf32>
    %13 = vector.extract_strided_slice %12 {offsets = [0, 0], sizes = [16, 2], strides = [1, 1]} : vector<16x392xf32> to vector<16x2xf32>
    %14 = vector.extract_strided_slice %12 {offsets = [0, 2], sizes = [16, 2], strides = [1, 1]} : vector<16x392xf32> to vector<16x2xf32>
    %15 = vector.extract_strided_slice %12 {offsets = [0, 4], sizes = [16, 2], strides = [1, 1]} : vector<16x392xf32> to vector<16x2xf32>
    %16 = vector.extract_strided_slice %12 {offsets = [0, 6], sizes = [16, 2], strides = [1, 1]} : vector<16x392xf32> to vector<16x2xf32>
    %17 = vector.extract_strided_slice %12 {offsets = [0, 8], sizes = [16, 2], strides = [1, 1]} : vector<16x392xf32> to vector<16x2xf32>
    %18 = vector.extract_strided_slice %12 {offsets = [0, 10], sizes = [16, 2], strides = [1, 1]} : vector<16x392xf32> to vector<16x2xf32>
    %19 = vector.extract_strided_slice %12 {offsets = [0, 12], sizes = [16, 2], strides = [1, 1]} : vector<16x392xf32> to vector<16x2xf32>
    %20 = vector.extract_strided_slice %12 {offsets = [0, 14], sizes = [16, 2], strides = [1, 1]} : vector<16x392xf32> to vector<16x2xf32>
    %21 = vector.extract_strided_slice %12 {offsets = [0, 16], sizes = [16, 2], strides = [1, 1]} : vector<16x392xf32> to vector<16x2xf32>
    %22 = vector.extract_strided_slice %12 {offsets = [0, 18], sizes = [16, 2], strides = [1, 1]} : vector<16x392xf32> to vector<16x2xf32>
    %23 = vector.extract_strided_slice %12 {offsets = [0, 20], sizes = [16, 2], strides = [1, 1]} : vector<16x392xf32> to vector<16x2xf32>
    %24 = vector.extract_strided_slice %12 {offsets = [0, 22], sizes = [16, 2], strides = [1, 1]} : vector<16x392xf32> to vector<16x2xf32>
    %25 = vector.extract_strided_slice %12 {offsets = [0, 24], sizes = [16, 2], strides = [1, 1]} : vector<16x392xf32> to vector<16x2xf32>
    %26 = vector.extract_strided_slice %12 {offsets = [0, 26], sizes = [16, 2], strides = [1, 1]} : vector<16x392xf32> to vector<16x2xf32>
    %27 = vector.extract_strided_slice %12 {offsets = [0, 28], sizes = [16, 2], strides = [1, 1]} : vector<16x392xf32> to vector<16x2xf32>
    %28 = vector.extract_strided_slice %12 {offsets = [0, 30], sizes = [16, 2], strides = [1, 1]} : vector<16x392xf32> to vector<16x2xf32>
    %29 = vector.extract_strided_slice %12 {offsets = [0, 32], sizes = [16, 2], strides = [1, 1]} : vector<16x392xf32> to vector<16x2xf32>
    %30 = vector.extract_strided_slice %12 {offsets = [0, 34], sizes = [16, 2], strides = [1, 1]} : vector<16x392xf32> to vector<16x2xf32>
    %31 = vector.extract_strided_slice %12 {offsets = [0, 36], sizes = [16, 2], strides = [1, 1]} : vector<16x392xf32> to vector<16x2xf32>
    %32 = vector.extract_strided_slice %12 {offsets = [0, 38], sizes = [16, 2], strides = [1, 1]} : vector<16x392xf32> to vector<16x2xf32>
    %33 = vector.extract_strided_slice %12 {offsets = [0, 40], sizes = [16, 2], strides = [1, 1]} : vector<16x392xf32> to vector<16x2xf32>
    %34 = vector.extract_strided_slice %12 {offsets = [0, 42], sizes = [16, 2], strides = [1, 1]} : vector<16x392xf32> to vector<16x2xf32>
    %35 = vector.extract_strided_slice %12 {offsets = [0, 44], sizes = [16, 2], strides = [1, 1]} : vector<16x392xf32> to vector<16x2xf32>
    %36 = vector.extract_strided_slice %12 {offsets = [0, 46], sizes = [16, 2], strides = [1, 1]} : vector<16x392xf32> to vector<16x2xf32>
    %37 = vector.extract_strided_slice %12 {offsets = [0, 48], sizes = [16, 2], strides = [1, 1]} : vector<16x392xf32> to vector<16x2xf32>
    %38 = vector.extract_strided_slice %12 {offsets = [0, 50], sizes = [16, 2], strides = [1, 1]} : vector<16x392xf32> to vector<16x2xf32>
    %39 = vector.extract_strided_slice %12 {offsets = [0, 52], sizes = [16, 2], strides = [1, 1]} : vector<16x392xf32> to vector<16x2xf32>
    %40 = vector.extract_strided_slice %12 {offsets = [0, 54], sizes = [16, 2], strides = [1, 1]} : vector<16x392xf32> to vector<16x2xf32>
    %41 = vector.extract_strided_slice %12 {offsets = [0, 56], sizes = [16, 2], strides = [1, 1]} : vector<16x392xf32> to vector<16x2xf32>
    %42 = vector.extract_strided_slice %12 {offsets = [0, 58], sizes = [16, 2], strides = [1, 1]} : vector<16x392xf32> to vector<16x2xf32>
    %43 = vector.extract_strided_slice %12 {offsets = [0, 60], sizes = [16, 2], strides = [1, 1]} : vector<16x392xf32> to vector<16x2xf32>
    %44 = vector.extract_strided_slice %12 {offsets = [0, 62], sizes = [16, 2], strides = [1, 1]} : vector<16x392xf32> to vector<16x2xf32>
    %45 = vector.extract_strided_slice %12 {offsets = [0, 64], sizes = [16, 2], strides = [1, 1]} : vector<16x392xf32> to vector<16x2xf32>
    %46 = vector.extract_strided_slice %12 {offsets = [0, 66], sizes = [16, 2], strides = [1, 1]} : vector<16x392xf32> to vector<16x2xf32>
    %47 = vector.extract_strided_slice %12 {offsets = [0, 68], sizes = [16, 2], strides = [1, 1]} : vector<16x392xf32> to vector<16x2xf32>
    %48 = vector.extract_strided_slice %12 {offsets = [0, 70], sizes = [16, 2], strides = [1, 1]} : vector<16x392xf32> to vector<16x2xf32>
    %49 = vector.extract_strided_slice %12 {offsets = [0, 72], sizes = [16, 2], strides = [1, 1]} : vector<16x392xf32> to vector<16x2xf32>
    %50 = vector.extract_strided_slice %12 {offsets = [0, 74], sizes = [16, 2], strides = [1, 1]} : vector<16x392xf32> to vector<16x2xf32>
    %51 = vector.extract_strided_slice %12 {offsets = [0, 76], sizes = [16, 2], strides = [1, 1]} : vector<16x392xf32> to vector<16x2xf32>
    %52 = vector.extract_strided_slice %12 {offsets = [0, 78], sizes = [16, 2], strides = [1, 1]} : vector<16x392xf32> to vector<16x2xf32>
    %53 = vector.extract_strided_slice %12 {offsets = [0, 80], sizes = [16, 2], strides = [1, 1]} : vector<16x392xf32> to vector<16x2xf32>
    %54 = vector.extract_strided_slice %12 {offsets = [0, 82], sizes = [16, 2], strides = [1, 1]} : vector<16x392xf32> to vector<16x2xf32>
    %55 = vector.extract_strided_slice %12 {offsets = [0, 84], sizes = [16, 2], strides = [1, 1]} : vector<16x392xf32> to vector<16x2xf32>
    %56 = vector.extract_strided_slice %12 {offsets = [0, 86], sizes = [16, 2], strides = [1, 1]} : vector<16x392xf32> to vector<16x2xf32>
    %57 = vector.extract_strided_slice %12 {offsets = [0, 88], sizes = [16, 2], strides = [1, 1]} : vector<16x392xf32> to vector<16x2xf32>
    %58 = vector.extract_strided_slice %12 {offsets = [0, 90], sizes = [16, 2], strides = [1, 1]} : vector<16x392xf32> to vector<16x2xf32>
    %59 = vector.extract_strided_slice %12 {offsets = [0, 92], sizes = [16, 2], strides = [1, 1]} : vector<16x392xf32> to vector<16x2xf32>
    %60 = vector.extract_strided_slice %12 {offsets = [0, 94], sizes = [16, 2], strides = [1, 1]} : vector<16x392xf32> to vector<16x2xf32>
    %61 = vector.extract_strided_slice %12 {offsets = [0, 96], sizes = [16, 2], strides = [1, 1]} : vector<16x392xf32> to vector<16x2xf32>
    %62 = vector.extract_strided_slice %12 {offsets = [0, 98], sizes = [16, 2], strides = [1, 1]} : vector<16x392xf32> to vector<16x2xf32>
    %63 = vector.extract_strided_slice %12 {offsets = [0, 100], sizes = [16, 2], strides = [1, 1]} : vector<16x392xf32> to vector<16x2xf32>
    %64 = vector.extract_strided_slice %12 {offsets = [0, 102], sizes = [16, 2], strides = [1, 1]} : vector<16x392xf32> to vector<16x2xf32>
    %65 = vector.extract_strided_slice %12 {offsets = [0, 104], sizes = [16, 2], strides = [1, 1]} : vector<16x392xf32> to vector<16x2xf32>
    %66 = vector.extract_strided_slice %12 {offsets = [0, 106], sizes = [16, 2], strides = [1, 1]} : vector<16x392xf32> to vector<16x2xf32>
    %67 = vector.extract_strided_slice %12 {offsets = [0, 108], sizes = [16, 2], strides = [1, 1]} : vector<16x392xf32> to vector<16x2xf32>
    %68 = vector.extract_strided_slice %12 {offsets = [0, 110], sizes = [16, 2], strides = [1, 1]} : vector<16x392xf32> to vector<16x2xf32>
    %69 = vector.extract_strided_slice %12 {offsets = [0, 112], sizes = [16, 2], strides = [1, 1]} : vector<16x392xf32> to vector<16x2xf32>
    %70 = vector.extract_strided_slice %12 {offsets = [0, 114], sizes = [16, 2], strides = [1, 1]} : vector<16x392xf32> to vector<16x2xf32>
    %71 = vector.extract_strided_slice %12 {offsets = [0, 116], sizes = [16, 2], strides = [1, 1]} : vector<16x392xf32> to vector<16x2xf32>
    %72 = vector.extract_strided_slice %12 {offsets = [0, 118], sizes = [16, 2], strides = [1, 1]} : vector<16x392xf32> to vector<16x2xf32>
    %73 = vector.extract_strided_slice %12 {offsets = [0, 120], sizes = [16, 2], strides = [1, 1]} : vector<16x392xf32> to vector<16x2xf32>
    %74 = vector.extract_strided_slice %12 {offsets = [0, 122], sizes = [16, 2], strides = [1, 1]} : vector<16x392xf32> to vector<16x2xf32>
    %75 = vector.extract_strided_slice %12 {offsets = [0, 124], sizes = [16, 2], strides = [1, 1]} : vector<16x392xf32> to vector<16x2xf32>
    %76 = vector.extract_strided_slice %12 {offsets = [0, 126], sizes = [16, 2], strides = [1, 1]} : vector<16x392xf32> to vector<16x2xf32>
    %77 = vector.extract_strided_slice %12 {offsets = [0, 128], sizes = [16, 2], strides = [1, 1]} : vector<16x392xf32> to vector<16x2xf32>
    %78 = vector.extract_strided_slice %12 {offsets = [0, 130], sizes = [16, 2], strides = [1, 1]} : vector<16x392xf32> to vector<16x2xf32>
    %79 = vector.extract_strided_slice %12 {offsets = [0, 132], sizes = [16, 2], strides = [1, 1]} : vector<16x392xf32> to vector<16x2xf32>
    %80 = vector.extract_strided_slice %12 {offsets = [0, 134], sizes = [16, 2], strides = [1, 1]} : vector<16x392xf32> to vector<16x2xf32>
    %81 = vector.extract_strided_slice %12 {offsets = [0, 136], sizes = [16, 2], strides = [1, 1]} : vector<16x392xf32> to vector<16x2xf32>
    %82 = vector.extract_strided_slice %12 {offsets = [0, 138], sizes = [16, 2], strides = [1, 1]} : vector<16x392xf32> to vector<16x2xf32>
    %83 = vector.extract_strided_slice %12 {offsets = [0, 140], sizes = [16, 2], strides = [1, 1]} : vector<16x392xf32> to vector<16x2xf32>
    %84 = vector.extract_strided_slice %12 {offsets = [0, 142], sizes = [16, 2], strides = [1, 1]} : vector<16x392xf32> to vector<16x2xf32>
    %85 = vector.extract_strided_slice %12 {offsets = [0, 144], sizes = [16, 2], strides = [1, 1]} : vector<16x392xf32> to vector<16x2xf32>
    %86 = vector.extract_strided_slice %12 {offsets = [0, 146], sizes = [16, 2], strides = [1, 1]} : vector<16x392xf32> to vector<16x2xf32>
    %87 = vector.extract_strided_slice %12 {offsets = [0, 148], sizes = [16, 2], strides = [1, 1]} : vector<16x392xf32> to vector<16x2xf32>
    %88 = vector.extract_strided_slice %12 {offsets = [0, 150], sizes = [16, 2], strides = [1, 1]} : vector<16x392xf32> to vector<16x2xf32>
    %89 = vector.extract_strided_slice %12 {offsets = [0, 152], sizes = [16, 2], strides = [1, 1]} : vector<16x392xf32> to vector<16x2xf32>
    %90 = vector.extract_strided_slice %12 {offsets = [0, 154], sizes = [16, 2], strides = [1, 1]} : vector<16x392xf32> to vector<16x2xf32>
    %91 = vector.extract_strided_slice %12 {offsets = [0, 156], sizes = [16, 2], strides = [1, 1]} : vector<16x392xf32> to vector<16x2xf32>
    %92 = vector.extract_strided_slice %12 {offsets = [0, 158], sizes = [16, 2], strides = [1, 1]} : vector<16x392xf32> to vector<16x2xf32>
    %93 = vector.extract_strided_slice %12 {offsets = [0, 160], sizes = [16, 2], strides = [1, 1]} : vector<16x392xf32> to vector<16x2xf32>
    %94 = vector.extract_strided_slice %12 {offsets = [0, 162], sizes = [16, 2], strides = [1, 1]} : vector<16x392xf32> to vector<16x2xf32>
    %95 = vector.extract_strided_slice %12 {offsets = [0, 164], sizes = [16, 2], strides = [1, 1]} : vector<16x392xf32> to vector<16x2xf32>
    %96 = vector.extract_strided_slice %12 {offsets = [0, 166], sizes = [16, 2], strides = [1, 1]} : vector<16x392xf32> to vector<16x2xf32>
    %97 = vector.extract_strided_slice %12 {offsets = [0, 168], sizes = [16, 2], strides = [1, 1]} : vector<16x392xf32> to vector<16x2xf32>
    %98 = vector.extract_strided_slice %12 {offsets = [0, 170], sizes = [16, 2], strides = [1, 1]} : vector<16x392xf32> to vector<16x2xf32>
    %99 = vector.extract_strided_slice %12 {offsets = [0, 172], sizes = [16, 2], strides = [1, 1]} : vector<16x392xf32> to vector<16x2xf32>
    %100 = vector.extract_strided_slice %12 {offsets = [0, 174], sizes = [16, 2], strides = [1, 1]} : vector<16x392xf32> to vector<16x2xf32>
    %101 = vector.extract_strided_slice %12 {offsets = [0, 176], sizes = [16, 2], strides = [1, 1]} : vector<16x392xf32> to vector<16x2xf32>
    %102 = vector.extract_strided_slice %12 {offsets = [0, 178], sizes = [16, 2], strides = [1, 1]} : vector<16x392xf32> to vector<16x2xf32>
    %103 = vector.extract_strided_slice %12 {offsets = [0, 180], sizes = [16, 2], strides = [1, 1]} : vector<16x392xf32> to vector<16x2xf32>
    %104 = vector.extract_strided_slice %12 {offsets = [0, 182], sizes = [16, 2], strides = [1, 1]} : vector<16x392xf32> to vector<16x2xf32>
    %105 = vector.extract_strided_slice %12 {offsets = [0, 184], sizes = [16, 2], strides = [1, 1]} : vector<16x392xf32> to vector<16x2xf32>
    %106 = vector.extract_strided_slice %12 {offsets = [0, 186], sizes = [16, 2], strides = [1, 1]} : vector<16x392xf32> to vector<16x2xf32>
    %107 = vector.extract_strided_slice %12 {offsets = [0, 188], sizes = [16, 2], strides = [1, 1]} : vector<16x392xf32> to vector<16x2xf32>
    %108 = vector.extract_strided_slice %12 {offsets = [0, 190], sizes = [16, 2], strides = [1, 1]} : vector<16x392xf32> to vector<16x2xf32>
    %109 = vector.extract_strided_slice %12 {offsets = [0, 192], sizes = [16, 2], strides = [1, 1]} : vector<16x392xf32> to vector<16x2xf32>
    %110 = vector.extract_strided_slice %12 {offsets = [0, 194], sizes = [16, 2], strides = [1, 1]} : vector<16x392xf32> to vector<16x2xf32>
    %111 = vector.extract_strided_slice %12 {offsets = [0, 196], sizes = [16, 2], strides = [1, 1]} : vector<16x392xf32> to vector<16x2xf32>
    %112 = vector.extract_strided_slice %12 {offsets = [0, 198], sizes = [16, 2], strides = [1, 1]} : vector<16x392xf32> to vector<16x2xf32>
    %113 = vector.extract_strided_slice %12 {offsets = [0, 200], sizes = [16, 2], strides = [1, 1]} : vector<16x392xf32> to vector<16x2xf32>
    %114 = vector.extract_strided_slice %12 {offsets = [0, 202], sizes = [16, 2], strides = [1, 1]} : vector<16x392xf32> to vector<16x2xf32>
    %115 = vector.extract_strided_slice %12 {offsets = [0, 204], sizes = [16, 2], strides = [1, 1]} : vector<16x392xf32> to vector<16x2xf32>
    %116 = vector.extract_strided_slice %12 {offsets = [0, 206], sizes = [16, 2], strides = [1, 1]} : vector<16x392xf32> to vector<16x2xf32>
    %117 = vector.extract_strided_slice %12 {offsets = [0, 208], sizes = [16, 2], strides = [1, 1]} : vector<16x392xf32> to vector<16x2xf32>
    %118 = vector.extract_strided_slice %12 {offsets = [0, 210], sizes = [16, 2], strides = [1, 1]} : vector<16x392xf32> to vector<16x2xf32>
    %119 = vector.extract_strided_slice %12 {offsets = [0, 212], sizes = [16, 2], strides = [1, 1]} : vector<16x392xf32> to vector<16x2xf32>
    %120 = vector.extract_strided_slice %12 {offsets = [0, 214], sizes = [16, 2], strides = [1, 1]} : vector<16x392xf32> to vector<16x2xf32>
    %121 = vector.extract_strided_slice %12 {offsets = [0, 216], sizes = [16, 2], strides = [1, 1]} : vector<16x392xf32> to vector<16x2xf32>
    %122 = vector.extract_strided_slice %12 {offsets = [0, 218], sizes = [16, 2], strides = [1, 1]} : vector<16x392xf32> to vector<16x2xf32>
    %123 = vector.extract_strided_slice %12 {offsets = [0, 220], sizes = [16, 2], strides = [1, 1]} : vector<16x392xf32> to vector<16x2xf32>
    %124 = vector.extract_strided_slice %12 {offsets = [0, 222], sizes = [16, 2], strides = [1, 1]} : vector<16x392xf32> to vector<16x2xf32>
    %125 = vector.extract_strided_slice %12 {offsets = [0, 224], sizes = [16, 2], strides = [1, 1]} : vector<16x392xf32> to vector<16x2xf32>
    %126 = vector.extract_strided_slice %12 {offsets = [0, 226], sizes = [16, 2], strides = [1, 1]} : vector<16x392xf32> to vector<16x2xf32>
    %127 = vector.extract_strided_slice %12 {offsets = [0, 228], sizes = [16, 2], strides = [1, 1]} : vector<16x392xf32> to vector<16x2xf32>
    %128 = vector.extract_strided_slice %12 {offsets = [0, 230], sizes = [16, 2], strides = [1, 1]} : vector<16x392xf32> to vector<16x2xf32>
    %129 = vector.extract_strided_slice %12 {offsets = [0, 232], sizes = [16, 2], strides = [1, 1]} : vector<16x392xf32> to vector<16x2xf32>
    %130 = vector.extract_strided_slice %12 {offsets = [0, 234], sizes = [16, 2], strides = [1, 1]} : vector<16x392xf32> to vector<16x2xf32>
    %131 = vector.extract_strided_slice %12 {offsets = [0, 236], sizes = [16, 2], strides = [1, 1]} : vector<16x392xf32> to vector<16x2xf32>
    %132 = vector.extract_strided_slice %12 {offsets = [0, 238], sizes = [16, 2], strides = [1, 1]} : vector<16x392xf32> to vector<16x2xf32>
    %133 = vector.extract_strided_slice %12 {offsets = [0, 240], sizes = [16, 2], strides = [1, 1]} : vector<16x392xf32> to vector<16x2xf32>
    %134 = vector.extract_strided_slice %12 {offsets = [0, 242], sizes = [16, 2], strides = [1, 1]} : vector<16x392xf32> to vector<16x2xf32>
    %135 = vector.extract_strided_slice %12 {offsets = [0, 244], sizes = [16, 2], strides = [1, 1]} : vector<16x392xf32> to vector<16x2xf32>
    %136 = vector.extract_strided_slice %12 {offsets = [0, 246], sizes = [16, 2], strides = [1, 1]} : vector<16x392xf32> to vector<16x2xf32>
    %137 = vector.extract_strided_slice %12 {offsets = [0, 248], sizes = [16, 2], strides = [1, 1]} : vector<16x392xf32> to vector<16x2xf32>
    %138 = vector.extract_strided_slice %12 {offsets = [0, 250], sizes = [16, 2], strides = [1, 1]} : vector<16x392xf32> to vector<16x2xf32>
    %139 = vector.extract_strided_slice %12 {offsets = [0, 252], sizes = [16, 2], strides = [1, 1]} : vector<16x392xf32> to vector<16x2xf32>
    %140 = vector.extract_strided_slice %12 {offsets = [0, 254], sizes = [16, 2], strides = [1, 1]} : vector<16x392xf32> to vector<16x2xf32>
    %141 = vector.extract_strided_slice %12 {offsets = [0, 256], sizes = [16, 2], strides = [1, 1]} : vector<16x392xf32> to vector<16x2xf32>
    %142 = vector.extract_strided_slice %12 {offsets = [0, 258], sizes = [16, 2], strides = [1, 1]} : vector<16x392xf32> to vector<16x2xf32>
    %143 = vector.extract_strided_slice %12 {offsets = [0, 260], sizes = [16, 2], strides = [1, 1]} : vector<16x392xf32> to vector<16x2xf32>
    %144 = vector.extract_strided_slice %12 {offsets = [0, 262], sizes = [16, 2], strides = [1, 1]} : vector<16x392xf32> to vector<16x2xf32>
    %145 = vector.extract_strided_slice %12 {offsets = [0, 264], sizes = [16, 2], strides = [1, 1]} : vector<16x392xf32> to vector<16x2xf32>
    %146 = vector.extract_strided_slice %12 {offsets = [0, 266], sizes = [16, 2], strides = [1, 1]} : vector<16x392xf32> to vector<16x2xf32>
    %147 = vector.extract_strided_slice %12 {offsets = [0, 268], sizes = [16, 2], strides = [1, 1]} : vector<16x392xf32> to vector<16x2xf32>
    %148 = vector.extract_strided_slice %12 {offsets = [0, 270], sizes = [16, 2], strides = [1, 1]} : vector<16x392xf32> to vector<16x2xf32>
    %149 = vector.extract_strided_slice %12 {offsets = [0, 272], sizes = [16, 2], strides = [1, 1]} : vector<16x392xf32> to vector<16x2xf32>
    %150 = vector.extract_strided_slice %12 {offsets = [0, 274], sizes = [16, 2], strides = [1, 1]} : vector<16x392xf32> to vector<16x2xf32>
    %151 = vector.extract_strided_slice %12 {offsets = [0, 276], sizes = [16, 2], strides = [1, 1]} : vector<16x392xf32> to vector<16x2xf32>
    %152 = vector.extract_strided_slice %12 {offsets = [0, 278], sizes = [16, 2], strides = [1, 1]} : vector<16x392xf32> to vector<16x2xf32>
    %153 = vector.extract_strided_slice %12 {offsets = [0, 280], sizes = [16, 2], strides = [1, 1]} : vector<16x392xf32> to vector<16x2xf32>
    %154 = vector.extract_strided_slice %12 {offsets = [0, 282], sizes = [16, 2], strides = [1, 1]} : vector<16x392xf32> to vector<16x2xf32>
    %155 = vector.extract_strided_slice %12 {offsets = [0, 284], sizes = [16, 2], strides = [1, 1]} : vector<16x392xf32> to vector<16x2xf32>
    %156 = vector.extract_strided_slice %12 {offsets = [0, 286], sizes = [16, 2], strides = [1, 1]} : vector<16x392xf32> to vector<16x2xf32>
    %157 = vector.extract_strided_slice %12 {offsets = [0, 288], sizes = [16, 2], strides = [1, 1]} : vector<16x392xf32> to vector<16x2xf32>
    %158 = vector.extract_strided_slice %12 {offsets = [0, 290], sizes = [16, 2], strides = [1, 1]} : vector<16x392xf32> to vector<16x2xf32>
    %159 = vector.extract_strided_slice %12 {offsets = [0, 292], sizes = [16, 2], strides = [1, 1]} : vector<16x392xf32> to vector<16x2xf32>
    %160 = vector.extract_strided_slice %12 {offsets = [0, 294], sizes = [16, 2], strides = [1, 1]} : vector<16x392xf32> to vector<16x2xf32>
    %161 = vector.extract_strided_slice %12 {offsets = [0, 296], sizes = [16, 2], strides = [1, 1]} : vector<16x392xf32> to vector<16x2xf32>
    %162 = vector.extract_strided_slice %12 {offsets = [0, 298], sizes = [16, 2], strides = [1, 1]} : vector<16x392xf32> to vector<16x2xf32>
    %163 = vector.extract_strided_slice %12 {offsets = [0, 300], sizes = [16, 2], strides = [1, 1]} : vector<16x392xf32> to vector<16x2xf32>
    %164 = vector.extract_strided_slice %12 {offsets = [0, 302], sizes = [16, 2], strides = [1, 1]} : vector<16x392xf32> to vector<16x2xf32>
    %165 = vector.extract_strided_slice %12 {offsets = [0, 304], sizes = [16, 2], strides = [1, 1]} : vector<16x392xf32> to vector<16x2xf32>
    %166 = vector.extract_strided_slice %12 {offsets = [0, 306], sizes = [16, 2], strides = [1, 1]} : vector<16x392xf32> to vector<16x2xf32>
    %167 = vector.extract_strided_slice %12 {offsets = [0, 308], sizes = [16, 2], strides = [1, 1]} : vector<16x392xf32> to vector<16x2xf32>
    %168 = vector.extract_strided_slice %12 {offsets = [0, 310], sizes = [16, 2], strides = [1, 1]} : vector<16x392xf32> to vector<16x2xf32>
    %169 = vector.extract_strided_slice %12 {offsets = [0, 312], sizes = [16, 2], strides = [1, 1]} : vector<16x392xf32> to vector<16x2xf32>
    %170 = vector.extract_strided_slice %12 {offsets = [0, 314], sizes = [16, 2], strides = [1, 1]} : vector<16x392xf32> to vector<16x2xf32>
    %171 = vector.extract_strided_slice %12 {offsets = [0, 316], sizes = [16, 2], strides = [1, 1]} : vector<16x392xf32> to vector<16x2xf32>
    %172 = vector.extract_strided_slice %12 {offsets = [0, 318], sizes = [16, 2], strides = [1, 1]} : vector<16x392xf32> to vector<16x2xf32>
    %173 = vector.extract_strided_slice %12 {offsets = [0, 320], sizes = [16, 2], strides = [1, 1]} : vector<16x392xf32> to vector<16x2xf32>
    %174 = vector.extract_strided_slice %12 {offsets = [0, 322], sizes = [16, 2], strides = [1, 1]} : vector<16x392xf32> to vector<16x2xf32>
    %175 = vector.extract_strided_slice %12 {offsets = [0, 324], sizes = [16, 2], strides = [1, 1]} : vector<16x392xf32> to vector<16x2xf32>
    %176 = vector.extract_strided_slice %12 {offsets = [0, 326], sizes = [16, 2], strides = [1, 1]} : vector<16x392xf32> to vector<16x2xf32>
    %177 = vector.extract_strided_slice %12 {offsets = [0, 328], sizes = [16, 2], strides = [1, 1]} : vector<16x392xf32> to vector<16x2xf32>
    %178 = vector.extract_strided_slice %12 {offsets = [0, 330], sizes = [16, 2], strides = [1, 1]} : vector<16x392xf32> to vector<16x2xf32>
    %179 = vector.extract_strided_slice %12 {offsets = [0, 332], sizes = [16, 2], strides = [1, 1]} : vector<16x392xf32> to vector<16x2xf32>
    %180 = vector.extract_strided_slice %12 {offsets = [0, 334], sizes = [16, 2], strides = [1, 1]} : vector<16x392xf32> to vector<16x2xf32>
    %181 = vector.extract_strided_slice %12 {offsets = [0, 336], sizes = [16, 2], strides = [1, 1]} : vector<16x392xf32> to vector<16x2xf32>
    %182 = vector.extract_strided_slice %12 {offsets = [0, 338], sizes = [16, 2], strides = [1, 1]} : vector<16x392xf32> to vector<16x2xf32>
    %183 = vector.extract_strided_slice %12 {offsets = [0, 340], sizes = [16, 2], strides = [1, 1]} : vector<16x392xf32> to vector<16x2xf32>
    %184 = vector.extract_strided_slice %12 {offsets = [0, 342], sizes = [16, 2], strides = [1, 1]} : vector<16x392xf32> to vector<16x2xf32>
    %185 = vector.extract_strided_slice %12 {offsets = [0, 344], sizes = [16, 2], strides = [1, 1]} : vector<16x392xf32> to vector<16x2xf32>
    %186 = vector.extract_strided_slice %12 {offsets = [0, 346], sizes = [16, 2], strides = [1, 1]} : vector<16x392xf32> to vector<16x2xf32>
    %187 = vector.extract_strided_slice %12 {offsets = [0, 348], sizes = [16, 2], strides = [1, 1]} : vector<16x392xf32> to vector<16x2xf32>
    %188 = vector.extract_strided_slice %12 {offsets = [0, 350], sizes = [16, 2], strides = [1, 1]} : vector<16x392xf32> to vector<16x2xf32>
    %189 = vector.extract_strided_slice %12 {offsets = [0, 352], sizes = [16, 2], strides = [1, 1]} : vector<16x392xf32> to vector<16x2xf32>
    %190 = vector.extract_strided_slice %12 {offsets = [0, 354], sizes = [16, 2], strides = [1, 1]} : vector<16x392xf32> to vector<16x2xf32>
    %191 = vector.extract_strided_slice %12 {offsets = [0, 356], sizes = [16, 2], strides = [1, 1]} : vector<16x392xf32> to vector<16x2xf32>
    %192 = vector.extract_strided_slice %12 {offsets = [0, 358], sizes = [16, 2], strides = [1, 1]} : vector<16x392xf32> to vector<16x2xf32>
    %193 = vector.extract_strided_slice %12 {offsets = [0, 360], sizes = [16, 2], strides = [1, 1]} : vector<16x392xf32> to vector<16x2xf32>
    %194 = vector.extract_strided_slice %12 {offsets = [0, 362], sizes = [16, 2], strides = [1, 1]} : vector<16x392xf32> to vector<16x2xf32>
    %195 = vector.extract_strided_slice %12 {offsets = [0, 364], sizes = [16, 2], strides = [1, 1]} : vector<16x392xf32> to vector<16x2xf32>
    %196 = vector.extract_strided_slice %12 {offsets = [0, 366], sizes = [16, 2], strides = [1, 1]} : vector<16x392xf32> to vector<16x2xf32>
    %197 = vector.extract_strided_slice %12 {offsets = [0, 368], sizes = [16, 2], strides = [1, 1]} : vector<16x392xf32> to vector<16x2xf32>
    %198 = vector.extract_strided_slice %12 {offsets = [0, 370], sizes = [16, 2], strides = [1, 1]} : vector<16x392xf32> to vector<16x2xf32>
    %199 = vector.extract_strided_slice %12 {offsets = [0, 372], sizes = [16, 2], strides = [1, 1]} : vector<16x392xf32> to vector<16x2xf32>
    %200 = vector.extract_strided_slice %12 {offsets = [0, 374], sizes = [16, 2], strides = [1, 1]} : vector<16x392xf32> to vector<16x2xf32>
    %201 = vector.extract_strided_slice %12 {offsets = [0, 376], sizes = [16, 2], strides = [1, 1]} : vector<16x392xf32> to vector<16x2xf32>
    %202 = vector.extract_strided_slice %12 {offsets = [0, 378], sizes = [16, 2], strides = [1, 1]} : vector<16x392xf32> to vector<16x2xf32>
    %203 = vector.extract_strided_slice %12 {offsets = [0, 380], sizes = [16, 2], strides = [1, 1]} : vector<16x392xf32> to vector<16x2xf32>
    %204 = vector.extract_strided_slice %12 {offsets = [0, 382], sizes = [16, 2], strides = [1, 1]} : vector<16x392xf32> to vector<16x2xf32>
    %205 = vector.extract_strided_slice %12 {offsets = [0, 384], sizes = [16, 2], strides = [1, 1]} : vector<16x392xf32> to vector<16x2xf32>
    %206 = vector.extract_strided_slice %12 {offsets = [0, 386], sizes = [16, 2], strides = [1, 1]} : vector<16x392xf32> to vector<16x2xf32>
    %207 = vector.extract_strided_slice %12 {offsets = [0, 388], sizes = [16, 2], strides = [1, 1]} : vector<16x392xf32> to vector<16x2xf32>
    %208 = vector.extract_strided_slice %12 {offsets = [0, 390], sizes = [16, 2], strides = [1, 1]} : vector<16x392xf32> to vector<16x2xf32>
    %209 = tpu.concatenate %13, %14, %15, %16, %17, %18, %19, %20, %21, %22, %23, %24, %25, %26, %27, %28 in 0 : vector<16x2xf32>, vector<16x2xf32>, vector<16x2xf32>, vector<16x2xf32>, vector<16x2xf32>, vector<16x2xf32>, vector<16x2xf32>, vector<16x2xf32>, vector<16x2xf32>, vector<16x2xf32>, vector<16x2xf32>, vector<16x2xf32>, vector<16x2xf32>, vector<16x2xf32>, vector<16x2xf32>, vector<16x2xf32> -> vector<256x2xf32>
    %210 = tpu.concatenate %29, %30, %31, %32, %33, %34, %35, %36, %37, %38, %39, %40, %41, %42, %43, %44 in 0 : vector<16x2xf32>, vector<16x2xf32>, vector<16x2xf32>, vector<16x2xf32>, vector<16x2xf32>, vector<16x2xf32>, vector<16x2xf32>, vector<16x2xf32>, vector<16x2xf32>, vector<16x2xf32>, vector<16x2xf32>, vector<16x2xf32>, vector<16x2xf32>, vector<16x2xf32>, vector<16x2xf32>, vector<16x2xf32> -> vector<256x2xf32>
    %211 = tpu.concatenate %45, %46, %47, %48, %49, %50, %51, %52, %53, %54, %55, %56, %57, %58, %59, %60 in 0 : vector<16x2xf32>, vector<16x2xf32>, vector<16x2xf32>, vector<16x2xf32>, vector<16x2xf32>, vector<16x2xf32>, vector<16x2xf32>, vector<16x2xf32>, vector<16x2xf32>, vector<16x2xf32>, vector<16x2xf32>, vector<16x2xf32>, vector<16x2xf32>, vector<16x2xf32>, vector<16x2xf32>, vector<16x2xf32> -> vector<256x2xf32>
    %212 = tpu.concatenate %61, %62, %63, %64, %65, %66, %67, %68, %69, %70, %71, %72, %73, %74, %75, %76 in 0 : vector<16x2xf32>, vector<16x2xf32>, vector<16x2xf32>, vector<16x2xf32>, vector<16x2xf32>, vector<16x2xf32>, vector<16x2xf32>, vector<16x2xf32>, vector<16x2xf32>, vector<16x2xf32>, vector<16x2xf32>, vector<16x2xf32>, vector<16x2xf32>, vector<16x2xf32>, vector<16x2xf32>, vector<16x2xf32> -> vector<256x2xf32>
    %213 = tpu.concatenate %77, %78, %79, %80, %81, %82, %83, %84, %85, %86, %87, %88, %89, %90, %91, %92 in 0 : vector<16x2xf32>, vector<16x2xf32>, vector<16x2xf32>, vector<16x2xf32>, vector<16x2xf32>, vector<16x2xf32>, vector<16x2xf32>, vector<16x2xf32>, vector<16x2xf32>, vector<16x2xf32>, vector<16x2xf32>, vector<16x2xf32>, vector<16x2xf32>, vector<16x2xf32>, vector<16x2xf32>, vector<16x2xf32> -> vector<256x2xf32>
    %214 = tpu.concatenate %93, %94, %95, %96, %97, %98, %99, %100, %101, %102, %103, %104, %105, %106, %107, %108 in 0 : vector<16x2xf32>, vector<16x2xf32>, vector<16x2xf32>, vector<16x2xf32>, vector<16x2xf32>, vector<16x2xf32>, vector<16x2xf32>, vector<16x2xf32>, vector<16x2xf32>, vector<16x2xf32>, vector<16x2xf32>, vector<16x2xf32>, vector<16x2xf32>, vector<16x2xf32>, vector<16x2xf32>, vector<16x2xf32> -> vector<256x2xf32>
    %215 = tpu.concatenate %109, %110, %111, %112, %113, %114, %115, %116, %117, %118, %119, %120, %121, %122, %123, %124 in 0 : vector<16x2xf32>, vector<16x2xf32>, vector<16x2xf32>, vector<16x2xf32>, vector<16x2xf32>, vector<16x2xf32>, vector<16x2xf32>, vector<16x2xf32>, vector<16x2xf32>, vector<16x2xf32>, vector<16x2xf32>, vector<16x2xf32>, vector<16x2xf32>, vector<16x2xf32>, vector<16x2xf32>, vector<16x2xf32> -> vector<256x2xf32>
    %216 = tpu.concatenate %125, %126, %127, %128, %129, %130, %131, %132, %133, %134, %135, %136, %137, %138, %139, %140 in 0 : vector<16x2xf32>, vector<16x2xf32>, vector<16x2xf32>, vector<16x2xf32>, vector<16x2xf32>, vector<16x2xf32>, vector<16x2xf32>, vector<16x2xf32>, vector<16x2xf32>, vector<16x2xf32>, vector<16x2xf32>, vector<16x2xf32>, vector<16x2xf32>, vector<16x2xf32>, vector<16x2xf32>, vector<16x2xf32> -> vector<256x2xf32>
    %217 = tpu.concatenate %141, %142, %143, %144, %145, %146, %147, %148, %149, %150, %151, %152, %153, %154, %155, %156 in 0 : vector<16x2xf32>, vector<16x2xf32>, vector<16x2xf32>, vector<16x2xf32>, vector<16x2xf32>, vector<16x2xf32>, vector<16x2xf32>, vector<16x2xf32>, vector<16x2xf32>, vector<16x2xf32>, vector<16x2xf32>, vector<16x2xf32>, vector<16x2xf32>, vector<16x2xf32>, vector<16x2xf32>, vector<16x2xf32> -> vector<256x2xf32>
    %218 = tpu.concatenate %157, %158, %159, %160, %161, %162, %163, %164, %165, %166, %167, %168, %169, %170, %171, %172 in 0 : vector<16x2xf32>, vector<16x2xf32>, vector<16x2xf32>, vector<16x2xf32>, vector<16x2xf32>, vector<16x2xf32>, vector<16x2xf32>, vector<16x2xf32>, vector<16x2xf32>, vector<16x2xf32>, vector<16x2xf32>, vector<16x2xf32>, vector<16x2xf32>, vector<16x2xf32>, vector<16x2xf32>, vector<16x2xf32> -> vector<256x2xf32>
    %219 = tpu.concatenate %173, %174, %175, %176, %177, %178, %179, %180, %181, %182, %183, %184, %185, %186, %187, %188 in 0 : vector<16x2xf32>, vector<16x2xf32>, vector<16x2xf32>, vector<16x2xf32>, vector<16x2xf32>, vector<16x2xf32>, vector<16x2xf32>, vector<16x2xf32>, vector<16x2xf32>, vector<16x2xf32>, vector<16x2xf32>, vector<16x2xf32>, vector<16x2xf32>, vector<16x2xf32>, vector<16x2xf32>, vector<16x2xf32> -> vector<256x2xf32>
    %220 = tpu.concatenate %189, %190, %191, %192, %193, %194, %195, %196, %197, %198, %199, %200, %201, %202, %203, %204 in 0 : vector<16x2xf32>, vector<16x2xf32>, vector<16x2xf32>, vector<16x2xf32>, vector<16x2xf32>, vector<16x2xf32>, vector<16x2xf32>, vector<16x2xf32>, vector<16x2xf32>, vector<16x2xf32>, vector<16x2xf32>, vector<16x2xf32>, vector<16x2xf32>, vector<16x2xf32>, vector<16x2xf32>, vector<16x2xf32> -> vector<256x2xf32>
    %221 = tpu.concatenate %205, %206, %207, %208 in 0 : vector<16x2xf32>, vector<16x2xf32>, vector<16x2xf32>, vector<16x2xf32> -> vector<64x2xf32>
    %222 = tpu.concatenate %209, %210, %211, %212, %213, %214, %215, %216, %217, %218, %219, %220, %221 in 0 : vector<256x2xf32>, vector<256x2xf32>, vector<256x2xf32>, vector<256x2xf32>, vector<256x2xf32>, vector<256x2xf32>, vector<256x2xf32>, vector<256x2xf32>, vector<256x2xf32>, vector<256x2xf32>, vector<256x2xf32>, vector<256x2xf32>, vector<64x2xf32> -> vector<3136x2xf32>
    %c0_5 = arith.constant 0 : index
    %c0_6 = arith.constant 0 : index
    %223 = vector.load %arg4[%c0_5, %c0_6] : memref<10x1xf32, #tpu.memory_space<vmem>>, vector<10x1xf32>
    %c0_7 = arith.constant 0 : index
    %c0_8 = arith.constant 0 : index
    %224 = vector.load %arg3[%c0_7, %c0_8] : memref<10x3136xf32, #tpu.memory_space<vmem>>, vector<10x3136xf32>
    %cst_9 = arith.constant dense<0.000000e+00> : vector<10x2xf32>
    %225 = tpu.matmul %224, %222, %cst_9 {dimension_numbers = #tpu.dot_dimension_numbers<[1], [0], [0], [1], [0, 0, 1, 1], [], []>} : vector<10x3136xf32>, vector<3136x2xf32>, vector<10x2xf32> -> vector<10x2xf32>
    %226 = vector.broadcast %223 : vector<10x1xf32> to vector<10x2xf32>
    %227 = arith.addf %226, %225 : vector<10x2xf32>
    %c0_10 = arith.constant 0 : index
    %c0_11 = arith.constant 0 : index
    %c0_12 = arith.constant 0 : index
    %228 = vector.load %arg5[%c0_10, %c0_11, %c0_12] : memref<1x10x2xf32, #tpu.memory_space<vmem>>, vector<1x10x2xf32>
    %229 = vector.shape_cast %228 : vector<1x10x2xf32> to vector<10x2xf32>
    %230 = vector.shape_cast %227 : vector<10x2xf32> to vector<1x10x2xf32>
    tpu.vector_store %arg5[%c0_10, %c0_11, %c0_12], %230 {strides = array<i32>} : memref<1x10x2xf32, #tpu.memory_space<vmem>>, vector<1x10x2xf32>,
    return
  }
  func.func @transform_0(%arg0: i32) -> (i32, i32, i32) {
    %c0_i32 = arith.constant 0 : i32
    %c0_i32_0 = arith.constant 0 : i32
    %c0_i32_1 = arith.constant 0 : i32
    return %arg0, %c0_i32, %c0_i32_0 : i32, i32, i32
  }
  func.func @transform_1(%arg0: i32) -> (i32, i32) {
    %c0_i32 = arith.constant 0 : i32
    %c0_i32_0 = arith.constant 0 : i32
    %c0_i32_1 = arith.constant 0 : i32
    return %c0_i32, %c0_i32_0 : i32, i32
  }
  func.func @transform_2(%arg0: i32) -> (i32, i32) {
    %c0_i32 = arith.constant 0 : i32
    %c0_i32_0 = arith.constant 0 : i32
    %c0_i32_1 = arith.constant 0 : i32
    return %c0_i32, %c0_i32_0 : i32, i32
  }
  func.func @transform_3(%arg0: i32) -> (i32, i32) {
    %c0_i32 = arith.constant 0 : i32
    %c0_i32_0 = arith.constant 0 : i32
    %c0_i32_1 = arith.constant 0 : i32
    return %c0_i32, %c0_i32_0 : i32, i32
  }
  func.func @transform_4(%arg0: i32) -> (i32, i32, i32) {
    %c0_i32 = arith.constant 0 : i32
    %c0_i32_0 = arith.constant 0 : i32
    %c0_i32_1 = arith.constant 0 : i32
    return %arg0, %c0_i32, %c0_i32_0 : i32, i32, i32
  }
}

</mosaic_0001>

<bundles_post_ra>
// kernel: simple_cnn_forward.1
= control target key start
LH: loop header
LB: loop body
LE: loop exit
PB: predicated region body
PF: predicated region fallthrough
CT: control target
= control target key end

     0   :  { %v4590_v1 = vmov 0   ;;  %s4592_s8 = smov 126   ;;  %s4593_s9 = smov 120   ;;  %vm1632_vm0 = vcmask 523264   ;;  %vm2626_vm1 = vcmask 15360   ;;  %vm2628_vm2 = vcmask 9216   ;;  %s5854_s0 = inlined_call_operand.vmem [shape: bf16[1,128,392], index: 0, kind: input, shape index: {}]   ;;  %s5855_s1 = inlined_call_operand.vmem [shape: bf16[64,128], index: 1, kind: input, shape index: {}]   ;;  %s5856_s2 = inlined_call_operand.vmem [shape: f32[10,3136], index: 2, kind: input, shape index: {}]   ;;  %s5857_s3 = inlined_call_operand.vmem [shape: f32[10,1], index: 3, kind: input, shape index: {}]   ;;  %s5858_s4 = inlined_call_operand.vmem [shape: f32[1,10,2], index: 4, kind: output, shape index: {}]  }
   0x1   :  { %v4538_v0 = vld [vmem:[%s5854_s0 + $0x4] ss:$16 sps:$4 sm:$0xff]   ;;  %274 = vmatprep.mubr.bf16.mxu0 %v4590_v1  ;;  %347 = vmatprep.mubr.bf16.mxu1 %v4590_v1  ;;  %v4540_v2 = vld [vmem:[%s5854_s0] ss:$16 sps:$4 sm:$0xff]   ;;  %v4553_v7 = vld [vmem:[%s5854_s0 + $0xc] ss:$16 sps:$4 sm:$0xff]  }
   0x2   :  { %4536 = vset.pattern.permute.xlu0 %v4590_v1  ;;  %4537 = vset.pattern.permute.xlu1 %v4590_v1  ;;  %v4541_v3 = vld [vmem:[%s5854_s0 + $0x24] ss:$16 sps:$4 sm:$0xff]   ;;  %v4543_v4 = vld [vmem:[%s5854_s0 + $0x20] ss:$16 sps:$4 sm:$0xff]   ;;  %v4555_v8 = vld [vmem:[%s5854_s0 + $0x8] ss:$16 sps:$4 sm:$0xff]  }
   0x3   :  { %242 = vmatprep.subr.bf16.mxu0 %v4538_v0  ;;  %v4544_v5 = vld [vmem:[%s5854_s0 + $0x44] ss:$16 sps:$4 sm:$0xff]   ;;  %v4546_v6 = vld [vmem:[%s5854_s0 + $0x40] ss:$16 sps:$4 sm:$0xff]   ;;  %315 = vmatprep.subr.bf16.mxu1 %v4553_v7  ;;  %v4559_v10 = vld [vmem:[%s5854_s0 + $0x2c] ss:$16 sps:$4 sm:$0xff]  }
   0x4   :  { %243 = vmatpush1.bf16.msra.mxu0 %v4540_v2  ;;  %v4547_v9 = vld [vmem:[%s5854_s0 + $0x64] ss:$16 sps:$4 sm:$0xff]   ;;  %316 = vmatpush1.bf16.msra.mxu1 %v4555_v8  ;;  %v4561_v11 = vld [vmem:[%s5854_s0 + $0x28] ss:$16 sps:$4 sm:$0xff]   ;;  %v4549_v12 = vld [vmem:[%s5854_s0 + $0x60] ss:$16 sps:$4 sm:$0xff]  }
   0x5   :  { %244 = vmatprep.subr.bf16.mxu0 %v4541_v3  ;;  %v4550_v13 = vld [vmem:[%s5854_s0 + $0x84] ss:$16 sps:$4 sm:$0xff]   ;;  %317 = vmatprep.subr.bf16.mxu1 %v4559_v10  ;;  %v4565_v14 = vld [vmem:[%s5854_s0 + $0x4c] ss:$16 sps:$4 sm:$0xff]   ;;  %v4567_v15 = vld [vmem:[%s5854_s0 + $0x48] ss:$16 sps:$4 sm:$0xff]  }
   0x6   :  { %v4552_v16 = vld [vmem:[%s5854_s0 + $0x80] ss:$16 sps:$4 sm:$0xff]   ;;  %v4571_v17 = vld [vmem:[%s5854_s0 + $0x6c] ss:$16 sps:$4 sm:$0xff]   ;;  %v4556_v18 = vld [vmem:[%s5854_s0 + $0xa4] ss:$16 sps:$4 sm:$0xff]  }
   0x7   :  { %v4573_v19 = vld [vmem:[%s5854_s0 + $0x68] ss:$16 sps:$4 sm:$0xff]   ;;  %v4558_v20 = vld [vmem:[%s5854_s0 + $0xa0] ss:$16 sps:$4 sm:$0xff]   ;;  %v4575_v21 = vld [vmem:[%s5854_s0 + $0x8c] ss:$16 sps:$4 sm:$0xff]  }
   0x8   :  { %245 = vmatpush1.bf16.msra.mxu0 %v4543_v4  ;;  %318 = vmatpush1.bf16.msra.mxu1 %v4561_v11  ;;  %v4562_v22 = vld [vmem:[%s5854_s0 + $0xc4] ss:$16 sps:$4 sm:$0xff]   ;;  %v4564_v23 = vld [vmem:[%s5854_s0 + $0xc0] ss:$16 sps:$4 sm:$0xff]   ;;  %v4577_v24 = vld [vmem:[%s5854_s0 + $0x88] ss:$16 sps:$4 sm:$0xff]  }
   0x9   :  { %246 = vmatprep.subr.bf16.mxu0 %v4544_v5  ;;  %319 = vmatprep.subr.bf16.mxu1 %v4565_v14  ;;  %v4578_v25 = vld [vmem:[%s5854_s0 + $0xac] ss:$16 sps:$4 sm:$0xff]   ;;  %v4568_v26 = vld [vmem:[%s5854_s0 + $0xe4] ss:$16 sps:$4 sm:$0xff]   ;;  %v4580_v27 = vld [vmem:[%s5854_s0 + $0xa8] ss:$16 sps:$4 sm:$0xff]  }
   0xa   :  { %v4570_v28 = vld [vmem:[%s5854_s0 + $0xe0] ss:$16 sps:$4 sm:$0xff]   ;;  %v4582_v29 = vld [vmem:[%s5854_s0 + $0xcc] ss:$16 sps:$4 sm:$0xff]   ;;  %v4584_v31 = vld [vmem:[%s5854_s0 + $0xc8] ss:$16 sps:$4 sm:$0xff]  }
   0xb   :  { %v4574_v30 = vld [vmem:[%s5855_s1] sm:$0xff]   ;;  %v4585_v32 = vld [vmem:[%s5854_s0 + $0xec] ss:$16 sps:$4 sm:$0xff]   ;;  %v4587_v33 = vld [vmem:[%s5854_s0 + $0xe8] ss:$16 sps:$4 sm:$0xff]   ;;  %s4594_s10 = smov 124  }
   0xc   :  { %247 = vmatpush1.bf16.msra.mxu0 %v4546_v6  ;;  %320 = vmatpush1.bf16.msra.mxu1 %v4567_v15  ;;  %v4581_v34 = vld [vmem:[%s5855_s1 + $0x8] sm:$0xff]   ;;  %v4588_v35 = vld [vmem:[%s5855_s1 + $0x10] sm:$0xff]   ;;  %v4589_v36 = vld [vmem:[%s5855_s1 + $0x18] sm:$0xff]   ;;  %s4591_s1 = smov 122   ;;  %s4595_s11 = smov 116  }
   0xd   :  { %248 = vmatprep.subr.bf16.mxu0 %v4547_v9  ;;  %321 = vmatprep.subr.bf16.mxu1 %v4571_v17  ;;  %s4596_s12 = smov 118   ;;  %s4597_s13 = smov 112  }
   0xe   :  { %s4598_s14 = smov 114   ;;  %s4599_s15 = smov 108  }
   0xf   :  { %s4600_s16 = smov 110   ;;  %s4601_s17 = smov 104  }
  0x10   :  { %249 = vmatpush1.bf16.msra.mxu0 %v4549_v12  ;;  %322 = vmatpush1.bf16.msra.mxu1 %v4573_v19  ;;  %s4602_s18 = smov 106   ;;  %s4603_s19 = smov 100  }
  0x11   :  { %250 = vmatprep.subr.bf16.mxu0 %v4550_v13  ;;  %323 = vmatprep.subr.bf16.mxu1 %v4575_v21  ;;  %s4604_s20 = smov 102   ;;  %s4605_s21 = smov 98  }
  0x12   :  { %s4606_s22 = smov 96   ;;  %s4607_s23 = smov 64  }
  0x13   :  { %s4608_s24 = smov 32  }
  0x14   :  { %251 = vmatpush1.bf16.msra.mxu0 %v4552_v16  ;;  %324 = vmatpush1.bf16.msra.mxu1 %v4577_v24 }
  0x15   :  { %252 = vmatprep.subr.bf16.mxu0 %v4556_v18  ;;  %325 = vmatprep.subr.bf16.mxu1 %v4578_v25 }
  0x18   :  { %253 = vmatpush1.bf16.msra.mxu0 %v4558_v20  ;;  %326 = vmatpush1.bf16.msra.mxu1 %v4580_v27 }
  0x19   :  { %254 = vmatprep.subr.bf16.mxu0 %v4562_v22  ;;  %327 = vmatprep.subr.bf16.mxu1 %v4582_v29 }
  0x1c   :  { %255 = vmatpush1.bf16.msra.mxu0 %v4564_v23  ;;  %328 = vmatpush1.bf16.msra.mxu1 %v4584_v31 }
  0x1d   :  { %256 = vmatprep.subr.bf16.mxu0 %v4568_v26  ;;  %329 = vmatprep.subr.bf16.mxu1 %v4585_v32 }
  0x20   :  { %257 = vmatpush1.bf16.msra.mxu0 %v4570_v28  ;;  %330 = vmatpush1.bf16.msra.mxu1 %v4587_v33 }
  0x23   :  { %275 = vmatmul.mubr.bf16.vlgmr.msra.gmra.mrb[0].mxu0 %v4574_v30  ;;  %348 = vmatmul.mubr.bf16.vlgmr.msra.gmra.mrb[0].mxu1 %v4574_v30 }
  0x24   :  { %284 = vmatprep.mubr.bf16.mxu0 %v4590_v1  ;;  %357 = vmatprep.mubr.bf16.mxu1 %v4590_v1 }
  0x2b   :  { %285 = vmatmul.mubr.bf16.gmra.mrb[4].mxu0 %v4581_v34  ;;  %358 = vmatmul.mubr.bf16.gmra.mrb[4].mxu1 %v4581_v34 }
  0x2c   :  { %294 = vmatprep.mubr.bf16.mxu0 %v4590_v1  ;;  %367 = vmatprep.mubr.bf16.mxu1 %v4590_v1 }
  0x33   :  { %295 = vmatmul.mubr.bf16.gmra.mrb[8].mxu0 %v4588_v35  ;;  %368 = vmatmul.mubr.bf16.gmra.mrb[8].mxu1 %v4588_v35 }
  0x34   :  { %304 = vmatprep.mubr.bf16.mxu0 %v4590_v1  ;;  %377 = vmatprep.mubr.bf16.mxu1 %v4590_v1 }
  0x3b   :  { %305 = vmatmul.mubr.bf16.gmra.mrb[12].mxu0 %v4589_v36  ;;  %378 = vmatmul.mubr.bf16.gmra.mrb[12].mxu1 %v4589_v36 }
  0xf6   :  { %v276_v37 = vpop.f32.mrb[0].mxu0  ;;  %v349_v41 = vpop.f32.mrb[0].mxu1 }
  0xf7   :  { %v278_v38 = vpop.f32.mrb[1].mxu0  ;;  %v351_v43 = vpop.f32.mrb[1].mxu1 }
  0xf8   :  { %v280_v39 = vpop.f32.mrb[2].mxu0  ;;  %v353_v46 = vpop.f32.mrb[2].mxu1 }
  0xf9   :  { %v282_v40 = vpop.f32.mrb[3].mxu0  ;;  %v355_v49 = vpop.f32.mrb[3].mxu1 }
  0xfe   :  { %v286_v42 = vpop.f32.mrb[4].mxu0  ;;  %v359_v53 = vpop.f32.mrb[4].mxu1 }
  0xff   :  { %v388_v44 = vmax.f32 %v276_v37, %v286_v42  ;;  %v288_v45 = vpop.f32.mrb[5].mxu0  ;;  %v390_v55 = vmax.f32 %v349_v41, %v359_v53  ;;  %v361_v56 = vpop.f32.mrb[5].mxu1 }
 0x100   :  { %v389_v47 = vmax.f32 %v278_v38, %v288_v45  ;;  %v290_v48 = vpop.f32.mrb[6].mxu0  ;;  %v391_v58 = vmax.f32 %v351_v43, %v361_v56  ;;  %v363_v59 = vpop.f32.mrb[6].mxu1 }
 0x101   :  { %v392_v50 = vmax.f32 %v280_v39, %v290_v48  ;;  %v292_v51 = vpop.f32.mrb[7].mxu0  ;;  %v394_v61 = vmax.f32 %v353_v46, %v363_v59  ;;  %v365_v62 = vpop.f32.mrb[7].mxu1 }
 0x102   :  { %v393_v52 = vmax.f32 %v282_v40, %v292_v51  ;;  %v395_v0 = vmax.f32 %v355_v49, %v365_v62 }
 0x106   :  { %v296_v54 = vpop.f32.mrb[8].mxu0  ;;  %v369_v1 = vpop.f32.mrb[8].mxu1 }
 0x107   :  { %v298_v57 = vpop.f32.mrb[9].mxu0  ;;  %v371_v3 = vpop.f32.mrb[9].mxu1 }
 0x108   :  { %v300_v60 = vpop.f32.mrb[10].mxu0  ;;  %v373_v6 = vpop.f32.mrb[10].mxu1 }
 0x109   :  { %v302_v63 = vpop.f32.mrb[11].mxu0  ;;  %v375_v9 = vpop.f32.mrb[11].mxu1 }
 0x10e   :  { %v306_v2 = vpop.f32.mrb[12].mxu0  ;;  %v379_v19 = vpop.f32.mrb[12].mxu1 }
 0x10f   :  { %v396_v4 = vmax.f32 %v296_v54, %v306_v2  ;;  %v308_v5 = vpop.f32.mrb[13].mxu0  ;;  %v398_v20 = vmax.f32 %v369_v1, %v379_v19  ;;  %v381_v21 = vpop.f32.mrb[13].mxu1 }
 0x110   :  { %v397_v7 = vmax.f32 %v298_v57, %v308_v5  ;;  %v310_v8 = vpop.f32.mrb[14].mxu0  ;;  %v383_v23 = vpop.f32.mrb[14].mxu1  ;;  %v399_v25 = vmax.f32 %v371_v3, %v381_v21 }
 0x111   :  { %v404_v10 = vmax.f32 %v388_v44, %v396_v4  ;;  %v400_v11 = vmax.f32 %v300_v60, %v310_v8  ;;  %v312_v12 = vpop.f32.mrb[15].mxu0  ;;  %v406_v24 = vmax.f32 %v390_v55, %v398_v20  ;;  %v402_v26 = vmax.f32 %v373_v6, %v383_v23  ;;  %v385_v27 = vpop.f32.mrb[15].mxu1 }
 0x112   :  { %v405_v13 = vmax.f32 %v389_v47, %v397_v7  ;;  %v401_v14 = vmax.f32 %v302_v63, %v312_v12  ;;  %v403_v29 = vmax.f32 %v375_v9, %v385_v27  ;;  %v407_v31 = vmax.f32 %v391_v58, %v399_v25 }
 0x113   :  { %v408_v15 = vmax.f32 %v392_v50, %v400_v11  ;;  %v412_v17 = vmax.f32 %v404_v10, 0.0  ;;  %v414_v30 = vmax.f32 %v406_v24, 0.0  ;;  %v410_v32 = vmax.f32 %v394_v61, %v402_v26 }
 0x114   :  { %v409_v16 = vmax.f32 %v393_v52, %v401_v14  ;;  %v413_v28 = vmax.f32 %v405_v13, 0.0  ;;  %v411_v33 = vmax.f32 %v395_v0, %v403_v29  ;;  %v415_v36 = vmax.f32 %v407_v31, 0.0 }
 0x115   :  { %v416_v18 = vmax.f32 %v408_v15, 0.0  ;;  %v418_v35 = vmax.f32 %v410_v32, 0.0 }
 0x116   :  { %v417_v34 = vmax.f32 %v409_v16, 0.0  ;;  %v419_v38 = vmax.f32 %v411_v33, 0.0 }
 0x117   :  { %v4752_v22 = vpack.i.bf16 %v416_v18, %v412_v17  ;;  %v4762_v37 = vpack.i.bf16 %v418_v35, %v414_v30  ;;  %v4774_v41 = vpack.c.bf16 %v416_v18, %v412_v17  ;;  %v4782_v43 = vpack.c.bf16 %v418_v35, %v414_v30 }
 0x118   :  { %v4768_v39 = vpack.i.bf16 %v417_v34, %v413_v28  ;;  %v3826_v40 = vpack.i.bf16 %v419_v38, %v415_v36  ;;  %v4776_v42 = vpack.c.bf16 %v417_v34, %v413_v28  ;;  %v4784_v44 = vpack.c.bf16 %v419_v38, %v415_v36 }
 0x119   :  { %3587 = vrot.lane.b32.xlu1 %v4752_v22, %s4591_s1  ;;  %3577 = vrot.lane.b32.xlu0 %v4752_v22, %s4592_s8  ;;  %5888 = vst [vmem:[#allocation2_spill] sm:$0xff] %v4782_v43 }
 0x11a   :  { %5889 = vst [vmem:[#allocation3_spill] sm:$0xff] %v4784_v44 }
 0x11d   :  { %3592 = vrot.lane.b32.xlu1 %v4752_v22, %s4593_s9  ;;  %3582 = vrot.lane.b32.xlu0 %v4752_v22, %s4594_s10 }
 0x121   :  { %3602 = vrot.lane.b32.xlu1 %v4752_v22, %s4595_s11  ;;  %3597 = vrot.lane.b32.xlu0 %v4752_v22, %s4596_s12 }
 0x125   :  { %3612 = vrot.lane.b32.xlu1 %v4752_v22, %s4597_s13  ;;  %3607 = vrot.lane.b32.xlu0 %v4752_v22, %s4598_s14 }
 0x129   :  { %3622 = vrot.lane.b32.xlu1 %v4752_v22, %s4599_s15  ;;  %3617 = vrot.lane.b32.xlu0 %v4752_v22, %s4600_s16 }
 0x12d   :  { %3632 = vrot.lane.b32.xlu1 %v4752_v22, %s4601_s17  ;;  %3627 = vrot.lane.b32.xlu0 %v4752_v22, %s4602_s18 }
 0x131   :  { %3642 = vrot.lane.b32.xlu1 %v4752_v22, %s4603_s19  ;;  %3637 = vrot.lane.b32.xlu0 %v4752_v22, %s4604_s20 }
 0x135   :  { %3657 = vrot.lane.b32.xlu1 %v4762_v37, %s4594_s10  ;;  %3647 = vrot.lane.b32.xlu0 %v4752_v22, %s4605_s21 }
 0x139   :  { %3667 = vrot.lane.b32.xlu1 %v4762_v37, %s4593_s9  ;;  %3652 = vrot.lane.b32.xlu0 %v4762_v37, %s4592_s8 }
 0x13d   :  { %3677 = vrot.lane.b32.xlu1 %v4762_v37, %s4595_s11  ;;  %3662 = vrot.lane.b32.xlu0 %v4762_v37, %s4591_s1 }
 0x141   :  { %3687 = vrot.lane.b32.xlu1 %v4762_v37, %s4597_s13  ;;  %3672 = vrot.lane.b32.xlu0 %v4762_v37, %s4596_s12 }
 0x145   :  { %3697 = vrot.lane.b32.xlu1 %v4762_v37, %s4599_s15  ;;  %3682 = vrot.lane.b32.xlu0 %v4762_v37, %s4598_s14 }
 0x149   :  { %3707 = vrot.lane.b32.xlu1 %v4762_v37, %s4601_s17  ;;  %3692 = vrot.lane.b32.xlu0 %v4762_v37, %s4600_s16 }
 0x14d   :  { %3717 = vrot.lane.b32.xlu1 %v4762_v37, %s4603_s19  ;;  %3702 = vrot.lane.b32.xlu0 %v4762_v37, %s4602_s18 }
 0x151   :  { %3742 = vrot.lane.b32.xlu1 %v4762_v37, %s4606_s22  ;;  %3712 = vrot.lane.b32.xlu0 %v4762_v37, %s4604_s20 }
 0x155   :  { %3747 = vrot.lane.b32.xlu1 %v4762_v37, %s4607_s23  ;;  %3722 = vrot.lane.b32.xlu0 %v4762_v37, %s4605_s21 }
 0x159   :  { %3727 = vrot.lane.b32.xlu0 %v4752_v22, %s4606_s22  ;;  %3752 = vrot.lane.b32.xlu1 %v4768_v39, %s4592_s8 }
 0x15d   :  { %3732 = vrot.lane.b32.xlu0 %v4752_v22, %s4607_s23  ;;  %3762 = vrot.lane.b32.xlu1 %v4768_v39, %s4591_s1 }
 0x161   :  { %3737 = vrot.lane.b32.xlu0 %v4752_v22, %s4608_s24  ;;  %3772 = vrot.lane.b32.xlu1 %v4768_v39, %s4596_s12 }
 0x165   :  { %3757 = vrot.lane.b32.xlu0 %v4768_v39, %s4594_s10  ;;  %3782 = vrot.lane.b32.xlu1 %v4768_v39, %s4598_s14 }
 0x169   :  { %3767 = vrot.lane.b32.xlu0 %v4768_v39, %s4593_s9  ;;  %3792 = vrot.lane.b32.xlu1 %v4768_v39, %s4600_s16 }
 0x16d   :  { %3777 = vrot.lane.b32.xlu0 %v4768_v39, %s4595_s11  ;;  %3802 = vrot.lane.b32.xlu1 %v4768_v39, %s4602_s18 }
 0x171   :  { %3787 = vrot.lane.b32.xlu0 %v4768_v39, %s4597_s13  ;;  %3812 = vrot.lane.b32.xlu1 %v4768_v39, %s4604_s20 }
 0x175   :  { %3797 = vrot.lane.b32.xlu0 %v4768_v39, %s4599_s15  ;;  %3822 = vrot.lane.b32.xlu1 %v4768_v39, %s4605_s21 }
 0x179   :  { %3807 = vrot.lane.b32.xlu0 %v4768_v39, %s4601_s17  ;;  %3827 = vrot.lane.b32.xlu1 %v3826_v40, %s4592_s8 }
 0x17d   :  { %3817 = vrot.lane.b32.xlu0 %v4768_v39, %s4603_s19  ;;  %3837 = vrot.lane.b32.xlu1 %v3826_v40, %s4591_s1 }
 0x181   :  { %3832 = vrot.lane.b32.xlu0 %v3826_v40, %s4594_s10  ;;  %3842 = vrot.lane.b32.xlu1 %v4768_v39, %s4606_s22 }
 0x185   :  { %3847 = vrot.lane.b32.xlu1 %v4768_v39, %s4607_s23 }
 0x189   :  { %3852 = vrot.lane.b32.xlu1 %v4768_v39, %s4608_s24 }
 0x18b   :  { %v4875_v45 = vpop.permute.xlu1 %3587  ;;  %v4877_v46 = vpop.permute.xlu0 %3577 }
 0x18c   :  { %v3590_v47 = vunpack.i.h.bf16 %v4875_v45  ;;  %v3589_v48 = vunpack.i.l.bf16 %v4875_v45  ;;  %v3580_v49 = vunpack.i.h.bf16 %v4877_v46  ;;  %v3579_v50 = vunpack.i.l.bf16 %v4877_v46 }
 0x18d   :  { %3857 = vrot.lane.b32.xlu1 %v4877_v46, %s4606_s22 }
 0x18e   :  { %v3163_v15 = vpack.c.bf16 %v3580_v49, %v3579_v50  ;;  %v3171_v31 = vpack.c.bf16 %v3590_v47, %v3589_v48 }
 0x18f   :  { %v4883_v51 = vpop.permute.xlu1 %3592  ;;  %v4885_v52 = vpop.permute.xlu0 %3582 }
 0x190   :  { %v3595_v53 = vunpack.i.h.bf16 %v4883_v51  ;;  %v3594_v54 = vunpack.i.l.bf16 %v4883_v51  ;;  %v3585_v55 = vunpack.i.h.bf16 %v4885_v52  ;;  %v3584_v56 = vunpack.i.l.bf16 %v4885_v52  ;;  %3862 = vrot.lane.b32.xlu0 %v4885_v52, %s4606_s22 }
 0x191   :  { %3867 = vrot.lane.b32.xlu1 %v4875_v45, %s4606_s22 }
 0x192   :  { %v3167_v23 = vpack.c.bf16 %v3585_v55, %v3584_v56  ;;  %v3175_v38 = vpack.c.bf16 %v3595_v53, %v3594_v54 }
 0x193   :  { %v4893_v57 = vpop.permute.xlu1 %3602  ;;  %v4895_v58 = vpop.permute.xlu0 %3597 }
 0x194   :  { %v3605_v59 = vunpack.i.h.bf16 %v4893_v57  ;;  %v3604_v60 = vunpack.i.l.bf16 %v4893_v57  ;;  %v3600_v61 = vunpack.i.h.bf16 %v4895_v58  ;;  %v3599_v62 = vunpack.i.l.bf16 %v4895_v58  ;;  %3872 = vrot.lane.b32.xlu0 %v4883_v51, %s4606_s22 }
 0x195   :  { %3877 = vrot.lane.b32.xlu1 %v4895_v58, %s4606_s22 }
 0x196   :  { %v3179_v53 = vpack.c.bf16 %v3600_v61, %v3599_v62  ;;  %v3183_v61 = vpack.c.bf16 %v3605_v59, %v3604_v60  ;;  %v1583_v59 = vld [vmem:[%s5856_s2 + $0x8] sm:$0xff] }
 0x197   :  { %v4905_v63 = vpop.permute.xlu1 %3612  ;;  %v4907_v0 = vpop.permute.xlu0 %3607  ;;  %1703 = vmatprep.mubr.f32.mxu0 %v1583_v59 }
 0x198   :  { %v3615_v1 = vunpack.i.h.bf16 %v4905_v63  ;;  %v3614_v2 = vunpack.i.l.bf16 %v4905_v63  ;;  %v3610_v3 = vunpack.i.h.bf16 %v4907_v0  ;;  %v3609_v4 = vunpack.i.l.bf16 %v4907_v0  ;;  %3882 = vrot.lane.b32.xlu0 %v4893_v57, %s4606_s22 }
 0x199   :  { %3887 = vrot.lane.b32.xlu1 %v4907_v0, %s4606_s22 }
 0x19a   :  { %v3157_v5 = vpack.c.bf16 %v3615_v1, %v3614_v2  ;;  %v3187_v60 = vpack.c.bf16 %v3610_v3, %v3609_v4  ;;  %v1582_v3 = vld [vmem:[%s5856_s2] sm:$0xff] }
 0x19b   :  { %v4917_v6 = vpop.permute.xlu1 %3622  ;;  %v4919_v7 = vpop.permute.xlu0 %3617 }
 0x19c   :  { %v3625_v8 = vunpack.i.h.bf16 %v4917_v6  ;;  %v3624_v9 = vunpack.i.l.bf16 %v4917_v6  ;;  %v3620_v10 = vunpack.i.h.bf16 %v4919_v7  ;;  %v3619_v11 = vunpack.i.l.bf16 %v4919_v7  ;;  %3158 = vmatprep.subr.bf16.mxu0 %v3157_v5  ;;  %3892 = vrot.lane.b32.xlu0 %v4905_v63, %s4606_s22 }
 0x19d   :  { %3160 = vmatpush3.bf16.msra.mxu0 %v4774_v41  ;;  %3897 = vrot.lane.b32.xlu1 %v4919_v7, %s4606_s22 }
 0x19e   :  { %v3161_v12 = vpack.c.bf16 %v3620_v10, %v3619_v11  ;;  %v3165_v18 = vpack.c.bf16 %v3625_v8, %v3624_v9 }
 0x19f   :  { %v4930_v13 = vpop.permute.xlu1 %3632  ;;  %v4932_v14 = vpop.permute.xlu0 %3627 }
 0x1a0   :  { %v3630_v16 = vunpack.i.h.bf16 %v4932_v14  ;;  %v3629_v17 = vunpack.i.l.bf16 %v4932_v14  ;;  %3162 = vmatprep.subr.bf16.mxu0 %v3161_v12  ;;  %v3635_v19 = vunpack.i.h.bf16 %v4930_v13  ;;  %v3634_v20 = vunpack.i.l.bf16 %v4930_v13  ;;  %3902 = vrot.lane.b32.xlu0 %v4917_v6, %s4606_s22 }
 0x1a1   :  { %3164 = vmatpush3.bf16.msra.mxu0 %v3163_v15  ;;  %3907 = vrot.lane.b32.xlu1 %v4932_v14, %s4606_s22 }
 0x1a2   :  { %3166 = vmatprep.subr.bf16.mxu0 %v3165_v18  ;;  %v3169_v26 = vpack.c.bf16 %v3630_v16, %v3629_v17  ;;  %v3173_v32 = vpack.c.bf16 %v3635_v19, %v3634_v20 }
 0x1a3   :  { %v4942_v21 = vpop.permute.xlu1 %3642  ;;  %v4944_v22 = vpop.permute.xlu0 %3637 }
 0x1a4   :  { %v3640_v24 = vunpack.i.h.bf16 %v4944_v22  ;;  %v3639_v25 = vunpack.i.l.bf16 %v4944_v22  ;;  %v3645_v27 = vunpack.i.h.bf16 %v4942_v21  ;;  %v3644_v28 = vunpack.i.l.bf16 %v4942_v21  ;;  %3912 = vrot.lane.b32.xlu0 %v4930_v13, %s4606_s22 }
 0x1a5   :  { %3168 = vmatpush3.bf16.msra.mxu0 %v3167_v23  ;;  %3917 = vrot.lane.b32.xlu1 %v4944_v22, %s4606_s22 }
 0x1a6   :  { %3170 = vmatprep.subr.bf16.mxu0 %v3169_v26  ;;  %v3177_v41 = vpack.c.bf16 %v3640_v24, %v3639_v25  ;;  %v3181_v54 = vpack.c.bf16 %v3645_v27, %v3644_v28 }
 0x1a7   :  { %v4954_v29 = vpop.permute.xlu1 %3657  ;;  %v4956_v30 = vpop.permute.xlu0 %3647 }
 0x1a8   :  { %5890 = vst [vmem:[#allocation4_spill] sm:$0xff] %v4954_v29  ;;  %v3660_v33 = vunpack.i.h.bf16 %v4954_v29  ;;  %v3659_v34 = vunpack.i.l.bf16 %v4954_v29  ;;  %v3650_v35 = vunpack.i.h.bf16 %v4956_v30  ;;  %v3649_v36 = vunpack.i.l.bf16 %v4956_v30  ;;  %3922 = vrot.lane.b32.xlu0 %v4942_v21, %s4606_s22 }
 0x1a9   :  { %3172 = vmatpush3.bf16.msra.mxu0 %v3171_v31  ;;  %3927 = vrot.lane.b32.xlu1 %v4956_v30, %s4606_s22 }
 0x1aa   :  { %3174 = vmatprep.subr.bf16.mxu0 %v3173_v32  ;;  %v4978_v47 = vpack.c.bf16 %v3660_v33, %v3659_v34  ;;  %v3185_v62 = vpack.c.bf16 %v3650_v35, %v3649_v36 }
 0x1ab   :  { %v4974_v39 = vpop.permute.xlu1 %3667  ;;  %v4976_v40 = vpop.permute.xlu0 %3652 }
 0x1ac   :  { %5891 = vst [vmem:[#allocation5_spill] sm:$0xff] %v4974_v39  ;;  %5892 = vst [vmem:[#allocation6_spill] sm:$0xff] %v4978_v47  ;;  %v3670_v48 = vunpack.i.h.bf16 %v4974_v39  ;;  %v3669_v49 = vunpack.i.l.bf16 %v4974_v39  ;;  %v3655_v50 = vunpack.i.h.bf16 %v4976_v40  ;;  %v3654_v55 = vunpack.i.l.bf16 %v4976_v40  ;;  %3937 = vrot.lane.b32.xlu0 %v4885_v52, %s4607_s23 }
 0x1ad   :  { %3176 = vmatpush3.bf16.msra.mxu0 %v3175_v38  ;;  %3932 = vrot.lane.b32.xlu1 %v4877_v46, %s4607_s23 }
 0x1ae   :  { %3178 = vmatprep.subr.bf16.mxu0 %v3177_v41  ;;  %v4996_v2 = vpack.c.bf16 %v3655_v50, %v3654_v55  ;;  %v4998_v5 = vpack.c.bf16 %v3670_v48, %v3669_v49 }
 0x1af   :  { %v4992_v56 = vpop.permute.xlu1 %3677  ;;  %v4994_v1 = vpop.permute.xlu0 %3662 }
 0x1b0   :  { %5893 = vst [vmem:[#allocation7_spill] sm:$0xff] %v4992_v56  ;;  %5894 = vst [vmem:[#allocation8_spill] sm:$0xff] %v4994_v1  ;;  %v3680_v8 = vunpack.i.h.bf16 %v4992_v56  ;;  %v3679_v9 = vunpack.i.l.bf16 %v4992_v56  ;;  %v3665_v10 = vunpack.i.h.bf16 %v4994_v1  ;;  %v3664_v11 = vunpack.i.l.bf16 %v4994_v1  ;;  %3947 = vrot.lane.b32.xlu0 %v4883_v51, %s4607_s23 }
 0x1b1   :  { %5895 = vst [vmem:[#allocation9_spill] sm:$0xff] %v4996_v2  ;;  %5896 = vst [vmem:[#allocation10_spill] sm:$0xff] %v4998_v5  ;;  %3180 = vmatpush3.bf16.msra.mxu0 %v3179_v53  ;;  %3942 = vrot.lane.b32.xlu1 %v4875_v45, %s4607_s23 }
 0x1b2   :  { %3182 = vmatprep.subr.bf16.mxu0 %v3181_v54  ;;  %v5016_v16 = vpack.c.bf16 %v3665_v10, %v3664_v11  ;;  %v5018_v17 = vpack.c.bf16 %v3680_v8, %v3679_v9 }
 0x1b3   :  { %v5012_v12 = vpop.permute.xlu1 %3687  ;;  %v5014_v15 = vpop.permute.xlu0 %3672 }
 0x1b4   :  { %5897 = vst [vmem:[#allocation11_spill] sm:$0xff] %v5014_v15  ;;  %5898 = vst [vmem:[#allocation12_spill] sm:$0xff] %v5016_v16  ;;  %v3690_v18 = vunpack.i.h.bf16 %v5012_v12  ;;  %v3689_v19 = vunpack.i.l.bf16 %v5012_v12  ;;  %v3675_v20 = vunpack.i.h.bf16 %v5014_v15  ;;  %v3674_v23 = vunpack.i.l.bf16 %v5014_v15  ;;  %3957 = vrot.lane.b32.xlu0 %v4893_v57, %s4607_s23 }
 0x1b5   :  { %5899 = vst [vmem:[#allocation13_spill] sm:$0xff] %v5018_v17  ;;  %3184 = vmatpush3.bf16.msra.mxu0 %v3183_v61  ;;  %3952 = vrot.lane.b32.xlu1 %v4895_v58, %s4607_s23 }
 0x1b6   :  { %3186 = vmatprep.subr.bf16.mxu0 %v3185_v62  ;;  %v5039_v26 = vpack.c.bf16 %v3690_v18, %v3689_v19  ;;  %v5052_v4 = vpack.c.bf16 %v3675_v20, %v3674_v23 }
 0x1b7   :  { %v5035_v24 = vpop.permute.xlu1 %3697  ;;  %v5037_v25 = vpop.permute.xlu0 %3682 }
 0x1b8   :  { %5900 = vst [vmem:[#allocation14_spill] sm:$0xff] %v5035_v24  ;;  %5901 = vst [vmem:[#allocation15_spill] sm:$0xff] %v5039_v26  ;;  %v3700_v27 = vunpack.i.h.bf16 %v5035_v24  ;;  %v3699_v28 = vunpack.i.l.bf16 %v5035_v24  ;;  %v3685_v31 = vunpack.i.h.bf16 %v5037_v25  ;;  %v3684_v32 = vunpack.i.l.bf16 %v5037_v25  ;;  %3967 = vrot.lane.b32.xlu0 %v4905_v63, %s4607_s23 }
 0x1b9   :  { %3188 = vmatpush3.bf16.msra.mxu0 %v3187_v60  ;;  %5902 = vst [vmem:[#allocation16_spill] sm:$0xff] %v5052_v4  ;;  %3962 = vrot.lane.b32.xlu1 %v4907_v0, %s4607_s23 }
 0x1ba   :  { %v5058_v35 = vpack.c.bf16 %v3700_v27, %v3699_v28  ;;  %v5060_v36 = vpack.c.bf16 %v3685_v31, %v3684_v32 }
 0x1bb   :  { %v5054_v33 = vpop.permute.xlu1 %3707  ;;  %v5056_v34 = vpop.permute.xlu0 %3692 }
 0x1bc   :  { %5903 = vst [vmem:[#allocation17_spill] sm:$0xff] %v5054_v33  ;;  %5904 = vst [vmem:[#allocation18_spill] sm:$0xff] %v5058_v35  ;;  %v3710_v38 = vunpack.i.h.bf16 %v5054_v33  ;;  %v3709_v41 = vunpack.i.l.bf16 %v5054_v33  ;;  %v3695_v48 = vunpack.i.h.bf16 %v5056_v34  ;;  %v3694_v49 = vunpack.i.l.bf16 %v5056_v34  ;;  %1704 = vmatmul.mubr.f32.vlgmr.msra.gmra.mrb[16].mxu0 %v1582_v3  ;;  %3977 = vrot.lane.b32.xlu0 %v4917_v6, %s4607_s23 }
 0x1bd   :  { %5905 = vst [vmem:[#allocation19_spill] sm:$0xff] %v5060_v36  ;;  %3972 = vrot.lane.b32.xlu1 %v4919_v7, %s4607_s23 }
 0x1be   :  { %v5074_v53 = vpack.c.bf16 %v3695_v48, %v3694_v49  ;;  %v5076_v54 = vpack.c.bf16 %v3710_v38, %v3709_v41  ;;  %v1585_v49 = vld [vmem:[%s5856_s2 + $0x18] sm:$0xff] }
 0x1bf   :  { %v5070_v50 = vpop.permute.xlu1 %3717  ;;  %v5072_v55 = vpop.permute.xlu0 %3702  ;;  %1778 = vmatprep.mubr.f32.mxu1 %v1585_v49 }
 0x1c0   :  { %5906 = vst [vmem:[#allocation20_spill] sm:$0xff] %v5070_v50  ;;  %5907 = vst [vmem:[#allocation21_spill] sm:$0xff] %v5072_v55  ;;  %v3720_v8 = vunpack.i.h.bf16 %v5070_v50  ;;  %v3719_v9 = vunpack.i.l.bf16 %v5070_v50  ;;  %v3705_v10 = vunpack.i.h.bf16 %v5072_v55  ;;  %v3704_v11 = vunpack.i.l.bf16 %v5072_v55  ;;  %3987 = vrot.lane.b32.xlu0 %v4930_v13, %s4607_s23 }
 0x1c1   :  { %5908 = vst [vmem:[#allocation22_spill] sm:$0xff] %v5074_v53  ;;  %5909 = vst [vmem:[#allocation23_spill] sm:$0xff] %v5076_v54  ;;  %3982 = vrot.lane.b32.xlu1 %v4932_v14, %s4607_s23 }
 0x1c2   :  { %v5090_v18 = vpack.c.bf16 %v3705_v10, %v3704_v11  ;;  %v5092_v19 = vpack.c.bf16 %v3720_v8, %v3719_v9 }
 0x1c3   :  { %v5086_v61 = vpop.permute.xlu1 %3742  ;;  %v5088_v62 = vpop.permute.xlu0 %3712 }
 0x1c4   :  { %5910 = vst [vmem:[#allocation24_spill] sm:$0xff] %v5086_v61  ;;  %5911 = vst [vmem:[#allocation25_spill] sm:$0xff] %v5088_v62  ;;  %v3715_v20 = vunpack.i.h.bf16 %v5088_v62  ;;  %v3714_v23 = vunpack.i.l.bf16 %v5088_v62  ;;  %3997 = vrot.lane.b32.xlu0 %v4942_v21, %s4607_s23 }
 0x1c5   :  { %5912 = vst [vmem:[#allocation26_spill] sm:$0xff] %v5090_v18  ;;  %5913 = vst [vmem:[#allocation27_spill] sm:$0xff] %v5092_v19  ;;  %3992 = vrot.lane.b32.xlu1 %v4944_v22, %s4607_s23 }
 0x1c6   :  { %v5104_v27 = vpack.c.bf16 %v3715_v20, %v3714_v23  ;;  %v1607_v23 = vld [vmem:[%s5856_s2 + $0xc8] sm:$0x3] }
 0x1c7   :  { %v5100_v59 = vpop.permute.xlu1 %3747  ;;  %v5102_v60 = vpop.permute.xlu0 %3722 }
 0x1c8   :  { %5914 = vst [vmem:[#allocation28_spill] sm:$0xff] %v5100_v59  ;;  %5915 = vst [vmem:[#allocation29_spill] sm:$0xff] %v5104_v27  ;;  %v3725_v28 = vunpack.i.h.bf16 %v5102_v60  ;;  %v3724_v31 = vunpack.i.l.bf16 %v5102_v60  ;;  %4012 = vrot.lane.b32.xlu0 %v4885_v52, %s4608_s24  ;;  %v1608_v52 = vld [vmem:[%s5856_s2 + $0xd0] sm:$0x3] }
 0x1c9   :  { %4002 = vrot.lane.b32.xlu1 %v4956_v30, %s4607_s23  ;;  %1708 = vmatprep.mubr.f32.mxu0 %v1608_v52 }
 0x1ca   :  { %v5116_v38 = vpack.c.bf16 %v3725_v28, %v3724_v31  ;;  %1709 = vmatmul.mubr.f32.gmra.mrb[18].mxu0 %v1607_v23 }
 0x1cb   :  { %v5112_v32 = vpop.permute.xlu0 %3727  ;;  %v5114_v3 = vpop.permute.xlu1 %3752 }
 0x1cc   :  { %5916 = vst [vmem:[#allocation30_spill] sm:$0xff] %v5116_v38  ;;  %v3755_v41 = vunpack.i.h.bf16 %v5114_v3  ;;  %v3754_v48 = vunpack.i.l.bf16 %v5114_v3  ;;  %4022 = vrot.lane.b32.xlu0 %v4919_v7, %s4608_s24  ;;  %v3730_v61 = vunpack.i.h.bf16 %v5112_v32  ;;  %v3729_v53 = vunpack.i.l.bf16 %v5112_v32 }
 0x1cd   :  { %4007 = vrot.lane.b32.xlu1 %v4877_v46, %s4608_s24  ;;  %v1587_v46 = vld [vmem:[%s5856_s2 + $0x28] sm:$0xff] }
 0x1ce   :  { %v5131_v10 = vpack.c.bf16 %v3755_v41, %v3754_v48  ;;  %1853 = vmatprep.mubr.f32.mxu0 %v1587_v46 }
 0x1cf   :  { %v5127_v8 = vpop.permute.xlu0 %3732  ;;  %v5129_v9 = vpop.permute.xlu1 %3762 }
 0x1d0   :  { %v3765_v11 = vunpack.i.h.bf16 %v5129_v9  ;;  %v3764_v20 = vunpack.i.l.bf16 %v5129_v9  ;;  %4032 = vrot.lane.b32.xlu0 %v4932_v14, %s4608_s24 }
 0x1d1   :  { %4017 = vrot.lane.b32.xlu1 %v4905_v63, %s4608_s24 }
 0x1d2   :  { %v5149_v41 = vpack.c.bf16 %v3765_v11, %v3764_v20 }
 0x1d3   :  { %v5145_v28 = vpop.permute.xlu0 %3737  ;;  %v5147_v31 = vpop.permute.xlu1 %3772 }
 0x1d4   :  { %v3775_v7 = vunpack.i.h.bf16 %v5147_v31  ;;  %v3774_v48 = vunpack.i.l.bf16 %v5147_v31  ;;  %4042 = vrot.lane.b32.xlu0 %v4930_v13, %s4608_s24 }
 0x1d5   :  { %4027 = vrot.lane.b32.xlu1 %v4917_v6, %s4608_s24 }
 0x1d6   :  { %v5164_v11 = vpack.c.bf16 %v3775_v7, %v3774_v48 }
 0x1d7   :  { %v5160_v49 = vpop.permute.xlu0 %3757  ;;  %v5162_v52 = vpop.permute.xlu1 %3782 }
 0x1d8   :  { %v3760_v20 = vunpack.i.h.bf16 %v5160_v49  ;;  %v3759_v44 = vunpack.i.l.bf16 %v5160_v49  ;;  %v3785_v14 = vunpack.i.h.bf16 %v5162_v52  ;;  %v3784_v23 = vunpack.i.l.bf16 %v5162_v52  ;;  %4052 = vrot.lane.b32.xlu0 %v4944_v22, %s4608_s24 }
 0x1d9   :  { %4037 = vrot.lane.b32.xlu1 %v4875_v45, %s4608_s24 }
 0x1da   :  { %v5178_v7 = vpack.c.bf16 %v3760_v20, %v3759_v44  ;;  %v5180_v48 = vpack.c.bf16 %v3785_v14, %v3784_v23 }
 0x1db   :  { %v5174_v63 = vpop.permute.xlu0 %3767  ;;  %v5176_v36 = vpop.permute.xlu1 %3792 }
 0x1dc   :  { %v3770_v46 = vunpack.i.h.bf16 %v5174_v63  ;;  %v3769_v38 = vunpack.i.l.bf16 %v5174_v63  ;;  %v3795_v59 = vunpack.i.h.bf16 %v5176_v36  ;;  %v3794_v17 = vunpack.i.l.bf16 %v5176_v36  ;;  %4062 = vrot.lane.b32.xlu0 %v4942_v21, %s4608_s24 }
 0x1dd   :  { %4047 = vrot.lane.b32.xlu1 %v4883_v51, %s4608_s24 }
 0x1de   :  { %v5194_v13 = vpack.c.bf16 %v3795_v59, %v3794_v17  ;;  %v5196_v20 = vpack.c.bf16 %v3770_v46, %v3769_v38 }
 0x1df   :  { %v5190_v6 = vpop.permute.xlu0 %3777  ;;  %v5192_v44 = vpop.permute.xlu1 %3802 }
 0x1e0   :  { %v3780_v14 = vunpack.i.h.bf16 %v5190_v6  ;;  %v3779_v23 = vunpack.i.l.bf16 %v5190_v6  ;;  %v3805_v19 = vunpack.i.h.bf16 %v5192_v44  ;;  %v3804_v4 = vunpack.i.l.bf16 %v5192_v44  ;;  %4072 = vrot.lane.b32.xlu0 %v4956_v30, %s4608_s24 }
 0x1e1   :  { %4057 = vrot.lane.b32.xlu1 %v4895_v58, %s4608_s24 }
 0x1e2   :  { %v5210_v17 = vpack.c.bf16 %v3805_v19, %v3804_v4  ;;  %v5212_v59 = vpack.c.bf16 %v3780_v14, %v3779_v23 }
 0x1e3   :  { %v5206_v45 = vpop.permute.xlu0 %3787  ;;  %v5208_v22 = vpop.permute.xlu1 %3812 }
 0x1e4   :  { %v3790_v38 = vunpack.i.h.bf16 %v5206_v45  ;;  %v3789_v46 = vunpack.i.l.bf16 %v5206_v45  ;;  %v3815_v27 = vunpack.i.h.bf16 %v5208_v22  ;;  %v3814_v5 = vunpack.i.l.bf16 %v5208_v22  ;;  %4082 = vrot.lane.b32.xlu0 %v5012_v12, %s4606_s22 }
 0x1e5   :  { %4067 = vrot.lane.b32.xlu1 %v4893_v57, %s4608_s24 }
 0x1e6   :  { %v5226_v4 = vpack.c.bf16 %v3790_v38, %v3789_v46  ;;  %v5228_v19 = vpack.c.bf16 %v3815_v27, %v3814_v5 }
 0x1e7   :  { %v5222_v51 = vpop.permute.xlu0 %3797  ;;  %v5224_v21 = vpop.permute.xlu1 %3822 }
 0x1e8   :  { %v3800_v14 = vunpack.i.h.bf16 %v5222_v51  ;;  %v3799_v23 = vunpack.i.l.bf16 %v5222_v51  ;;  %v3825_v54 = vunpack.i.h.bf16 %v5224_v21  ;;  %v3824_v16 = vunpack.i.l.bf16 %v5224_v21  ;;  %4087 = vrot.lane.b32.xlu0 %v5056_v34, %s4606_s22 }
 0x1e9   :  { %4077 = vrot.lane.b32.xlu1 %v4907_v0, %s4608_s24 }
 0x1ea   :  { %v5242_v5 = vpack.c.bf16 %v3800_v14, %v3799_v23  ;;  %v5244_v27 = vpack.c.bf16 %v3825_v54, %v3824_v16 }
 0x1eb   :  { %v5238_v58 = vpop.permute.xlu0 %3807  ;;  %v5240_v30 = vpop.permute.xlu1 %3827 }
 0x1ec   :  { %5917 = vst [vmem:[#allocation31_spill] sm:$0xff] %v5240_v30  ;;  %v3810_v38 = vunpack.i.h.bf16 %v5238_v58  ;;  %v3809_v46 = vunpack.i.l.bf16 %v5238_v58  ;;  %4097 = vrot.lane.b32.xlu0 %v5035_v24, %s4606_s22 }
 0x1ed   :  { %4092 = vrot.lane.b32.xlu1 %v4976_v40, %s4606_s22 }
 0x1ee   :  { %v5252_v18 = vpack.c.bf16 %v3810_v38, %v3809_v46 }
 0x1ef   :  { %v5254_v57 = vpop.permute.xlu0 %3817  ;;  %v5256_v47 = vpop.permute.xlu1 %3837 }
 0x1f0   :  { %5918 = vst [vmem:[#allocation32_spill] sm:$0xff] %v5256_v47  ;;  %v3820_v14 = vunpack.i.h.bf16 %v5254_v57  ;;  %v3819_v16 = vunpack.i.l.bf16 %v5254_v57  ;;  %4107 = vrot.lane.b32.xlu0 %v5072_v55, %s4606_s22 }
 0x1f1   :  { %4102 = vrot.lane.b32.xlu1 %v4954_v29, %s4606_s22 }
 0x1f2   :  { %v5264_v54 = vpack.c.bf16 %v3820_v14, %v3819_v16 }
 0x1f3   :  { %v5266_v23 = vpop.permute.xlu1 %3842  ;;  %v5288_v46 = vpop.permute.xlu0 %3832 }
 0x1f4   :  { %5919 = vst [vmem:[#allocation33_spill] sm:$0xff] %v5266_v23  ;;  %4117 = vrot.lane.b32.xlu0 %v5054_v33, %s4606_s22  ;;  %5922 = vst [vmem:[#allocation36_spill] sm:$0xff] %v5288_v46 }
 0x1f5   :  { %4112 = vrot.lane.b32.xlu1 %v4994_v1, %s4606_s22 }
 0x1f7   :  { %v5272_v0 = vpop.permute.xlu1 %3847 }
 0x1f8   :  { %5920 = vst [vmem:[#allocation34_spill] sm:$0xff] %v5272_v0  ;;  %4127 = vrot.lane.b32.xlu0 %v5088_v62, %s4606_s22  ;;  %v3191_v62 = vpack.c.bf16 %v3730_v61, %v3729_v53 }
 0x1f9   :  { %4122 = vrot.lane.b32.xlu1 %v4974_v39, %s4606_s22 }
 0x1fb   :  { %v5282_v38 = vpop.permute.xlu1 %3852 }
 0x1fc   :  { %5921 = vst [vmem:[#allocation35_spill] sm:$0xff] %v5282_v38  ;;  %4137 = vrot.lane.b32.xlu0 %v5070_v50, %s4606_s22 }
 0x1fd   :  { %4132 = vrot.lane.b32.xlu1 %v5014_v15, %s4606_s22 }
 0x1ff   :  { %v3858_v14 = vpop.permute.xlu1 %3857 }
 0x200   :  { %4147 = vrot.lane.b32.xlu0 %v4992_v56, %s4606_s22  ;;  %v3860_v39 = vunpack.i.h.bf16 %v3858_v14  ;;  %v3859_v33 = vunpack.i.l.bf16 %v3858_v14 }
 0x201   :  { %4142 = vrot.lane.b32.xlu1 %v5012_v12, %s4607_s23 }
 0x202   :  { %v3863_v16 = vpop.permute.xlu0 %3862 }
 0x203   :  { %v3868_v47 = vpop.permute.xlu1 %3867 }
 0x204   :  { %4152 = vrot.lane.b32.xlu0 %v5206_v45, %s4606_s22 }
 0x205   :  { %4162 = vrot.lane.b32.xlu1 %v5114_v3, %s4606_s22 }
 0x206   :  { %v5298_v30 = vpop.permute.xlu0 %3872 }
 0x207   :  { %v5300_v35 = vpop.permute.xlu1 %3877 }
 0x208   :  { %4157 = vrot.lane.b32.xlu0 %v5176_v36, %s4606_s22 }
 0x209   :  { %4172 = vrot.lane.b32.xlu1 %v5160_v49, %s4606_s22 }
 0x20a   :  { %v5306_v46 = vpop.permute.xlu0 %3882 }
 0x20b   :  { %v5308_v2 = vpop.permute.xlu1 %3887 }
 0x20c   :  { %4167 = vrot.lane.b32.xlu0 %v5222_v51, %s4606_s22 }
 0x20d   :  { %4182 = vrot.lane.b32.xlu1 %v5129_v9, %s4606_s22 }
 0x20e   :  { %v3893_v43 = vpop.permute.xlu0 %3892 }
 0x20f   :  { %v3895_v26 = vunpack.i.h.bf16 %v3893_v43  ;;  %v3894_v38 = vunpack.i.l.bf16 %v3893_v43  ;;  %v3898_v56 = vpop.permute.xlu1 %3897  ;;  %v3195_v43 = vpack.c.bf16 %v3860_v39, %v3859_v33 }
 0x210   :  { %v3900_v50 = vunpack.i.h.bf16 %v3898_v56  ;;  %v3899_v0 = vunpack.i.l.bf16 %v3898_v56  ;;  %4177 = vrot.lane.b32.xlu0 %v5192_v44, %s4606_s22  ;;  %v3865_v56 = vunpack.i.h.bf16 %v3863_v16 }
 0x211   :  { %4192 = vrot.lane.b32.xlu1 %v5174_v63, %s4606_s22  ;;  %v3189_v15 = vpack.c.bf16 %v3895_v26, %v3894_v38  ;;  %v3864_v26 = vunpack.i.l.bf16 %v3863_v16 }
 0x212   :  { %v3903_v1 = vpop.permute.xlu0 %3902  ;;  %v3193_v29 = vpack.c.bf16 %v3900_v50, %v3899_v0  ;;  %v3869_v50 = vunpack.i.l.bf16 %v3868_v47 }
 0x213   :  { %v3905_v55 = vunpack.i.h.bf16 %v3903_v1  ;;  %v3904_v23 = vunpack.i.l.bf16 %v3903_v1  ;;  %v3908_v32 = vpop.permute.xlu1 %3907  ;;  %3190 = vmatprep.subr.bf16.mxu1 %v3189_v15  ;;  %v3199_v1 = vpack.c.bf16 %v3865_v56, %v3864_v26  ;;  %v3870_v15 = vunpack.i.h.bf16 %v3868_v47 }
 0x214   :  { %3192 = vmatpush3.bf16.msra.mxu1 %v3191_v62  ;;  %4187 = vrot.lane.b32.xlu0 %v5238_v58, %s4606_s22  ;;  %v3910_v61 = vunpack.i.h.bf16 %v3908_v32  ;;  %v3909_v38 = vunpack.i.l.bf16 %v3908_v32 }
 0x215   :  { %4202 = vrot.lane.b32.xlu1 %v5147_v31, %s4606_s22  ;;  %3194 = vmatprep.subr.bf16.mxu1 %v3193_v29  ;;  %v3197_v24 = vpack.c.bf16 %v3905_v55, %v3904_v23  ;;  %v3203_v55 = vpack.c.bf16 %v3870_v15, %v3869_v50  ;;  %v3875_v23 = vunpack.i.h.bf16 %v5298_v30 }
 0x216   :  { %v3913_v53 = vpop.permute.xlu0 %3912  ;;  %v3201_v0 = vpack.c.bf16 %v3910_v61, %v3909_v38 }
 0x217   :  { %v3918_v14 = vpop.permute.xlu1 %3917  ;;  %v3915_v39 = vunpack.i.h.bf16 %v3913_v53  ;;  %v3914_v33 = vunpack.i.l.bf16 %v3913_v53  ;;  %v3880_v53 = vunpack.i.h.bf16 %v5300_v35 }
 0x218   :  { %3196 = vmatpush3.bf16.msra.mxu1 %v3195_v43  ;;  %4197 = vrot.lane.b32.xlu0 %v5208_v22, %s4606_s22  ;;  %v3920_v47 = vunpack.i.h.bf16 %v3918_v14  ;;  %v3919_v32 = vunpack.i.l.bf16 %v3918_v14 }
 0x219   :  { %4212 = vrot.lane.b32.xlu1 %v5206_v45, %s4607_s23  ;;  %3198 = vmatprep.subr.bf16.mxu1 %v3197_v24  ;;  %v3874_v24 = vunpack.i.l.bf16 %v5298_v30  ;;  %v3205_v56 = vpack.c.bf16 %v3915_v39, %v3914_v33  ;;  %v3879_v30 = vunpack.i.l.bf16 %v5300_v35  ;;  %v3885_v39 = vunpack.i.h.bf16 %v5306_v46 }
 0x21a   :  { %v3923_v29 = vpop.permute.xlu0 %3922  ;;  %v3209_v15 = vpack.c.bf16 %v3920_v47, %v3919_v32  ;;  %v3884_v35 = vunpack.i.l.bf16 %v5306_v46  ;;  %v3890_v47 = vunpack.i.h.bf16 %v5308_v2 }
 0x21b   :  { %v3928_v62 = vpop.permute.xlu1 %3927  ;;  %v3207_v26 = vpack.c.bf16 %v3875_v23, %v3874_v24  ;;  %v3925_v38 = vunpack.i.h.bf16 %v3923_v29  ;;  %v3924_v14 = vunpack.i.l.bf16 %v3923_v29  ;;  %v3211_v50 = vpack.c.bf16 %v3880_v53, %v3879_v30 }
 0x21c   :  { %3200 = vmatpush3.bf16.msra.mxu1 %v3199_v1  ;;  %4207 = vrot.lane.b32.xlu0 %v5254_v57, %s4606_s22  ;;  %v3929_v29 = vunpack.i.l.bf16 %v3928_v62  ;;  %v3735_v24 = vunpack.i.h.bf16 %v5127_v8  ;;  %v3215_v46 = vpack.c.bf16 %v3885_v39, %v3884_v35 }
 0x21d   :  { %4227 = vrot.lane.b32.xlu1 %v5176_v36, %s4607_s23  ;;  %3202 = vmatprep.subr.bf16.mxu1 %v3201_v0  ;;  %v3930_v0 = vunpack.i.h.bf16 %v3928_v62  ;;  %v3213_v23 = vpack.c.bf16 %v3925_v38, %v3924_v14  ;;  %v3889_v62 = vunpack.i.l.bf16 %v5308_v2 }
 0x21e   :  { %v5334_v16 = vpop.permute.xlu0 %3937 }
 0x21f   :  { %v5336_v43 = vpop.permute.xlu1 %3932  ;;  %v3217_v30 = vpack.c.bf16 %v3930_v0, %v3929_v29  ;;  %v3219_v38 = vpack.c.bf16 %v3890_v47, %v3889_v62 }
 0x220   :  { %3204 = vmatpush3.bf16.msra.mxu1 %v3203_v55  ;;  %4217 = vrot.lane.b32.xlu0 %v5190_v6, %s4606_s22  ;;  %v3935_v2 = vunpack.i.h.bf16 %v5336_v43 }
 0x221   :  { %4237 = vrot.lane.b32.xlu1 %v5114_v3, %s4607_s23  ;;  %3206 = vmatprep.subr.bf16.mxu1 %v3205_v56 }
 0x222   :  { %v5344_v61 = vpop.permute.xlu0 %3947 }
 0x223   :  { %v5346_v1 = vpop.permute.xlu1 %3942 }
 0x224   :  { %3208 = vmatpush3.bf16.msra.mxu1 %v3207_v26  ;;  %4222 = vrot.lane.b32.xlu0 %v5224_v21, %s4606_s22 }
 0x225   :  { %4247 = vrot.lane.b32.xlu1 %v5206_v45, %s4608_s24  ;;  %3210 = vmatprep.subr.bf16.mxu1 %v3209_v15  ;;  %v3734_v45 = vunpack.i.l.bf16 %v5127_v8  ;;  %v3934_v15 = vunpack.i.l.bf16 %v5336_v43  ;;  %v1610_v43 = vld [vmem:[%s5856_s2 + $0xe0] sm:$0x3] }
 0x226   :  { %v5354_v33 = vpop.permute.xlu0 %3957 }
 0x227   :  { %v5356_v55 = vpop.permute.xlu1 %3952  ;;  %v3223_v8 = vpack.c.bf16 %v3735_v24, %v3734_v45  ;;  %v3940_v45 = vunpack.i.h.bf16 %v5334_v16  ;;  %v3227_v47 = vpack.c.bf16 %v3935_v2, %v3934_v15 }
 0x228   :  { %3212 = vmatpush3.bf16.msra.mxu1 %v3211_v50  ;;  %4232 = vrot.lane.b32.xlu0 %v5162_v52, %s4606_s22 }
 0x229   :  { %4262 = vrot.lane.b32.xlu1 %v5176_v36, %s4608_s24  ;;  %3214 = vmatprep.subr.bf16.mxu1 %v3213_v23 }
 0x22a   :  { %v3968_v32 = vpop.permute.xlu0 %3967 }
 0x22b   :  { %v3970_v56 = vunpack.i.h.bf16 %v3968_v32  ;;  %v3969_v26 = vunpack.i.l.bf16 %v3968_v32  ;;  %v5366_v53 = vpop.permute.xlu1 %3962 }
 0x22c   :  { %3216 = vmatpush3.bf16.msra.mxu1 %v3215_v46  ;;  %4242 = vrot.lane.b32.xlu0 %v5222_v51, %s4607_s23  ;;  %v3939_v46 = vunpack.i.l.bf16 %v5334_v16  ;;  %v1589_v16 = vld [vmem:[%s5856_s2 + $0x38] sm:$0xff] }
 0x22d   :  { %4272 = vrot.lane.b32.xlu1 %v5114_v3, %s4608_s24  ;;  %3218 = vmatprep.subr.bf16.mxu1 %v3217_v30  ;;  %v3221_v36 = vpack.c.bf16 %v3970_v56, %v3969_v26  ;;  %v1584_v3 = vld [vmem:[%s5856_s2 + $0x10] sm:$0xff] }
 0x22e   :  { %v3978_v14 = vpop.permute.xlu0 %3977 }
 0x22f   :  { %v3973_v50 = vpop.permute.xlu1 %3972  ;;  %3222 = vmatprep.subr.bf16.mxu0 %v3221_v36  ;;  %v3980_v39 = vunpack.i.h.bf16 %v3978_v14  ;;  %v3979_v35 = vunpack.i.l.bf16 %v3978_v14  ;;  %v3231_v36 = vpack.c.bf16 %v3940_v45, %v3939_v46  ;;  %v3954_v45 = vunpack.i.l.bf16 %v5356_v55 }
 0x230   :  { %v3975_v0 = vunpack.i.h.bf16 %v3973_v50  ;;  %v3974_v29 = vunpack.i.l.bf16 %v3973_v50  ;;  %3220 = vmatpush3.bf16.msra.mxu1 %v3219_v38  ;;  %3224 = vmatpush3.bf16.msra.mxu0 %v3223_v8  ;;  %v3945_v8 = vunpack.i.h.bf16 %v5346_v1  ;;  %v3944_v38 = vunpack.i.l.bf16 %v5346_v1 }
 0x231   :  { %4252 = vrot.lane.b32.xlu0 %v5160_v49, %s4607_s23  ;;  %4282 = vrot.lane.b32.xlu1 %v5222_v51, %s4608_s24  ;;  %v3229_v26 = vpack.c.bf16 %v3980_v39, %v3979_v35  ;;  %v1609_v51 = vld [vmem:[%s5856_s2 + $0xd8] sm:$0x3]  ;;  %v3950_v39 = vunpack.i.h.bf16 %v5344_v61  ;;  %v3949_v1 = vunpack.i.l.bf16 %v5344_v61 }
 0x232   :  { %v3988_v23 = vpop.permute.xlu0 %3987  ;;  %v3225_v24 = vpack.c.bf16 %v3975_v0, %v3974_v29  ;;  %v3235_v35 = vpack.c.bf16 %v3945_v8, %v3944_v38 }
 0x233   :  { %v3983_v62 = vpop.permute.xlu1 %3982  ;;  %1779 = vmatmul.mubr.f32.vlgmr.msra.gmra.mrb[16].mxu1 %v1584_v3  ;;  %v3990_v2 = vunpack.i.h.bf16 %v3988_v23  ;;  %v3989_v15 = vunpack.i.l.bf16 %v3988_v23  ;;  %v3239_v23 = vpack.c.bf16 %v3950_v39, %v3949_v1  ;;  %v3965_v39 = vunpack.i.h.bf16 %v5366_v53 }
 0x234   :  { %v3985_v32 = vunpack.i.h.bf16 %v3983_v62  ;;  %v3984_v56 = vunpack.i.l.bf16 %v3983_v62  ;;  %3226 = vmatprep.subr.bf16.mxu0 %v3225_v24  ;;  %1783 = vmatprep.mubr.f32.mxu1 %v1610_v43  ;;  %v3955_v24 = vunpack.i.h.bf16 %v5356_v55  ;;  %v3964_v1 = vunpack.i.l.bf16 %v5366_v53 }
 0x235   :  { %3228 = vmatpush3.bf16.msra.mxu0 %v3227_v47  ;;  %4257 = vrot.lane.b32.xlu0 %v5192_v44, %s4607_s23  ;;  %v3237_v43 = vpack.c.bf16 %v3990_v2, %v3989_v15 }
 0x236   :  { %4292 = vrot.lane.b32.xlu1 %v5160_v49, %s4608_s24  ;;  %3230 = vmatprep.subr.bf16.mxu0 %v3229_v26  ;;  %v3998_v30 = vpop.permute.xlu0 %3997  ;;  %v3233_v50 = vpack.c.bf16 %v3985_v32, %v3984_v56  ;;  %v3740_v32 = vunpack.i.h.bf16 %v5145_v28  ;;  %v3739_v56 = vunpack.i.l.bf16 %v5145_v28  ;;  %v3959_v26 = vunpack.i.l.bf16 %v5354_v33 }
 0x237   :  { %v3993_v14 = vpop.permute.xlu1 %3992  ;;  %1784 = vmatmul.mubr.f32.gmra.mrb[18].mxu1 %v1609_v51  ;;  %v4000_v46 = vunpack.i.h.bf16 %v3998_v30  ;;  %v3999_v47 = vunpack.i.l.bf16 %v3998_v30  ;;  %v3243_v51 = vpack.c.bf16 %v3955_v24, %v3954_v45  ;;  %v3251_v24 = vpack.c.bf16 %v3965_v39, %v3964_v1 }
 0x238   :  { %1928 = vmatprep.mubr.f32.mxu1 %v1589_v16  ;;  %v3995_v29 = vunpack.i.h.bf16 %v3993_v14  ;;  %v3994_v3 = vunpack.i.l.bf16 %v3993_v14  ;;  %v3255_v28 = vpack.c.bf16 %v3740_v32, %v3739_v56  ;;  %v1586_v56 = vld [vmem:[%s5856_s2 + $0x20] sm:$0xff] }
 0x239   :  { %3232 = vmatpush3.bf16.msra.mxu0 %v3231_v36  ;;  %4267 = vrot.lane.b32.xlu0 %v5129_v9, %s4607_s23  ;;  %v3245_v8 = vpack.c.bf16 %v4000_v46, %v3999_v47 }
 0x23a   :  { %4302 = vrot.lane.b32.xlu1 %v5192_v44, %s4608_s24  ;;  %3234 = vmatprep.subr.bf16.mxu0 %v3233_v50  ;;  %v5402_v49 = vpop.permute.xlu0 %4012  ;;  %v3241_v62 = vpack.c.bf16 %v3995_v29, %v3994_v3 }
 0x23b   :  { %v4003_v0 = vpop.permute.xlu1 %4002  ;;  %v4015_v53 = vunpack.i.h.bf16 %v5402_v49  ;;  %v4014_v45 = vunpack.i.l.bf16 %v5402_v49 }
 0x23c   :  { %v4005_v38 = vunpack.i.h.bf16 %v4003_v0  ;;  %v4004_v14 = vunpack.i.l.bf16 %v4003_v0 }
 0x23d   :  { %3236 = vmatpush3.bf16.msra.mxu0 %v3235_v35  ;;  %4277 = vrot.lane.b32.xlu0 %v5238_v58, %s4607_s23  ;;  %v3263_v49 = vpack.c.bf16 %v4015_v53, %v4014_v45 }
 0x23e   :  { %4312 = vrot.lane.b32.xlu1 %v5129_v9, %s4608_s24  ;;  %3238 = vmatprep.subr.bf16.mxu0 %v3237_v43  ;;  %v4023_v44 = vpop.permute.xlu0 %4022  ;;  %v3960_v9 = vunpack.i.h.bf16 %v5354_v33 }
 0x23f   :  { %v4008_v61 = vpop.permute.xlu1 %4007  ;;  %v4025_v2 = vunpack.i.h.bf16 %v4023_v44  ;;  %v4024_v15 = vunpack.i.l.bf16 %v4023_v44  ;;  %v3249_v44 = vpack.c.bf16 %v4005_v38, %v4004_v14 }
 0x240   :  { %v3247_v33 = vpack.c.bf16 %v3960_v9, %v3959_v26  ;;  %v4010_v35 = vunpack.i.h.bf16 %v4008_v61  ;;  %v4009_v0 = vunpack.i.l.bf16 %v4008_v61 }
 0x241   :  { %3240 = vmatpush3.bf16.msra.mxu0 %v3239_v23  ;;  %4287 = vrot.lane.b32.xlu0 %v5174_v63, %s4607_s23  ;;  %v3257_v23 = vpack.c.bf16 %v4025_v2, %v4024_v15 }
 0x242   :  { %4322 = vrot.lane.b32.xlu1 %v5238_v58, %s4608_s24  ;;  %3242 = vmatprep.subr.bf16.mxu0 %v3241_v62  ;;  %v4033_v55 = vpop.permute.xlu0 %4032  ;;  %v3259_v61 = vpack.c.bf16 %v4010_v35, %v4009_v0  ;;  %v1591_v35 = vld [vmem:[%s5856_s2 + $0x48] sm:$0xff] }
 0x243   :  { %v4018_v16 = vpop.permute.xlu1 %4017  ;;  %v4035_v47 = vunpack.i.h.bf16 %v4033_v55  ;;  %v4034_v62 = vunpack.i.l.bf16 %v4033_v55 }
 0x244   :  { %v4020_v30 = vunpack.i.h.bf16 %v4018_v16  ;;  %v4019_v36 = vunpack.i.l.bf16 %v4018_v16 }
 0x245   :  { %3244 = vmatpush3.bf16.msra.mxu0 %v3243_v51  ;;  %4297 = vrot.lane.b32.xlu0 %v5208_v22, %s4607_s23 }
 0x246   :  { %4332 = vrot.lane.b32.xlu1 %v5174_v63, %s4608_s24  ;;  %3246 = vmatprep.subr.bf16.mxu0 %v3245_v8  ;;  %v4043_v58 = vpop.permute.xlu0 %4042  ;;  %v3253_v50 = vpack.c.bf16 %v4020_v30, %v4019_v36  ;;  %v3265_v30 = vpack.c.bf16 %v4035_v47, %v4034_v62  ;;  %v1612_v36 = vld [vmem:[%s5856_s2 + $0xf0] sm:$0x3] }
 0x247   :  { %v4028_v29 = vpop.permute.xlu1 %4027  ;;  %v4045_v51 = vunpack.i.h.bf16 %v4043_v58  ;;  %v4044_v16 = vunpack.i.l.bf16 %v4043_v58  ;;  %v5924_v62 = vld [vmem:[#allocation4_spill] sm:$0xff] }
 0x248   :  { %3254 = vmatprep.subr.bf16.mxu1 %v3253_v50  ;;  %v4030_v3 = vunpack.i.h.bf16 %v4028_v29  ;;  %v4029_v43 = vunpack.i.l.bf16 %v4028_v29 }
 0x249   :  { %3248 = vmatpush3.bf16.msra.mxu0 %v3247_v33  ;;  %3256 = vmatpush3.bf16.msra.mxu1 %v3255_v28  ;;  %v3269_v15 = vpack.c.bf16 %v4045_v51, %v4044_v16  ;;  %v1611_v28 = vld [vmem:[%s5856_s2 + $0xe8] sm:$0x3] }
 0x24a   :  { %4307 = vrot.lane.b32.xlu0 %v5147_v31, %s4607_s23  ;;  %4342 = vrot.lane.b32.xlu1 %v5208_v22, %s4608_s24  ;;  %v4053_v63 = vpop.permute.xlu0 %4052  ;;  %v3261_v32 = vpack.c.bf16 %v4030_v3, %v4029_v43 }
 0x24b   :  { %3250 = vmatprep.subr.bf16.mxu0 %v3249_v44  ;;  %3258 = vmatprep.subr.bf16.mxu1 %v3257_v23  ;;  %v4038_v46 = vpop.permute.xlu1 %4037  ;;  %v4054_v2 = vunpack.i.l.bf16 %v4053_v63 }
 0x24c   :  { %v4040_v9 = vunpack.i.h.bf16 %v4038_v46  ;;  %v4039_v26 = vunpack.i.l.bf16 %v4038_v46 }
 0x24d   :  { %3252 = vmatpush3.bf16.msra.mxu0 %v3251_v24  ;;  %3260 = vmatpush3.bf16.msra.mxu1 %v3259_v61 }
 0x24e   :  { %4317 = vrot.lane.b32.xlu0 %v5254_v57, %s4607_s23  ;;  %4352 = vrot.lane.b32.xlu1 %v5147_v31, %s4608_s24  ;;  %v4063_v22 = vpop.permute.xlu0 %4062 }
 0x24f   :  { %3262 = vmatprep.subr.bf16.mxu1 %v3261_v32  ;;  %3286 = vmatprep.subr.bf16.mxu0 %v5226_v4  ;;  %v4048_v55 = vpop.permute.xlu1 %4047  ;;  %v3267_v4 = vpack.c.bf16 %v4040_v9, %v4039_v26  ;;  %v4065_v50 = vunpack.i.h.bf16 %v4063_v22  ;;  %v4064_v39 = vunpack.i.l.bf16 %v4063_v22  ;;  %v1595_v32 = vld [vmem:[%s5856_s2 + $0x68] sm:$0xff]  ;;  %v5925_v22 = vld [vmem:[#allocation33_spill] sm:$0xff] }
 0x250   :  { %1854 = vmatmul.mubr.f32.vlgmr.msra.gmra.mrb[20].mxu0 %v1586_v56  ;;  %v4050_v8 = vunpack.i.h.bf16 %v4048_v55  ;;  %v4049_v38 = vunpack.i.l.bf16 %v4048_v55  ;;  %v3844_v9 = vunpack.i.l.bf16 %v5925_v22  ;;  %v5926_v26 = vld [vmem:[#allocation21_spill] sm:$0xff] }
 0x251   :  { %3264 = vmatpush3.bf16.msra.mxu1 %v3263_v49  ;;  %3288 = vmatpush3.bf16.msra.mxu0 %v4776_v42  ;;  %v4055_v42 = vunpack.i.h.bf16 %v4053_v63  ;;  %v3277_v23 = vpack.c.bf16 %v4065_v50, %v4064_v39  ;;  %v3845_v49 = vunpack.i.h.bf16 %v5925_v22  ;;  %v5931_v22 = vld [vmem:[#allocation11_spill] sm:$0xff] }
 0x252   :  { %4327 = vrot.lane.b32.xlu0 %v5190_v6, %s4607_s23  ;;  %4362 = vrot.lane.b32.xlu1 %v5190_v6, %s4608_s24  ;;  %v4073_v31 = vpop.permute.xlu0 %4072 }
 0x253   :  { %3266 = vmatprep.subr.bf16.mxu1 %v3265_v30  ;;  %3290 = vmatprep.subr.bf16.mxu0 %v5194_v13  ;;  %v4058_v14 = vpop.permute.xlu1 %4057  ;;  %v3271_v13 = vpack.c.bf16 %v4050_v8, %v4049_v38  ;;  %v3273_v1 = vpack.c.bf16 %v4055_v42, %v4054_v2  ;;  %v4075_v43 = vunpack.i.h.bf16 %v4073_v31  ;;  %v4074_v44 = vunpack.i.l.bf16 %v4073_v31  ;;  %v5927_v38 = vld [vmem:[#allocation8_spill] sm:$0xff] }
 0x254   :  { %1858 = vmatprep.mubr.f32.mxu0 %v1612_v36  ;;  %v4060_v33 = vunpack.i.h.bf16 %v4058_v14  ;;  %v4059_v58 = vunpack.i.l.bf16 %v4058_v14  ;;  %v3319_v31 = vpack.c.bf16 %v3845_v49, %v3844_v9  ;;  %v5932_v9 = vld [vmem:[#allocation34_spill] sm:$0xff] }
 0x255   :  { %3268 = vmatpush3.bf16.msra.mxu1 %v3267_v4  ;;  %3292 = vmatpush3.bf16.msra.mxu0 %v5131_v10 }
 0x256   :  { %4337 = vrot.lane.b32.xlu0 %v5224_v21, %s4607_s23  ;;  %4377 = vrot.lane.b32.xlu1 %v5162_v52, %s4608_s24  ;;  %v5457_v6 = vpop.permute.xlu0 %4082 }
 0x257   :  { %3270 = vmatprep.subr.bf16.mxu1 %v3269_v15  ;;  %3294 = vmatprep.subr.bf16.mxu0 %v5242_v5  ;;  %v4068_v10 = vpop.permute.xlu1 %4067  ;;  %v3275_v5 = vpack.c.bf16 %v4060_v33, %v4059_v58 }
 0x258   :  { %1859 = vmatmul.mubr.f32.gmra.mrb[22].mxu0 %v1611_v28  ;;  %v4070_v29 = vunpack.i.h.bf16 %v4068_v10  ;;  %v4069_v3 = vunpack.i.l.bf16 %v4068_v10  ;;  %v5928_v10 = vld [vmem:[#allocation17_spill] sm:$0xff] }
 0x259   :  { %3272 = vmatpush3.bf16.msra.mxu1 %v3271_v13  ;;  %3296 = vmatpush3.bf16.msra.mxu0 %v5178_v7 }
 0x25a   :  { %4347 = vrot.lane.b32.xlu0 %v5162_v52, %s4607_s23  ;;  %4382 = vrot.lane.b32.xlu1 %v5056_v34, %s4607_s23  ;;  %v5468_v0 = vpop.permute.xlu0 %4087  ;;  %v3279_v63 = vpack.c.bf16 %v4070_v29, %v4069_v3 }
 0x25b   :  { %3274 = vmatprep.subr.bf16.mxu1 %v3273_v1  ;;  %3298 = vmatprep.subr.bf16.mxu0 %v5210_v17  ;;  %v4078_v7 = vpop.permute.xlu1 %4077 }
 0x25c   :  { %2003 = vmatprep.mubr.f32.mxu0 %v1591_v35  ;;  %v4080_v24 = vunpack.i.h.bf16 %v4078_v7  ;;  %v4079_v53 = vunpack.i.l.bf16 %v4078_v7 }
 0x25d   :  { %3276 = vmatpush3.bf16.msra.mxu1 %v3275_v5  ;;  %3300 = vmatpush3.bf16.msra.mxu0 %v5149_v41  ;;  %v3281_v41 = vpack.c.bf16 %v4075_v43, %v4074_v44  ;;  %v5929_v43 = vld [vmem:[#allocation5_spill] sm:$0xff] }
 0x25e   :  { %4357 = vrot.lane.b32.xlu0 %v5254_v57, %s4608_s24  ;;  %4392 = vrot.lane.b32.xlu1 %v4976_v40, %s4607_s23  ;;  %v5476_v52 = vpop.permute.xlu0 %4097  ;;  %v3283_v45 = vpack.c.bf16 %v4080_v24, %v4079_v53 }
 0x25f   :  { %3278 = vmatprep.subr.bf16.mxu1 %v3277_v23  ;;  %3302 = vmatprep.subr.bf16.mxu0 %v5252_v18  ;;  %v5479_v17 = vpop.permute.xlu1 %4092  ;;  %v1588_v18 = vld [vmem:[%s5856_s2 + $0x30] sm:$0xff] }
 0x261   :  { %3280 = vmatpush3.bf16.msra.mxu1 %v3279_v63  ;;  %3304 = vmatpush3.bf16.msra.mxu0 %v5196_v20  ;;  %v1614_v20 = vld [vmem:[%s5856_s2 + $0x100] sm:$0x3] }
 0x262   :  { %4367 = vrot.lane.b32.xlu0 %v5224_v21, %s4608_s24  ;;  %4402 = vrot.lane.b32.xlu1 %v5012_v12, %s4608_s24  ;;  %v5486_v57 = vpop.permute.xlu0 %4107 }
 0x263   :  { %3282 = vmatprep.subr.bf16.mxu1 %v3281_v41  ;;  %3306 = vmatprep.subr.bf16.mxu0 %v5228_v19  ;;  %v5489_v61 = vpop.permute.xlu1 %4102  ;;  %v1593_v19 = vld [vmem:[%s5856_s2 + $0x58] sm:$0xff] }
 0x265   :  { %3284 = vmatpush3.bf16.msra.mxu1 %v3283_v45  ;;  %3308 = vmatpush3.bf16.msra.mxu0 %v5164_v11  ;;  %v1613_v11 = vld [vmem:[%s5856_s2 + $0xf8] sm:$0x3] }
 0x266   :  { %4372 = vrot.lane.b32.xlu0 %v5102_v60, %s4606_s22  ;;  %4412 = vrot.lane.b32.xlu1 %v4762_v37, %s4608_s24  ;;  %v5499_v12 = vpop.permute.xlu0 %4117 }
 0x267   :  { %3310 = vmatprep.subr.bf16.mxu0 %v5264_v54  ;;  %v5505_v21 = vpop.permute.xlu1 %4112  ;;  %v1590_v54 = vld [vmem:[%s5856_s2 + $0x40] sm:$0xff] }
 0x268   :  { %1929 = vmatmul.mubr.f32.vlgmr.msra.gmra.mrb[20].mxu1 %v1588_v18 }
 0x269   :  { %3312 = vmatpush3.bf16.msra.mxu0 %v5212_v59  ;;  %1933 = vmatprep.mubr.f32.mxu1 %v1614_v20  ;;  %v5930_v20 = vld [vmem:[#allocation25_spill] sm:$0xff] }
 0x26a   :  { %4387 = vrot.lane.b32.xlu0 %v5037_v25, %s4606_s22  ;;  %4422 = vrot.lane.b32.xlu1 %v5056_v34, %s4608_s24  ;;  %v5515_v37 = vpop.permute.xlu0 %4127  ;;  %v5923_v34 = vld [vmem:[#allocation14_spill] sm:$0xff] }
 0x26b   :  { %3314 = vmatprep.subr.bf16.mxu0 %v5244_v27  ;;  %v5521_v59 = vpop.permute.xlu1 %4122  ;;  %v1616_v27 = vld [vmem:[%s5856_s2 + $0x110] sm:$0x3] }
 0x26c   :  { %1934 = vmatmul.mubr.f32.gmra.mrb[22].mxu1 %v1613_v11 }
 0x26d   :  { %3316 = vmatpush3.bf16.msra.mxu0 %v5180_v48  ;;  %2078 = vmatprep.mubr.f32.mxu1 %v1593_v19  ;;  %v1615_v48 = vld [vmem:[%s5856_s2 + $0x108] sm:$0x3] }
 0x26e   :  { %4397 = vrot.lane.b32.xlu0 %v5923_v34, %s4607_s23  ;;  %4432 = vrot.lane.b32.xlu1 %v4976_v40, %s4608_s24  ;;  %v5531_v46 = vpop.permute.xlu0 %4137 }
 0x26f   :  { %v5536_v47 = vpop.permute.xlu1 %4132 }
 0x270   :  { %2004 = vmatmul.mubr.f32.vlgmr.msra.gmra.mrb[24].mxu0 %v1590_v54 }
 0x271   :  { %2008 = vmatprep.mubr.f32.mxu0 %v1616_v27 }
 0x272   :  { %4407 = vrot.lane.b32.xlu0 %v5924_v62, %s4607_s23  ;;  %4442 = vrot.lane.b32.xlu1 %v5923_v34, %s4608_s24  ;;  %v5545_v40 = vpop.permute.xlu0 %4147 }
 0x273   :  { %v5550_v56 = vpop.permute.xlu1 %4142 }
 0x274   :  { %2009 = vmatmul.mubr.f32.gmra.mrb[26].mxu0 %v1615_v48 }
 0x275   :  { %2153 = vmatprep.mubr.f32.mxu0 %v1595_v32 }
 0x276   :  { %4417 = vrot.lane.b32.xlu0 %v5926_v26, %s4607_s23  ;;  %4452 = vrot.lane.b32.xlu1 %v5924_v62, %s4608_s24  ;;  %v4153_v55 = vpop.permute.xlu0 %4152 }
 0x277   :  { %v4155_v51 = vunpack.i.h.bf16 %v4153_v55  ;;  %v4154_v16 = vunpack.i.l.bf16 %v4153_v55  ;;  %v4163_v30 = vpop.permute.xlu1 %4162  ;;  %v3849_v55 = vunpack.i.l.bf16 %v5932_v9 }
 0x278   :  { %v4165_v4 = vunpack.i.h.bf16 %v4163_v30  ;;  %v4164_v8 = vunpack.i.l.bf16 %v4163_v30 }
 0x279   :  { %v3317_v36 = vpack.c.bf16 %v4155_v51, %v4154_v16 }
 0x27a   :  { %4427 = vrot.lane.b32.xlu0 %v5927_v38, %s4607_s23  ;;  %4462 = vrot.lane.b32.xlu1 %v5926_v26, %s4608_s24  ;;  %v4158_v14 = vpop.permute.xlu0 %4157  ;;  %v3323_v13 = vpack.c.bf16 %v4165_v4, %v4164_v8  ;;  %v3850_v26 = vunpack.i.h.bf16 %v5932_v9 }
 0x27b   :  { %v4160_v42 = vunpack.i.h.bf16 %v4158_v14  ;;  %v4159_v2 = vunpack.i.l.bf16 %v4158_v14  ;;  %v4173_v15 = vpop.permute.xlu1 %4172  ;;  %3318 = vmatprep.subr.bf16.mxu1 %v3317_v36  ;;  %v5933_v14 = vld [vmem:[#allocation20_spill] sm:$0xff] }
 0x27c   :  { %3320 = vmatpush3.bf16.msra.mxu1 %v3319_v31  ;;  %v4175_v33 = vunpack.i.h.bf16 %v4173_v15  ;;  %v4174_v58 = vunpack.i.l.bf16 %v4173_v15 }
 0x27d   :  { %v3321_v28 = vpack.c.bf16 %v4160_v42, %v4159_v2  ;;  %v3351_v2 = vpack.c.bf16 %v3850_v26, %v3849_v55 }
 0x27e   :  { %4437 = vrot.lane.b32.xlu0 %v5928_v10, %s4607_s23  ;;  %4472 = vrot.lane.b32.xlu1 %v5927_v38, %s4608_s24  ;;  %v4168_v50 = vpop.permute.xlu0 %4167  ;;  %v3327_v29 = vpack.c.bf16 %v4175_v33, %v4174_v58 }
 0x27f   :  { %v4170_v39 = vunpack.i.h.bf16 %v4168_v50  ;;  %v4169_v1 = vunpack.i.l.bf16 %v4168_v50  ;;  %v4183_v35 = vpop.permute.xlu1 %4182  ;;  %3322 = vmatprep.subr.bf16.mxu1 %v3321_v28 }
 0x280   :  { %3324 = vmatpush3.bf16.msra.mxu1 %v3323_v13  ;;  %v4185_v3 = vunpack.i.h.bf16 %v4183_v35  ;;  %v4184_v7 = vunpack.i.l.bf16 %v4183_v35 }
 0x281   :  { %v3325_v5 = vpack.c.bf16 %v4170_v39, %v4169_v1  ;;  %v5934_v39 = vld [vmem:[#allocation7_spill] sm:$0xff] }
 0x282   :  { %4447 = vrot.lane.b32.xlu0 %v5929_v43, %s4607_s23  ;;  %4482 = vrot.lane.b32.xlu1 %v5928_v10, %s4608_s24  ;;  %v4178_v44 = vpop.permute.xlu0 %4177  ;;  %v3331_v41 = vpack.c.bf16 %v4185_v3, %v4184_v7 }
 0x283   :  { %v4180_v23 = vunpack.i.h.bf16 %v4178_v44  ;;  %v4179_v63 = vunpack.i.l.bf16 %v4178_v44  ;;  %v4193_v24 = vpop.permute.xlu1 %4192  ;;  %3326 = vmatprep.subr.bf16.mxu1 %v3325_v5 }
 0x284   :  { %3328 = vmatpush3.bf16.msra.mxu1 %v3327_v29  ;;  %v4195_v45 = vunpack.i.h.bf16 %v4193_v24  ;;  %v4194_v18 = vunpack.i.l.bf16 %v4193_v24 }
 0x285   :  { %v3329_v53 = vpack.c.bf16 %v4180_v23, %v4179_v63 }
 0x286   :  { %4457 = vrot.lane.b32.xlu0 %v5930_v20, %s4607_s23  ;;  %4492 = vrot.lane.b32.xlu1 %v5929_v43, %s4608_s24  ;;  %v4188_v11 = vpop.permute.xlu0 %4187  ;;  %v3335_v48 = vpack.c.bf16 %v4195_v45, %v4194_v18 }
 0x287   :  { %v4190_v19 = vunpack.i.h.bf16 %v4188_v11  ;;  %v4189_v54 = vunpack.i.l.bf16 %v4188_v11  ;;  %v4203_v34 = vpop.permute.xlu1 %4202  ;;  %3330 = vmatprep.subr.bf16.mxu1 %v3329_v53 }
 0x288   :  { %3332 = vmatpush3.bf16.msra.mxu1 %v3331_v41  ;;  %v4205_v62 = vunpack.i.h.bf16 %v4203_v34  ;;  %v4204_v32 = vunpack.i.l.bf16 %v4203_v34  ;;  %v5935_v34 = vld [vmem:[#allocation35_spill] sm:$0xff] }
 0x289   :  { %v3333_v27 = vpack.c.bf16 %v4190_v19, %v4189_v54 }
 0x28a   :  { %4467 = vrot.lane.b32.xlu0 %v5931_v22, %s4607_s23  ;;  %4502 = vrot.lane.b32.xlu1 %v5930_v20, %s4608_s24  ;;  %v4198_v49 = vpop.permute.xlu0 %4197  ;;  %v3339_v8 = vpack.c.bf16 %v4205_v62, %v4204_v32 }
 0x28b   :  { %v4200_v51 = vunpack.i.h.bf16 %v4198_v49  ;;  %v4199_v16 = vunpack.i.l.bf16 %v4198_v49  ;;  %v4213_v30 = vpop.permute.xlu1 %4212  ;;  %3334 = vmatprep.subr.bf16.mxu1 %v3333_v27  ;;  %v3855_v27 = vunpack.i.h.bf16 %v5935_v34 }
 0x28c   :  { %v4215_v36 = vunpack.i.h.bf16 %v4213_v30  ;;  %v4214_v31 = vunpack.i.l.bf16 %v4213_v30  ;;  %3336 = vmatpush3.bf16.msra.mxu1 %v3335_v48  ;;  %v3854_v48 = vunpack.i.l.bf16 %v5935_v34 }
 0x28d   :  { %v3337_v4 = vpack.c.bf16 %v4200_v51, %v4199_v16  ;;  %v1592_v51 = vld [vmem:[%s5856_s2 + $0x50] sm:$0xff] }
 0x28e   :  { %v3349_v38 = vpack.c.bf16 %v4215_v36, %v4214_v31  ;;  %4477 = vrot.lane.b32.xlu0 %v5933_v14, %s4607_s23  ;;  %4512 = vrot.lane.b32.xlu1 %v5931_v22, %s4608_s24  ;;  %v4208_v42 = vpop.permute.xlu0 %4207  ;;  %v3383_v16 = vpack.c.bf16 %v3855_v27, %v3854_v48 }
 0x28f   :  { %v4210_v15 = vunpack.i.h.bf16 %v4208_v42  ;;  %v4209_v28 = vunpack.i.l.bf16 %v4208_v42  ;;  %v4228_v13 = vpop.permute.xlu1 %4227  ;;  %3338 = vmatprep.subr.bf16.mxu1 %v3337_v4  ;;  %v1618_v4 = vld [vmem:[%s5856_s2 + $0x120] sm:$0x3]  ;;  %v1617_v42 = vld [vmem:[%s5856_s2 + $0x118] sm:$0x3] }
 0x290   :  { %v4230_v33 = vunpack.i.h.bf16 %v4228_v13  ;;  %v4229_v58 = vunpack.i.l.bf16 %v4228_v13  ;;  %3350 = vmatprep.subr.bf16.mxu0 %v3349_v38  ;;  %3340 = vmatpush3.bf16.msra.mxu1 %v3339_v8 }
 0x291   :  { %v3341_v10 = vpack.c.bf16 %v4210_v15, %v4209_v28  ;;  %3352 = vmatpush3.bf16.msra.mxu0 %v3351_v2 }
 0x292   :  { %v3353_v50 = vpack.c.bf16 %v4230_v33, %v4229_v58  ;;  %4487 = vrot.lane.b32.xlu0 %v5934_v39, %s4607_s23  ;;  %4522 = vrot.lane.b32.xlu1 %v5934_v39, %s4608_s24  ;;  %v4218_v1 = vpop.permute.xlu0 %4217  ;;  %v1597_v33 = vld [vmem:[%s5856_s2 + $0x78] sm:$0xff] }
 0x293   :  { %v4220_v35 = vunpack.i.h.bf16 %v4218_v1  ;;  %v4219_v5 = vunpack.i.l.bf16 %v4218_v1  ;;  %v4238_v29 = vpop.permute.xlu1 %4237  ;;  %3342 = vmatprep.subr.bf16.mxu1 %v3341_v10 }
 0x294   :  { %v4240_v3 = vunpack.i.h.bf16 %v4238_v29  ;;  %v4239_v7 = vunpack.i.l.bf16 %v4238_v29  ;;  %3354 = vmatprep.subr.bf16.mxu0 %v3353_v50 }
 0x295   :  { %v3343_v43 = vpack.c.bf16 %v4220_v35, %v4219_v5 }
 0x296   :  { %v3355_v44 = vpack.c.bf16 %v4240_v3, %v4239_v7  ;;  %4497 = vrot.lane.b32.xlu0 %v5102_v60, %s4607_s23  ;;  %4532 = vrot.lane.b32.xlu1 %v5037_v25, %s4608_s24  ;;  %v4223_v23 = vpop.permute.xlu0 %4222 }
 0x297   :  { %v4225_v63 = vunpack.i.h.bf16 %v4223_v23  ;;  %v4224_v24 = vunpack.i.l.bf16 %v4223_v23  ;;  %v4248_v53 = vpop.permute.xlu1 %4247  ;;  %3344 = vmatpush3.bf16.msra.mxu1 %v3343_v43 }
 0x298   :  { %3356 = vmatpush3.bf16.msra.mxu0 %v3355_v44  ;;  %v4250_v45 = vunpack.i.h.bf16 %v4248_v53  ;;  %v4249_v18 = vunpack.i.l.bf16 %v4248_v53 }
 0x299   :  { %v3345_v41 = vpack.c.bf16 %v4225_v63, %v4224_v24 }
 0x29a   :  { %4507 = vrot.lane.b32.xlu0 %v5037_v25, %s4607_s23  ;;  %v4233_v20 = vpop.permute.xlu0 %4232  ;;  %v3381_v32 = vpack.c.bf16 %v4250_v45, %v4249_v18 }
 0x29b   :  { %v4235_v11 = vunpack.i.h.bf16 %v4233_v20  ;;  %v4234_v19 = vunpack.i.l.bf16 %v4233_v20  ;;  %v4263_v54 = vpop.permute.xlu1 %4262  ;;  %3346 = vmatprep.subr.bf16.mxu1 %v3345_v41 }
 0x29c   :  { %v4265_v22 = vunpack.i.h.bf16 %v4263_v54  ;;  %v4264_v49 = vunpack.i.l.bf16 %v4263_v54 }
 0x29d   :  { %v3347_v62 = vpack.c.bf16 %v4235_v11, %v4234_v19 }
 0x29e   :  { %4517 = vrot.lane.b32.xlu0 %v5933_v14, %s4608_s24  ;;  %v4243_v9 = vpop.permute.xlu0 %4242  ;;  %v3385_v8 = vpack.c.bf16 %v4265_v22, %v4264_v49 }
 0x29f   :  { %v4245_v26 = vunpack.i.h.bf16 %v4243_v9  ;;  %v4244_v55 = vunpack.i.l.bf16 %v4243_v9  ;;  %v4273_v25 = vpop.permute.xlu1 %4272  ;;  %3348 = vmatpush3.bf16.msra.mxu1 %v3347_v62 }
 0x2a0   :  { %3382 = vmatprep.subr.bf16.mxu1 %v3381_v32  ;;  %v4275_v36 = vunpack.i.h.bf16 %v4273_v25  ;;  %v4274_v31 = vunpack.i.l.bf16 %v4273_v25 }
 0x2a1   :  { %v3357_v30 = vpack.c.bf16 %v4245_v26, %v4244_v55 }
 0x2a2   :  { %4527 = vrot.lane.b32.xlu0 %v5102_v60, %s4608_s24  ;;  %2079 = vmatmul.mubr.f32.vlgmr.msra.gmra.mrb[24].mxu1 %v1592_v51  ;;  %v2704_v60 = vpop.f32.mrb[16].mxu0  ;;  %v3387_v58 = vpack.c.bf16 %v4275_v36, %v4274_v31 }
 0x2a3   :  { %v4253_v38 = vpop.permute.xlu0 %4252  ;;  %v4283_v14 = vpop.permute.xlu1 %4282  ;;  %3358 = vmatprep.subr.bf16.mxu0 %v3357_v30  ;;  %3384 = vmatpush3.bf16.msra.mxu1 %v3383_v16 }
 0x2a4   :  { %v4255_v2 = vunpack.i.h.bf16 %v4253_v38  ;;  %v4254_v15 = vunpack.i.l.bf16 %v4253_v38  ;;  %v4285_v28 = vunpack.i.h.bf16 %v4283_v14  ;;  %v4284_v13 = vunpack.i.l.bf16 %v4283_v14  ;;  %3386 = vmatprep.subr.bf16.mxu1 %v3385_v8  ;;  %2083 = vmatprep.mubr.f32.mxu1 %v1618_v4  ;;  %v2705_v10 = vpop.f32.mrb[17].mxu0 }
 0x2a5   :  { %v5612_v1 = vadd.f32 %v2705_v10, %v2704_v60  ;;  %v2707_v35 = vpop.f32.mrb[18].mxu0 }
 0x2a6   :  { %v3359_v50 = vpack.c.bf16 %v4255_v2, %v4254_v15  ;;  %v3389_v39 = vpack.c.bf16 %v4285_v28, %v4284_v13  ;;  %2084 = vmatmul.mubr.f32.gmra.mrb[26].mxu1 %v1617_v42  ;;  %v2708_v29 = vpop.f32.mrb[19].mxu0 }
 0x2a7   :  { %v4258_v5 = vpop.permute.xlu0 %4257  ;;  %3388 = vmatpush3.bf16.msra.mxu1 %v3387_v58  ;;  %2228 = vmatprep.mubr.f32.mxu1 %v1597_v33  ;;  %v5614_v44 = vadd.f32 %v2708_v29, %v2707_v35 }
 0x2a8   :  { %v4260_v3 = vunpack.i.h.bf16 %v4258_v5  ;;  %v4259_v7 = vunpack.i.l.bf16 %v4258_v5  ;;  %v4293_v43 = vpop.permute.xlu1 %4292  ;;  %3360 = vmatpush3.bf16.msra.mxu0 %v3359_v50  ;;  %3390 = vmatprep.subr.bf16.mxu1 %v3389_v39 }
 0x2a9   :  { %v4295_v23 = vunpack.i.h.bf16 %v4293_v43  ;;  %v4294_v63 = vunpack.i.l.bf16 %v4293_v43 }
 0x2aa   :  { %v3361_v24 = vpack.c.bf16 %v4260_v3, %v4259_v7 }
 0x2ab   :  { %v3391_v53 = vpack.c.bf16 %v4295_v23, %v4294_v63  ;;  %v4268_v41 = vpop.permute.xlu0 %4267 }
 0x2ac   :  { %v4270_v45 = vunpack.i.h.bf16 %v4268_v41  ;;  %v4269_v18 = vunpack.i.l.bf16 %v4268_v41  ;;  %v4303_v20 = vpop.permute.xlu1 %4302  ;;  %3362 = vmatprep.subr.bf16.mxu0 %v3361_v24 }
 0x2ad   :  { %v4305_v11 = vunpack.i.h.bf16 %v4303_v20  ;;  %v4304_v19 = vunpack.i.l.bf16 %v4303_v20  ;;  %3392 = vmatpush3.bf16.msra.mxu1 %v3391_v53 }
 0x2ae   :  { %v3363_v54 = vpack.c.bf16 %v4270_v45, %v4269_v18 }
 0x2af   :  { %v3393_v34 = vpack.c.bf16 %v4305_v11, %v4304_v19  ;;  %v4278_v27 = vpop.permute.xlu0 %4277 }
 0x2b0   :  { %v4280_v48 = vunpack.i.h.bf16 %v4278_v27  ;;  %v4279_v62 = vunpack.i.l.bf16 %v4278_v27  ;;  %v4313_v32 = vpop.permute.xlu1 %4312  ;;  %3364 = vmatpush3.bf16.msra.mxu0 %v3363_v54 }
 0x2b1   :  { %v4315_v22 = vunpack.i.h.bf16 %v4313_v32  ;;  %v4314_v49 = vunpack.i.l.bf16 %v4313_v32  ;;  %3394 = vmatprep.subr.bf16.mxu1 %v3393_v34 }
 0x2b2   :  { %v3365_v9 = vpack.c.bf16 %v4280_v48, %v4279_v62 }
 0x2b3   :  { %v3395_v26 = vpack.c.bf16 %v4315_v22, %v4314_v49  ;;  %v4288_v55 = vpop.permute.xlu0 %4287 }
 0x2b4   :  { %v4290_v25 = vunpack.i.h.bf16 %v4288_v55  ;;  %v4289_v51 = vunpack.i.l.bf16 %v4288_v55  ;;  %v4323_v16 = vpop.permute.xlu1 %4322  ;;  %3366 = vmatprep.subr.bf16.mxu0 %v3365_v9 }
 0x2b5   :  { %v4325_v30 = vunpack.i.h.bf16 %v4323_v16  ;;  %v4324_v36 = vunpack.i.l.bf16 %v4323_v16  ;;  %3396 = vmatpush3.bf16.msra.mxu1 %v3395_v26 }
 0x2b6   :  { %v3367_v31 = vpack.c.bf16 %v4290_v25, %v4289_v51 }
 0x2b7   :  { %v3397_v4 = vpack.c.bf16 %v4325_v30, %v4324_v36  ;;  %v4298_v8 = vpop.permute.xlu0 %4297  ;;  %v1594_v36 = vld [vmem:[%s5856_s2 + $0x60] sm:$0xff] }
 0x2b8   :  { %v4300_v38 = vunpack.i.h.bf16 %v4298_v8  ;;  %v4299_v14 = vunpack.i.l.bf16 %v4298_v8  ;;  %v4333_v42 = vpop.permute.xlu1 %4332  ;;  %3368 = vmatpush3.bf16.msra.mxu0 %v3367_v31  ;;  %v5936_v31 = vld [vmem:[#allocation15_spill] sm:$0xff] }
 0x2b9   :  { %v4335_v2 = vunpack.i.h.bf16 %v4333_v42  ;;  %v4334_v15 = vunpack.i.l.bf16 %v4333_v42  ;;  %3398 = vmatprep.subr.bf16.mxu1 %v3397_v4 }
 0x2ba   :  { %v3369_v28 = vpack.c.bf16 %v4300_v38, %v4299_v14 }
 0x2bb   :  { %v3399_v13 = vpack.c.bf16 %v4335_v2, %v4334_v15  ;;  %v1620_v15 = vld [vmem:[%s5856_s2 + $0x130] sm:$0x3] }
 0x2bc   :  { %v4308_v33 = vpop.permute.xlu0 %4307  ;;  %v4343_v60 = vpop.permute.xlu1 %4342  ;;  %3370 = vmatprep.subr.bf16.mxu0 %v3369_v28  ;;  %v4085_v28 = vunpack.i.h.bf16 %v5457_v6 }
 0x2bd   :  { %v4310_v58 = vunpack.i.h.bf16 %v4308_v33  ;;  %v4309_v10 = vunpack.i.l.bf16 %v4308_v33  ;;  %v4345_v50 = vunpack.i.h.bf16 %v4343_v60  ;;  %v4344_v39 = vunpack.i.l.bf16 %v4343_v60  ;;  %3400 = vmatpush3.bf16.msra.mxu1 %v3399_v13 }
 0x2be   :  { %v4084_v13 = vunpack.i.l.bf16 %v5457_v6 }
 0x2bf   :  { %v3371_v35 = vpack.c.bf16 %v4310_v58, %v4309_v10  ;;  %v3401_v5 = vpack.c.bf16 %v4345_v50, %v4344_v39  ;;  %v5937_v58 = vld [vmem:[#allocation2_spill] sm:$0xff]  ;;  %v1619_v10 = vld [vmem:[%s5856_s2 + $0x128] sm:$0x3] }
 0x2c0   :  { %v4318_v29 = vpop.permute.xlu0 %4317  ;;  %v4353_v3 = vpop.permute.xlu1 %4352  ;;  %v5938_v50 = vld [vmem:[#allocation22_spill] sm:$0xff] }
 0x2c1   :  { %v4320_v7 = vunpack.i.h.bf16 %v4318_v29  ;;  %v4319_v43 = vunpack.i.l.bf16 %v4318_v29  ;;  %v4355_v23 = vunpack.i.h.bf16 %v4353_v3  ;;  %v4354_v63 = vunpack.i.l.bf16 %v4353_v3  ;;  %3372 = vmatpush3.bf16.msra.mxu0 %v3371_v35  ;;  %3402 = vmatprep.subr.bf16.mxu1 %v3401_v5  ;;  %v5939_v35 = vld [vmem:[#allocation24_spill] sm:$0xff] }
 0x2c2   :  { %v3745_v5 = vunpack.i.h.bf16 %v5939_v35  ;;  %v3744_v29 = vunpack.i.l.bf16 %v5939_v35  ;;  %v4130_v35 = vunpack.i.h.bf16 %v5515_v37 }
 0x2c3   :  { %v3373_v24 = vpack.c.bf16 %v4320_v7, %v4319_v43  ;;  %v3403_v53 = vpack.c.bf16 %v4355_v23, %v4354_v63  ;;  %v1599_v43 = vld [vmem:[%s5856_s2 + $0x88] sm:$0xff]  ;;  %v3445_v23 = vpack.c.bf16 %v4085_v28, %v4084_v13  ;;  %v4090_v63 = vunpack.i.h.bf16 %v5468_v0  ;;  %v5946_v13 = vld [vmem:[#allocation10_spill] sm:$0xff] }
 0x2c4   :  { %v4328_v41 = vpop.permute.xlu0 %4327  ;;  %v4363_v45 = vpop.permute.xlu1 %4362  ;;  %v4119_v28 = vunpack.i.l.bf16 %v5499_v12 }
 0x2c5   :  { %v4330_v18 = vunpack.i.h.bf16 %v4328_v41  ;;  %v4329_v20 = vunpack.i.l.bf16 %v4328_v41  ;;  %3374 = vmatprep.subr.bf16.mxu0 %v3373_v24  ;;  %3404 = vmatpush3.bf16.msra.mxu1 %v3403_v53  ;;  %v4365_v26 = vunpack.i.h.bf16 %v4363_v45  ;;  %v4364_v55 = vunpack.i.l.bf16 %v4363_v45  ;;  %v5940_v53 = vld [vmem:[#allocation9_spill] sm:$0xff]  ;;  %v5941_v41 = vld [vmem:[#allocation18_spill] sm:$0xff]  ;;  %v1596_v45 = vld [vmem:[%s5856_s2 + $0x70] sm:$0xff] }
 0x2c6   :  { %v4089_v24 = vunpack.i.l.bf16 %v5468_v0 }
 0x2c7   :  { %v3375_v11 = vpack.c.bf16 %v4330_v18, %v4329_v20  ;;  %v3407_v8 = vpack.c.bf16 %v4365_v26, %v4364_v55  ;;  %v3447_v18 = vpack.c.bf16 %v3745_v5, %v3744_v29  ;;  %v4095_v20 = vunpack.i.h.bf16 %v5479_v17  ;;  %v5948_v5 = vld [vmem:[#allocation16_spill] sm:$0xff]  ;;  %v5949_v29 = vld [vmem:[#allocation27_spill] sm:$0xff] }
 0x2c8   :  { %v4338_v19 = vpop.permute.xlu0 %4337  ;;  %v4378_v54 = vpop.permute.xlu1 %4377  ;;  %v4104_v26 = vunpack.i.l.bf16 %v5489_v61 }
 0x2c9   :  { %v4340_v34 = vunpack.i.h.bf16 %v4338_v19  ;;  %v4339_v27 = vunpack.i.l.bf16 %v4338_v19  ;;  %3376 = vmatpush3.bf16.msra.mxu0 %v3375_v11  ;;  %v4380_v38 = vunpack.i.h.bf16 %v4378_v54  ;;  %v4379_v14 = vunpack.i.l.bf16 %v4378_v54  ;;  %v1622_v54 = vld [vmem:[%s5856_s2 + $0x140] sm:$0x3] }
 0x2ca   :  { %v4094_v11 = vunpack.i.l.bf16 %v5479_v17  ;;  %v1621_v17 = vld [vmem:[%s5856_s2 + $0x138] sm:$0x3] }
 0x2cb   :  { %v3377_v48 = vpack.c.bf16 %v4340_v34, %v4339_v27  ;;  %v3411_v3 = vpack.c.bf16 %v4380_v38, %v4379_v14  ;;  %v3449_v34 = vpack.c.bf16 %v4090_v63, %v4089_v24  ;;  %v4100_v27 = vunpack.i.h.bf16 %v5476_v52 }
 0x2cc   :  { %v4348_v62 = vpop.permute.xlu0 %4347  ;;  %v5616_v32 = vpop.permute.xlu1 %4382  ;;  %v4114_v38 = vunpack.i.l.bf16 %v5505_v21  ;;  %v4144_v63 = vunpack.i.l.bf16 %v5550_v56 }
 0x2cd   :  { %v4350_v22 = vunpack.i.h.bf16 %v4348_v62  ;;  %v4349_v49 = vunpack.i.l.bf16 %v4348_v62  ;;  %3378 = vmatprep.subr.bf16.mxu0 %v3377_v48  ;;  %v4099_v48 = vunpack.i.l.bf16 %v5476_v52  ;;  %v5942_v62 = vld [vmem:[#allocation6_spill] sm:$0xff] }
 0x2cf   :  { %v3379_v9 = vpack.c.bf16 %v4350_v22, %v4349_v49  ;;  %v5943_v22 = vld [vmem:[#allocation26_spill] sm:$0xff]  ;;  %v3451_v49 = vpack.c.bf16 %v4095_v20, %v4094_v11  ;;  %v5951_v20 = vld [vmem:[#allocation28_spill] sm:$0xff] }
 0x2d0   :  { %v4358_v25 = vpop.permute.xlu0 %4357  ;;  %v5618_v51 = vpop.permute.xlu1 %4392  ;;  %v3750_v11 = vunpack.i.h.bf16 %v5951_v20 }
 0x2d1   :  { %v4360_v16 = vunpack.i.h.bf16 %v4358_v25  ;;  %v4359_v30 = vunpack.i.l.bf16 %v4358_v25  ;;  %3380 = vmatpush3.bf16.msra.mxu0 %v3379_v9  ;;  %v4105_v9 = vunpack.i.h.bf16 %v5489_v61  ;;  %v1601_v25 = vld [vmem:[%s5856_s2 + $0x98] sm:$0xff] }
 0x2d2   :  { %3414 = vmatprep.subr.bf16.mxu0 %v5936_v31  ;;  %v5944_v31 = vld [vmem:[#allocation12_spill] sm:$0xff] }
 0x2d3   :  { %v3405_v4 = vpack.c.bf16 %v4360_v16, %v4359_v30  ;;  %v3453_v16 = vpack.c.bf16 %v4100_v27, %v4099_v48  ;;  %v4110_v30 = vunpack.i.h.bf16 %v5486_v57  ;;  %v3455_v61 = vpack.c.bf16 %v4105_v9, %v4104_v26 }
 0x2d4   :  { %v4368_v42 = vpop.permute.xlu0 %4367  ;;  %v5624_v2 = vpop.permute.xlu1 %4402  ;;  %2154 = vmatmul.mubr.f32.vlgmr.msra.gmra.mrb[28].mxu0 %v1594_v36  ;;  %v4109_v36 = vunpack.i.l.bf16 %v5486_v57  ;;  %v4120_v57 = vunpack.i.h.bf16 %v5499_v12  ;;  %v4129_v12 = vunpack.i.l.bf16 %v5515_v37  ;;  %v4385_v27 = vunpack.i.h.bf16 %v5616_v32 }
 0x2d5   :  { %v4370_v33 = vunpack.i.h.bf16 %v4368_v42  ;;  %v4369_v60 = vunpack.i.l.bf16 %v4368_v42  ;;  %3406 = vmatprep.subr.bf16.mxu1 %v3405_v4  ;;  %3416 = vmatpush3.bf16.msra.mxu0 %v5937_v58  ;;  %v5945_v4 = vld [vmem:[#allocation23_spill] sm:$0xff]  ;;  %v4124_v58 = vunpack.i.l.bf16 %v5521_v59  ;;  %v4384_v48 = vunpack.i.l.bf16 %v5616_v32 }
 0x2d6   :  { %3408 = vmatpush3.bf16.msra.mxu1 %v3407_v8  ;;  %3418 = vmatprep.subr.bf16.mxu0 %v5938_v50  ;;  %v4115_v8 = vunpack.i.h.bf16 %v5505_v21  ;;  %v3465_v37 = vpack.c.bf16 %v4130_v35, %v4129_v12  ;;  %v4395_v32 = vunpack.i.h.bf16 %v5618_v51 }
 0x2d7   :  { %v3409_v39 = vpack.c.bf16 %v4370_v33, %v4369_v60  ;;  %2158 = vmatprep.mubr.f32.mxu0 %v1620_v15  ;;  %v3457_v15 = vpack.c.bf16 %v4110_v30, %v4109_v36  ;;  %v5947_v33 = vld [vmem:[#allocation29_spill] sm:$0xff]  ;;  %v4125_v60 = vunpack.i.h.bf16 %v5521_v59  ;;  %v4135_v59 = vunpack.i.h.bf16 %v5536_v47  ;;  %v1624_v30 = vld [vmem:[%s5856_s2 + $0x150] sm:$0x3] }
 0x2d8   :  { %v5638_v6 = vpop.permute.xlu0 %4372  ;;  %v5640_v7 = vpop.permute.xlu1 %4412  ;;  %2159 = vmatmul.mubr.f32.gmra.mrb[30].mxu0 %v1619_v10  ;;  %v3459_v21 = vpack.c.bf16 %v4115_v8, %v4114_v38 }
 0x2d9   :  { %3410 = vmatprep.subr.bf16.mxu1 %v3409_v39  ;;  %3420 = vmatpush3.bf16.msra.mxu0 %v5940_v53  ;;  %v3461_v39 = vpack.c.bf16 %v4120_v57, %v4119_v28  ;;  %v4375_v9 = vunpack.i.h.bf16 %v5638_v6  ;;  %v4374_v26 = vunpack.i.l.bf16 %v5638_v6  ;;  %v4405_v57 = vunpack.i.h.bf16 %v5624_v2 }
 0x2da   :  { %3412 = vmatpush3.bf16.msra.mxu1 %v3411_v3  ;;  %3422 = vmatprep.subr.bf16.mxu0 %v5941_v41  ;;  %v3463_v3 = vpack.c.bf16 %v4125_v60, %v4124_v58  ;;  %v4140_v41 = vunpack.i.h.bf16 %v5531_v46  ;;  %v4404_v28 = vunpack.i.l.bf16 %v5624_v2  ;;  %v4415_v60 = vunpack.i.h.bf16 %v5640_v7 }
 0x2db   :  { %3446 = vmatprep.subr.bf16.mxu1 %v3445_v23  ;;  %2303 = vmatprep.mubr.f32.mxu0 %v1599_v43  ;;  %v4134_v43 = vunpack.i.l.bf16 %v5536_v47  ;;  %v4145_v23 = vunpack.i.h.bf16 %v5550_v56  ;;  %v5952_v47 = vld [vmem:[#allocation30_spill] sm:$0xff]  ;;  %v4150_v56 = vunpack.i.h.bf16 %v5545_v40  ;;  %v4414_v58 = vunpack.i.l.bf16 %v5640_v7 }
 0x2dc   :  { %v5654_v19 = vpop.permute.xlu0 %4387  ;;  %v5656_v0 = vpop.permute.xlu1 %4422 }
 0x2dd   :  { %2229 = vmatmul.mubr.f32.vlgmr.msra.gmra.mrb[28].mxu1 %v1596_v45  ;;  %3424 = vmatpush3.bf16.msra.mxu0 %v5942_v62  ;;  %v4139_v45 = vunpack.i.l.bf16 %v5531_v46  ;;  %v3467_v62 = vpack.c.bf16 %v4135_v59, %v4134_v43  ;;  %v3477_v46 = vpack.c.bf16 %v4145_v23, %v4144_v63  ;;  %v4390_v6 = vunpack.i.h.bf16 %v5654_v19  ;;  %v1580_v63 = vld [vmem:[%s5857_s3] sm:$0xff] }
 0x2de   :  { %3426 = vmatprep.subr.bf16.mxu0 %v5943_v22  ;;  %3448 = vmatpush3.bf16.msra.mxu1 %v3447_v18  ;;  %v5950_v18 = vld [vmem:[#allocation13_spill] sm:$0xff]  ;;  %v4425_v59 = vunpack.i.h.bf16 %v5656_v0  ;;  %v4424_v43 = vunpack.i.l.bf16 %v5656_v0  ;;  %v1581_v0 = vld [vmem:[%s5857_s3 + $0x8] sm:$0x3] }
 0x2df   :  { %3450 = vmatprep.subr.bf16.mxu1 %v3449_v34  ;;  %2233 = vmatprep.mubr.f32.mxu1 %v1622_v54  ;;  %v3749_v54 = vunpack.i.l.bf16 %v5951_v20  ;;  %v4149_v34 = vunpack.i.l.bf16 %v5545_v40  ;;  %v1598_v40 = vld [vmem:[%s5856_s2 + $0x80] sm:$0xff] }
 0x2e0   :  { %v5670_v55 = vpop.permute.xlu0 %4397  ;;  %v5672_v52 = vpop.permute.xlu1 %4432  ;;  %2616 = vperm.xlu0 %4536, %v1580_v63   ;;  %2621 = vperm.xlu1 %4537, %v1581_v0  }
 0x2e1   :  { %2234 = vmatmul.mubr.f32.gmra.mrb[30].mxu1 %v1621_v17  ;;  %3428 = vmatpush3.bf16.msra.mxu0 %v5944_v31  ;;  %v3479_v36 = vpack.c.bf16 %v3750_v11, %v3749_v54  ;;  %v3471_v31 = vpack.c.bf16 %v4150_v56, %v4149_v34  ;;  %v4400_v8 = vunpack.i.h.bf16 %v5670_v55  ;;  %v4399_v38 = vunpack.i.l.bf16 %v5670_v55  ;;  %v1603_v55 = vld [vmem:[%s5856_s2 + $0xa8] sm:$0xff] }
 0x2e2   :  { %3430 = vmatprep.subr.bf16.mxu0 %v5945_v4  ;;  %3452 = vmatpush3.bf16.msra.mxu1 %v3451_v49  ;;  %v3469_v49 = vpack.c.bf16 %v4140_v41, %v4139_v45  ;;  %v3481_v4 = vpack.c.bf16 %v4385_v27, %v4384_v48  ;;  %v4434_v23 = vunpack.i.l.bf16 %v5672_v52  ;;  %v3513_v56 = vpack.c.bf16 %v4425_v59, %v4424_v43  ;;  %v1625_v48 = vld [vmem:[%s5856_s2 + $0x158] sm:$0x3] }
 0x2e3   :  { %3454 = vmatprep.subr.bf16.mxu1 %v3453_v16  ;;  %2378 = vmatprep.mubr.f32.mxu1 %v1601_v25  ;;  %v5953_v25 = vld [vmem:[#allocation19_spill] sm:$0xff]  ;;  %v4394_v16 = vunpack.i.l.bf16 %v5618_v51  ;;  %v3485_v35 = vpack.c.bf16 %v4400_v8, %v4399_v38 }
 0x2e4   :  { %v5683_v14 = vpop.permute.xlu0 %4407  ;;  %v5685_v42 = vpop.permute.xlu1 %4442 }
 0x2e5   :  { %3432 = vmatpush3.bf16.msra.mxu0 %v5946_v13  ;;  %v3473_v13 = vpack.c.bf16 %v4375_v9, %v4374_v26  ;;  %v4410_v2 = vunpack.i.h.bf16 %v5683_v14  ;;  %v4445_v34 = vunpack.i.h.bf16 %v5685_v42  ;;  %v4444_v27 = vunpack.i.l.bf16 %v5685_v42 }
 0x2e6   :  { %3434 = vmatprep.subr.bf16.mxu0 %v5947_v33  ;;  %3456 = vmatpush3.bf16.msra.mxu1 %v3455_v61  ;;  %v4389_v61 = vunpack.i.l.bf16 %v5654_v19  ;;  %v1623_v19 = vld [vmem:[%s5856_s2 + $0x148] sm:$0x3]  ;;  %v3483_v33 = vpack.c.bf16 %v4395_v32, %v4394_v16  ;;  %v1605_v16 = vld [vmem:[%s5856_s2 + $0xb8] sm:$0xff] }
 0x2e7   :  { %3458 = vmatprep.subr.bf16.mxu1 %v3457_v15 }
 0x2e8   :  { %v5693_v10 = vpop.permute.xlu0 %4417  ;;  %v5695_v50 = vpop.permute.xlu1 %4452 }
 0x2e9   :  { %3436 = vmatpush3.bf16.msra.mxu0 %v5948_v5  ;;  %v4420_v12 = vunpack.i.h.bf16 %v5693_v10  ;;  %v4419_v5 = vunpack.i.l.bf16 %v5693_v10  ;;  %v1600_v10 = vld [vmem:[%s5856_s2 + $0x90] sm:$0xff]  ;;  %v4454_v42 = vunpack.i.l.bf16 %v5695_v50 }
 0x2ea   :  { %3438 = vmatprep.subr.bf16.mxu0 %v5949_v29  ;;  %3460 = vmatpush3.bf16.msra.mxu1 %v3459_v21  ;;  %v4409_v21 = vunpack.i.l.bf16 %v5683_v14  ;;  %v4435_v14 = vunpack.i.h.bf16 %v5672_v52  ;;  %v3511_v52 = vpack.c.bf16 %v4415_v60, %v4414_v58 }
 0x2eb   :  { %3462 = vmatprep.subr.bf16.mxu1 %v3461_v39  ;;  %v3475_v39 = vpack.c.bf16 %v4390_v6, %v4389_v61 }
 0x2ec   :  { %v5705_v24 = vpop.permute.xlu0 %4427  ;;  %v5707_v53 = vpop.permute.xlu1 %4462 }
 0x2ed   :  { %3440 = vmatpush3.bf16.msra.mxu0 %v5950_v18  ;;  %v4430_v41 = vunpack.i.h.bf16 %v5705_v24  ;;  %v4429_v45 = vunpack.i.l.bf16 %v5705_v24  ;;  %v3489_v18 = vpack.c.bf16 %v4420_v12, %v4419_v5  ;;  %v3515_v24 = vpack.c.bf16 %v4435_v14, %v4434_v23 }
 0x2ee   :  { %3442 = vmatprep.subr.bf16.mxu0 %v5952_v47  ;;  %3464 = vmatpush3.bf16.msra.mxu1 %v3463_v3  ;;  %v3509_v3 = vpack.c.bf16 %v4405_v57, %v4404_v28  ;;  %v1626_v47 = vld [vmem:[%s5856_s2 + $0x160] sm:$0x3] }
 0x2ef   :  { %3466 = vmatprep.subr.bf16.mxu1 %v3465_v37  ;;  %v3487_v37 = vpack.c.bf16 %v4410_v2, %v4409_v21 }
 0x2f0   :  { %v5719_v22 = vpop.permute.xlu0 %4437  ;;  %v5721_v17 = vpop.permute.xlu1 %4472 }
 0x2f1   :  { %3444 = vmatpush3.bf16.msra.mxu0 %v5953_v25  ;;  %v4440_v20 = vunpack.i.h.bf16 %v5719_v22  ;;  %v4439_v11 = vunpack.i.l.bf16 %v5719_v22 }
 0x2f2   :  { %3468 = vmatpush3.bf16.msra.mxu1 %v3467_v62  ;;  %3478 = vmatprep.subr.bf16.mxu0 %v3477_v46  ;;  %v4455_v62 = vunpack.i.h.bf16 %v5695_v50  ;;  %v3491_v46 = vpack.c.bf16 %v4430_v41, %v4429_v45  ;;  %v4474_v50 = vunpack.i.l.bf16 %v5721_v17 }
 0x2f3   :  { %3470 = vmatprep.subr.bf16.mxu1 %v3469_v49  ;;  %v3493_v26 = vpack.c.bf16 %v4440_v20, %v4439_v11 }
 0x2f4   :  { %v5738_v15 = vpop.permute.xlu0 %4447  ;;  %v5740_v51 = vpop.permute.xlu1 %4482  ;;  %2304 = vmatmul.mubr.f32.vlgmr.msra.gmra.mrb[32].mxu0 %v1598_v40  ;;  %v3519_v57 = vpack.c.bf16 %v4455_v62, %v4454_v42 }
 0x2f5   :  { %3480 = vmatpush3.bf16.msra.mxu0 %v3479_v36  ;;  %2308 = vmatprep.mubr.f32.mxu0 %v1624_v30  ;;  %v4450_v22 = vunpack.i.h.bf16 %v5738_v15  ;;  %v4449_v49 = vunpack.i.l.bf16 %v5738_v15  ;;  %v3517_v30 = vpack.c.bf16 %v4445_v34, %v4444_v27  ;;  %v4465_v36 = vunpack.i.h.bf16 %v5707_v53  ;;  %v5954_v34 = vld [vmem:[#allocation31_spill] sm:$0xff] }
 0x2f6   :  { %3472 = vmatpush3.bf16.msra.mxu1 %v3471_v31  ;;  %3482 = vmatprep.subr.bf16.mxu0 %v3481_v4  ;;  %v4464_v31 = vunpack.i.l.bf16 %v5707_v53  ;;  %v4475_v4 = vunpack.i.h.bf16 %v5721_v17  ;;  %v4485_v6 = vunpack.i.h.bf16 %v5740_v51  ;;  %v4484_v8 = vunpack.i.l.bf16 %v5740_v51 }
 0x2f7   :  { %3474 = vmatprep.subr.bf16.mxu1 %v3473_v13  ;;  %v3495_v61 = vpack.c.bf16 %v4450_v22, %v4449_v49  ;;  %v3830_v27 = vunpack.i.h.bf16 %v5954_v34 }
 0x2f8   :  { %v5756_v29 = vpop.permute.xlu0 %4457  ;;  %2309 = vmatmul.mubr.f32.gmra.mrb[34].mxu0 %v1623_v19  ;;  %v5760_v7 = vpop.permute.xlu1 %4492  ;;  %v3523_v17 = vpack.c.bf16 %v4475_v4, %v4474_v50  ;;  %v3525_v58 = vpack.c.bf16 %v4485_v6, %v4484_v8 }
 0x2f9   :  { %3484 = vmatpush3.bf16.msra.mxu0 %v3483_v33  ;;  %2453 = vmatprep.mubr.f32.mxu0 %v1603_v55  ;;  %v4460_v25 = vunpack.i.h.bf16 %v5756_v29  ;;  %v4459_v40 = vunpack.i.l.bf16 %v5756_v29  ;;  %v3521_v33 = vpack.c.bf16 %v4465_v36, %v4464_v31  ;;  %v4494_v12 = vunpack.i.l.bf16 %v5760_v7 }
 0x2fa   :  { %3476 = vmatpush3.bf16.msra.mxu1 %v3475_v39  ;;  %3486 = vmatprep.subr.bf16.mxu0 %v3485_v35  ;;  %v4495_v35 = vunpack.i.h.bf16 %v5760_v7 }
 0x2fb   :  { %3510 = vmatprep.subr.bf16.mxu1 %v3509_v3  ;;  %v3497_v28 = vpack.c.bf16 %v4460_v25, %v4459_v40  ;;  %v1602_v25 = vld [vmem:[%s5856_s2 + $0xa0] sm:$0xff]  ;;  %v5956_v40 = vld [vmem:[#allocation36_spill] sm:$0xff] }
 0x2fc   :  { %v4468_v54 = vpop.permute.xlu0 %4467  ;;  %v5788_v9 = vpop.permute.xlu1 %4502  ;;  %v3527_v45 = vpack.c.bf16 %v4495_v35, %v4494_v12  ;;  %v3834_v36 = vunpack.i.l.bf16 %v5956_v40 }
 0x2fd   :  { %2379 = vmatmul.mubr.f32.vlgmr.msra.gmra.mrb[32].mxu1 %v1600_v10  ;;  %3488 = vmatpush3.bf16.msra.mxu0 %v3487_v37  ;;  %v4470_v38 = vunpack.i.h.bf16 %v4468_v54  ;;  %v4469_v15 = vunpack.i.l.bf16 %v4468_v54  ;;  %v4505_v59 = vunpack.i.h.bf16 %v5788_v9  ;;  %v4504_v43 = vunpack.i.l.bf16 %v5788_v9 }
 0x2fe   :  { %3490 = vmatprep.subr.bf16.mxu0 %v3489_v18  ;;  %3512 = vmatpush3.bf16.msra.mxu1 %v3511_v52 }
 0x2ff   :  { %3514 = vmatprep.subr.bf16.mxu1 %v3513_v56  ;;  %2383 = vmatprep.mubr.f32.mxu1 %v1626_v47  ;;  %v3499_v2 = vpack.c.bf16 %v4470_v38, %v4469_v15  ;;  %v3529_v54 = vpack.c.bf16 %v4505_v59, %v4504_v43  ;;  %v1627_v15 = vld [vmem:[%s5856_s2 + $0x168] sm:$0x3] }
 0x300   :  { %v4478_v32 = vpop.permute.xlu0 %4477  ;;  %v4513_v55 = vpop.permute.xlu1 %4512 }
 0x301   :  { %2384 = vmatmul.mubr.f32.gmra.mrb[34].mxu1 %v1625_v48  ;;  %3492 = vmatpush3.bf16.msra.mxu0 %v3491_v46  ;;  %v4480_v53 = vunpack.i.h.bf16 %v4478_v32  ;;  %v4479_v13 = vunpack.i.l.bf16 %v4478_v32  ;;  %v4515_v52 = vunpack.i.h.bf16 %v4513_v55  ;;  %v4514_v18 = vunpack.i.l.bf16 %v4513_v55  ;;  %v1606_v55 = vld [vmem:[%s5856_s2 + $0xc0] sm:$0xff] }
 0x302   :  { %3494 = vmatprep.subr.bf16.mxu0 %v3493_v26  ;;  %3516 = vmatpush3.bf16.msra.mxu1 %v3515_v24  ;;  %v3829_v24 = vunpack.i.l.bf16 %v5954_v34  ;;  %v3835_v32 = vunpack.i.h.bf16 %v5956_v40 }
 0x303   :  { %3518 = vmatprep.subr.bf16.mxu1 %v3517_v30  ;;  %2528 = vmatprep.mubr.f32.mxu1 %v1605_v16  ;;  %v3501_v5 = vpack.c.bf16 %v4480_v53, %v4479_v13  ;;  %v3531_v62 = vpack.c.bf16 %v4515_v52, %v4514_v18 }
 0x304   :  { %v4488_v19 = vpop.permute.xlu0 %4487  ;;  %v4523_v37 = vpop.permute.xlu1 %4522  ;;  %v3545_v30 = vpack.c.bf16 %v3830_v27, %v3829_v24 }
 0x305   :  { %3496 = vmatpush3.bf16.msra.mxu0 %v3495_v61  ;;  %v4490_v21 = vunpack.i.h.bf16 %v4488_v19  ;;  %v4489_v51 = vunpack.i.l.bf16 %v4488_v19  ;;  %v4525_v46 = vunpack.i.h.bf16 %v4523_v37  ;;  %v4524_v22 = vunpack.i.l.bf16 %v4523_v37  ;;  %v1628_v61 = vld [vmem:[%s5856_s2 + $0x170] sm:$0x3] }
 0x306   :  { %3498 = vmatprep.subr.bf16.mxu0 %v3497_v28  ;;  %3520 = vmatpush3.bf16.msra.mxu1 %v3519_v57  ;;  %v2742_v60 = vpop.f32.mrb[16].mxu1  ;;  %v5957_v57 = vld [vmem:[#allocation32_spill] sm:$0xff] }
 0x307   :  { %3522 = vmatprep.subr.bf16.mxu1 %v3521_v33  ;;  %v2743_v39 = vpop.f32.mrb[17].mxu1  ;;  %v3503_v0 = vpack.c.bf16 %v4490_v21, %v4489_v51  ;;  %v3535_v31 = vpack.c.bf16 %v4525_v46, %v4524_v22  ;;  %v3840_v28 = vunpack.i.h.bf16 %v5957_v57  ;;  %v3839_v13 = vunpack.i.l.bf16 %v5957_v57  ;;  %v1631_v21 = vld [vmem:[%s5856_s2 + $0x188] sm:$0x3] }
 0x308   :  { %v4498_v29 = vpop.permute.xlu0 %4497  ;;  %v2744_v3 = vadd.f32 %v2743_v39, %v2742_v60  ;;  %v4533_v9 = vpop.permute.xlu1 %4532  ;;  %v3549_v33 = vpack.c.bf16 %v3835_v32, %v3834_v36  ;;  %v1630_v60 = vld [vmem:[%s5856_s2 + $0x180] sm:$0x3] }
 0x309   :  { %v4500_v14 = vunpack.i.h.bf16 %v4498_v29  ;;  %v4499_v23 = vunpack.i.l.bf16 %v4498_v29  ;;  %3500 = vmatpush3.bf16.msra.mxu0 %v3499_v2  ;;  %v4535_v4 = vunpack.i.h.bf16 %v4533_v9  ;;  %v4534_v50 = vunpack.i.l.bf16 %v4533_v9  ;;  %v1629_v2 = vld [vmem:[%s5856_s2 + $0x178] sm:$0x3] }
 0x30a   :  { %3502 = vmatprep.subr.bf16.mxu0 %v3501_v5  ;;  %3524 = vmatpush3.bf16.msra.mxu1 %v3523_v17  ;;  %v5807_v10 = vadd.f32 %v2744_v3, %v5612_v1  ;;  %v2745_v63 = vpop.f32.mrb[18].mxu1  ;;  %v1604_v17 = vld [vmem:[%s5856_s2 + $0xb0] sm:$0xff] }
 0x30b   :  { %v3505_v41 = vpack.c.bf16 %v4500_v14, %v4499_v23  ;;  %3526 = vmatprep.subr.bf16.mxu1 %v3525_v58  ;;  %v2746_v7 = vpop.f32.mrb[19].mxu1  ;;  %v3539_v19 = vpack.c.bf16 %v4535_v4, %v4534_v50  ;;  %v3553_v58 = vpack.c.bf16 %v3840_v28, %v3839_v13 }
 0x30c   :  { %v4508_v20 = vpop.permute.xlu0 %4507  ;;  %v2747_v11 = vadd.f32 %v2746_v7, %v2745_v63 }
 0x30d   :  { %v4510_v47 = vunpack.i.h.bf16 %v4508_v20  ;;  %v4509_v56 = vunpack.i.l.bf16 %v4508_v20  ;;  %3504 = vmatpush3.bf16.msra.mxu0 %v3503_v0 }
 0x30e   :  { %3506 = vmatprep.subr.bf16.mxu0 %v3505_v41  ;;  %3528 = vmatpush3.bf16.msra.mxu1 %v3527_v45  ;;  %v5810_v1 = vadd.f32 %v2747_v11, %v5614_v44  ;;  %v5955_v44 = vld [vmem:[#allocation3_spill] sm:$0xff] }
 0x30f   :  { %v3507_v48 = vpack.c.bf16 %v4510_v47, %v4509_v56  ;;  %3530 = vmatprep.subr.bf16.mxu1 %v3529_v54 }
 0x310   :  { %v4518_v49 = vpop.permute.xlu0 %4517 }
 0x311   :  { %v4520_v42 = vunpack.i.h.bf16 %v4518_v49  ;;  %v4519_v26 = vunpack.i.l.bf16 %v4518_v49  ;;  %3508 = vmatpush3.bf16.msra.mxu0 %v3507_v48 }
 0x312   :  { %3532 = vmatpush3.bf16.msra.mxu1 %v3531_v62  ;;  %3542 = vmatprep.subr.bf16.mxu0 %v5955_v44 }
 0x313   :  { %v3533_v16 = vpack.c.bf16 %v4520_v42, %v4519_v26 }
 0x314   :  { %v4528_v6 = vpop.permute.xlu0 %4527  ;;  %2454 = vmatmul.mubr.f32.vlgmr.msra.gmra.mrb[36].mxu0 %v1602_v25 }
 0x315   :  { %v4530_v8 = vunpack.i.h.bf16 %v4528_v6  ;;  %v4529_v38 = vunpack.i.l.bf16 %v4528_v6  ;;  %3534 = vmatprep.subr.bf16.mxu1 %v3533_v16  ;;  %3544 = vmatpush3.bf16.msra.mxu0 %v5955_v44 }
 0x316   :  { %3536 = vmatpush3.bf16.msra.mxu1 %v3535_v31  ;;  %3546 = vmatprep.subr.bf16.mxu0 %v3545_v30 }
 0x317   :  { %v3537_v53 = vpack.c.bf16 %v4530_v8, %v4529_v38  ;;  %2458 = vmatprep.mubr.f32.mxu0 %v1628_v61 }
 0x318   :  { %2459 = vmatmul.mubr.f32.gmra.mrb[38].mxu0 %v1627_v15 }
 0x319   :  { %3538 = vmatprep.subr.bf16.mxu1 %v3537_v53  ;;  %3548 = vmatpush3.bf16.msra.mxu0 %v3545_v30 }
 0x31a   :  { %3540 = vmatpush3.bf16.msra.mxu1 %v3539_v19  ;;  %3550 = vmatprep.subr.bf16.mxu0 %v3549_v33 }
 0x31b   :  { %3154 = vmatprep.mubr.msk.f32.mxu0 %vm1632_vm0, %v1606_v55 }
 0x31d   :  { %2529 = vmatmul.mubr.f32.vlgmr.msra.gmra.mrb[36].mxu1 %v1604_v17  ;;  %3552 = vmatpush3.bf16.msra.mxu0 %v3549_v33 }
 0x31e   :  { %3554 = vmatprep.subr.bf16.mxu0 %v3553_v58  ;;  %2533 = vmatprep.mubr.f32.mxu1 %v1630_v60 }
 0x321   :  { %2534 = vmatmul.mubr.f32.gmra.mrb[38].mxu1 %v1629_v2  ;;  %3556 = vmatpush3.bf16.msra.mxu0 %v3553_v58 }
 0x323   :  { %v2780_v51 = vpop.f32.mrb[20].mxu0 }
 0x324   :  { %3155 = vmatmul.mubr.msk.f32.vlgmr.msra.gmra.mrb[40].mxu0 %vm1632_vm0, %v1631_v21  ;;  %v2781_v39 = vpop.f32.mrb[21].mxu0 }
 0x325   :  { %v2782_v35 = vadd.f32 %v2781_v39, %v2780_v51 }
 0x327   :  { %v1856_v12 = vadd.f32 %v2782_v35, %v5807_v10 }
 0x32b   :  { %v2783_v5 = vpop.f32.mrb[22].mxu0 }
 0x32c   :  { %v2784_v29 = vpop.f32.mrb[23].mxu0 }
 0x32d   :  { %v2785_v3 = vadd.f32 %v2784_v29, %v2783_v5 }
 0x32f   :  { %v1861_v59 = vadd.f32 %v2785_v3, %v5810_v1 }
 0x33b   :  { %v2818_v43 = vpop.f32.mrb[20].mxu1 }
 0x33c   :  { %v2819_v14 = vpop.f32.mrb[21].mxu1 }
 0x33d   :  { %v2820_v23 = vadd.f32 %v2819_v14, %v2818_v43 }
 0x33f   :  { %v1931_v63 = vadd.f32 %v2820_v23, %v1856_v12  ;;  %v2821_v0 = vpop.f32.mrb[22].mxu1 }
 0x340   :  { %v2822_v37 = vpop.f32.mrb[23].mxu1 }
 0x341   :  { %v2823_v41 = vadd.f32 %v2822_v37, %v2821_v0 }
 0x343   :  { %v2856_v7 = vpop.f32.mrb[24].mxu0  ;;  %v1936_v45 = vadd.f32 %v2823_v41, %v1861_v59 }
 0x344   :  { %v2857_v52 = vpop.f32.mrb[25].mxu0 }
 0x345   :  { %v2858_v18 = vadd.f32 %v2857_v52, %v2856_v7 }
 0x347   :  { %v2006_v20 = vadd.f32 %v2858_v18, %v1931_v63  ;;  %v2859_v11 = vpop.f32.mrb[26].mxu0 }
 0x348   :  { %v2860_v54 = vpop.f32.mrb[27].mxu0 }
 0x349   :  { %v2861_v10 = vadd.f32 %v2860_v54, %v2859_v11 }
 0x34b   :  { %v2011_v47 = vadd.f32 %v2861_v10, %v1936_v45 }
 0x35f   :  { %v2617_v18 = vpop.permute.xlu0 %2616  ;;  %v2622_v11 = vpop.permute.xlu1 %2621 }
 0x375   :  { %v2894_v56 = vpop.f32.mrb[24].mxu1 }
 0x376   :  { %v2895_v34 = vpop.f32.mrb[25].mxu1 }
 0x377   :  { %v2896_v27 = vadd.f32 %v2895_v34, %v2894_v56 }
 0x379   :  { %v2081_v1 = vadd.f32 %v2896_v27, %v2006_v20  ;;  %v2897_v24 = vpop.f32.mrb[26].mxu1 }
 0x37a   :  { %v2898_v48 = vpop.f32.mrb[27].mxu1 }
 0x37b   :  { %v2899_v62 = vadd.f32 %v2898_v48, %v2897_v24 }
 0x37d   :  { %v2086_v46 = vadd.f32 %v2899_v62, %v2011_v47 }
 0x3a7   :  { %v2932_v22 = vpop.f32.mrb[28].mxu0 }
 0x3a8   :  { %v2933_v49 = vpop.f32.mrb[29].mxu0 }
 0x3a9   :  { %v2934_v9 = vadd.f32 %v2933_v49, %v2932_v22 }
 0x3ab   :  { %v2156_v42 = vadd.f32 %v2934_v9, %v2081_v1  ;;  %v2935_v26 = vpop.f32.mrb[30].mxu0 }
 0x3ac   :  { %v2936_v25 = vpop.f32.mrb[31].mxu0 }
 0x3ad   :  { %v2937_v44 = vadd.f32 %v2936_v25, %v2935_v26 }
 0x3af   :  { %v2161_v40 = vadd.f32 %v2937_v44, %v2086_v46 }
 0x3b0   :  { %v2970_v32 = vpop.f32.mrb[28].mxu1 }
 0x3b1   :  { %v2971_v16 = vpop.f32.mrb[29].mxu1 }
 0x3b2   :  { %v2972_v30 = vadd.f32 %v2971_v16, %v2970_v32 }
 0x3b4   :  { %v2231_v36 = vadd.f32 %v2972_v30, %v2156_v42  ;;  %v2973_v31 = vpop.f32.mrb[30].mxu1 }
 0x3b5   :  { %v2974_v4 = vpop.f32.mrb[31].mxu1 }
 0x3b6   :  { %v2975_v50 = vadd.f32 %v2974_v4, %v2973_v31 }
 0x3b8   :  { %v2236_v6 = vadd.f32 %v2975_v50, %v2161_v40 }
 0x3c7   :  { %v3008_v61 = vpop.f32.mrb[32].mxu0 }
 0x3c8   :  { %v3009_v8 = vpop.f32.mrb[33].mxu0 }
 0x3c9   :  { %v3010_v38 = vadd.f32 %v3009_v8, %v3008_v61 }
 0x3cb   :  { %v2306_v15 = vadd.f32 %v3010_v38, %v2231_v36  ;;  %v3011_v57 = vpop.f32.mrb[34].mxu0 }
 0x3cc   :  { %v3012_v28 = vpop.f32.mrb[35].mxu0 }
 0x3cd   :  { %v3013_v53 = vadd.f32 %v3012_v28, %v3011_v57 }
 0x3cf   :  { %v2311_v13 = vadd.f32 %v3013_v53, %v2236_v6 }
 0x3d0   :  { %v3046_v19 = vpop.f32.mrb[32].mxu1 }
 0x3d1   :  { %v3047_v33 = vpop.f32.mrb[33].mxu1 }
 0x3d2   :  { %v3048_v55 = vadd.f32 %v3047_v33, %v3046_v19 }
 0x3d4   :  { %v2381_v17 = vadd.f32 %v3048_v55, %v2306_v15  ;;  %v3049_v60 = vpop.f32.mrb[34].mxu1 }
 0x3d5   :  { %v3050_v58 = vpop.f32.mrb[35].mxu1 }
 0x3d6   :  { %v3051_v2 = vadd.f32 %v3050_v58, %v3049_v60 }
 0x3d8   :  { %v2386_v21 = vadd.f32 %v3051_v2, %v2311_v13 }
 0x3e7   :  { %v3084_v51 = vpop.f32.mrb[36].mxu0 }
 0x3e8   :  { %v3085_v39 = vpop.f32.mrb[37].mxu0 }
 0x3e9   :  { %v3086_v35 = vadd.f32 %v3085_v39, %v3084_v51 }
 0x3eb   :  { %v2456_v12 = vadd.f32 %v3086_v35, %v2381_v17  ;;  %v3087_v5 = vpop.f32.mrb[38].mxu0 }
 0x3ec   :  { %v3088_v29 = vpop.f32.mrb[39].mxu0 }
 0x3ed   :  { %v3089_v3 = vadd.f32 %v3088_v29, %v3087_v5 }
 0x3ef   :  { %v2461_v59 = vadd.f32 %v3089_v3, %v2386_v21 }
 0x3f0   :  { %v3122_v43 = vpop.f32.mrb[36].mxu1 }
 0x3f1   :  { %v3123_v14 = vpop.f32.mrb[37].mxu1 }
 0x3f2   :  { %v3124_v23 = vadd.f32 %v3123_v14, %v3122_v43 }
 0x3f4   :  { %v3125_v63 = vpop.f32.mrb[38].mxu1  ;;  %v2531_v0 = vadd.f32 %v3124_v23, %v2456_v12 }
 0x3f5   :  { %v3126_v37 = vpop.f32.mrb[39].mxu1 }
 0x3f6   :  { %v3127_v41 = vadd.f32 %v3126_v37, %v3125_v63 }
 0x3f7   :  { %v3156_v7 = vpop.f32.mrb[40].mxu0 }
 0x3f8   :  { %v2536_v45 = vadd.f32 %v3127_v41, %v2461_v59  ;;  %v2605_v52 = vpop.f32.mrb[41].mxu0 }
 0x3f9   :  { %v2606_v20 = vadd.f32 %v2605_v52, %v2531_v0 }
 0x3fa   :  { %v2611_v54 = vadd.f32 %v3156_v7, %v2536_v45 }
 0x3fb   :  { %v2624_v10 = vadd.f32 %v2617_v18, %v2606_v20 }
 0x3fc   :  { %v2625_v47 = vadd.f32 %v2622_v11, %v2611_v54 }
 0x3fd   :  { %2627 = vst.msk [vmem:[%s5858_s4] sm:$0xff] %vm2626_vm1, %v2624_v10 }
 0x3fe   :  { %2629 = vst.msk [vmem:[%s5858_s4 + $0x8] sm:$0x3] %vm2628_vm2, %v2625_v47 }

</bundles_post_ra>
